<compile_context>
chip_gen: v7x
topology: tpu7x:2x2x1
jax: 0.10.0
libtpu: 0.0.40
codegen_flags: <defaults>
</compile_context>

<pallas_src>
import functools

import jax
import jax.numpy as jnp
import numpy as np
from jax.experimental import pallas as pl
from jax.experimental.pallas import tpu as pltpu

D_IN, H1, H2, D_OUT = 1001, 1024, 256, 32
D_IN_PAD = 1024    # K padded to a lane multiple -> aligned DMAs, unmasked vregs
D_OUT_PAD = 128    # lane-dense output block; real columns sliced in the wrapper
TB_MAX = 128       # batch tile upper bound; sweep 128 (v5e) / 256 (v6e, v7x)


def _round_up(n, m):
    return (n + m - 1) // m * m


def mlp_kernel(x_ref, w1_ref, b1_ref, w2_ref, b2_ref, w3_ref, b3_ref, o_ref):
    # fc1: bf16 MXU matmul, f32 accumulation; bias + ReLU in f32 on the VPU.
    h = jnp.dot(x_ref[...], w1_ref[...], preferred_element_type=jnp.float32)
    h = jnp.maximum(h + b1_ref[...], 0.0).astype(jnp.bfloat16)
    # fc2
    h = jnp.dot(h, w2_ref[...], preferred_element_type=jnp.float32)
    h = jnp.maximum(h + b2_ref[...], 0.0).astype(jnp.bfloat16)
    # fc3 (no activation); output block is lane-dense (D_OUT_PAD = 128).
    h = jnp.dot(h, w3_ref[...], preferred_element_type=jnp.float32)
    o_ref[...] = (h + b3_ref[...]).astype(o_ref.dtype)


def prepare_params(params):
    """One-time host-side prep: zero-pad + cast weights to bf16 (biases stay f32)."""
    w1, b1, w2, b2, w3, b3 = params
    w1_p = jnp.zeros((D_IN_PAD, H1), jnp.bfloat16).at[:D_IN, :].set(
        w1.astype(jnp.bfloat16))
    w3_p = jnp.zeros((H2, D_OUT_PAD), jnp.bfloat16).at[:, :D_OUT].set(
        w3.astype(jnp.bfloat16))
    b3_p = jnp.zeros((1, D_OUT_PAD), jnp.float32).at[:, :D_OUT].set(b3)
    return (w1_p, b1.astype(jnp.float32),
            w2.astype(jnp.bfloat16), b2.astype(jnp.float32),
            w3_p, b3_p)


@functools.partial(jax.jit, static_argnames=("tb_max",))
def mlp_forward(x, prepared, tb_max=TB_MAX):
    w1, b1, w2, b2, w3, b3 = prepared
    B = x.shape[0]
    # Batch tile: single block for small batches, otherwise TB_MAX-sized tiles
    # (grid axis is "parallel" so v7x's two TensorCores split the batch).
    TB = min(tb_max, _round_up(B, 8))
    B_pad = _round_up(B, TB)

    # Zero-pad batch rows and input features (exact numerics), cast to bf16.
    x_p = jnp.zeros((B_pad, D_IN_PAD), jnp.bfloat16)
    x_p = x_p.at[:B, :D_IN].set(x.astype(jnp.bfloat16))

    grid = (B_pad // TB,)
    out = pl.pallas_call(
        mlp_kernel,
        out_shape=jax.ShapeDtypeStruct((B_pad, D_OUT_PAD), jnp.float32),
        grid_spec=pltpu.PrefetchScalarGridSpec(
            num_scalar_prefetch=0,
            grid=grid,
            in_specs=[
                pl.BlockSpec((TB, D_IN_PAD), lambda i: (i, 0)),
                pl.BlockSpec((D_IN_PAD, H1), lambda i: (0, 0)),
                pl.BlockSpec((1, H1), lambda i: (0, 0)),
                pl.BlockSpec((H1, H2), lambda i: (0, 0)),
                pl.BlockSpec((1, H2), lambda i: (0, 0)),
                pl.BlockSpec((H2, D_OUT_PAD), lambda i: (0, 0)),
                pl.BlockSpec((1, D_OUT_PAD), lambda i: (0, 0)),
            ],
            out_specs=pl.BlockSpec((TB, D_OUT_PAD), lambda i: (i, 0)),
        ),
        compiler_params=pltpu.CompilerParams(
            dimension_semantics=("parallel",),
            # ~5.3 MiB bf16 weights (double-buffered) + x/out tiles + intermediates
            # stays well under this; leaves headroom on v7x's 64 MiB VMEM.
            vmem_limit_bytes=32 << 20,
        ),
    )(x_p, w1, b1, w2, b2, w3, b3)
    return out[:B, :D_OUT]


def init_params(key):
    """Deterministic init matching PyTorch Linear shapes (stored as (in, out))."""
    def linear(key, fan_in, fan_out):
        kw, kb = jax.random.split(key)
        bound = 1.0 / np.sqrt(fan_in)
        w = jax.random.uniform(kw, (fan_in, fan_out), jnp.float32, -bound, bound)
        b = jax.random.uniform(kb, (1, fan_out), jnp.float32, -bound, bound)
        return w, b

    k1, k2, k3 = jax.random.split(key, 3)
    w1, b1 = linear(k1, D_IN, H1)
    w2, b2 = linear(k2, H1, H2)
    w3, b3 = linear(k3, H2, D_OUT)
    return w1, b1, w2, b2, w3, b3


def reference(x, params):
    """Pure f32 reference matching the PyTorch module."""
    w1, b1, w2, b2, w3, b3 = params
    h = jax.nn.relu(x @ w1 + b1)
    h = jax.nn.relu(h @ w2 + b2)
    return h @ w3 + b3


if __name__ == "__main__":
    key = jax.random.PRNGKey(0)
    kp, kx = jax.random.split(key)
    params = init_params(kp)
    prepared = prepare_params(params)

    B = 16
    x = jax.random.normal(kx, (B, D_IN), jnp.float32)

    out = jax.block_until_ready(mlp_forward(x, prepared))
    assert out.shape == (B, D_OUT), out.shape

    ref = reference(x, params)
    # bf16 matmul inputs with f32 accumulation -> loosened tolerance vs f32 reference.
    np.testing.assert_allclose(np.asarray(out), np.asarray(ref), rtol=2e-2, atol=2e-2)
    print("KERNEL_OK")
</pallas_src>

<mosaic_0001>
module attributes {stable_mosaic.version = 11 : i64} {
  func.func @mlp_kernel(%arg0: i32, %arg1: memref<16x1024xbf16, #tpu.memory_space<vmem>>, %arg2: memref<1024x1024xbf16, #tpu.memory_space<vmem>>, %arg3: memref<1x1024xf32, #tpu.memory_space<vmem>>, %arg4: memref<1024x256xbf16, #tpu.memory_space<vmem>>, %arg5: memref<1x256xf32, #tpu.memory_space<vmem>>, %arg6: memref<256x128xbf16, #tpu.memory_space<vmem>>, %arg7: memref<1x128xf32, #tpu.memory_space<vmem>>, %arg8: memref<16x128xf32, #tpu.memory_space<vmem>>) attributes {dimension_semantics = [#tpu.dimension_semantics<parallel>], iteration_bounds = array<i64: 1>, scalar_prefetch = 0 : i64, scratch_operands = 0 : i64, tpu.core_type = #tpu.core_type<tc>, window_params = [{transform_indices = @transform_0, window_bounds = array<i64: 16, 1024>}, {pipeline_mode = #tpu.pipeline_mode<synchronous>, transform_indices = @transform_1, window_bounds = array<i64: 1024, 1024>}, {pipeline_mode = #tpu.pipeline_mode<synchronous>, transform_indices = @transform_2, window_bounds = array<i64: 1, 1024>}, {pipeline_mode = #tpu.pipeline_mode<synchronous>, transform_indices = @transform_3, window_bounds = array<i64: 1024, 256>}, {pipeline_mode = #tpu.pipeline_mode<synchronous>, transform_indices = @transform_4, window_bounds = array<i64: 1, 256>}, {pipeline_mode = #tpu.pipeline_mode<synchronous>, transform_indices = @transform_5, window_bounds = array<i64: 256, 128>}, {pipeline_mode = #tpu.pipeline_mode<synchronous>, transform_indices = @transform_6, window_bounds = array<i64: 1, 128>}, {transform_indices = @transform_7, window_bounds = array<i64: 16, 128>}]} {
    %c0 = arith.constant 0 : index
    %c0_0 = arith.constant 0 : index
    %0 = vector.load %arg1[%c0, %c0_0] : memref<16x1024xbf16, #tpu.memory_space<vmem>>, vector<16x1024xbf16>
    %c0_1 = arith.constant 0 : index
    %c0_2 = arith.constant 0 : index
    %1 = vector.load %arg2[%c0_1, %c0_2] : memref<1024x1024xbf16, #tpu.memory_space<vmem>>, vector<1024x1024xbf16>
    %cst = arith.constant dense<0.000000e+00> : vector<16x1024xf32>
    %2 = tpu.matmul %0, %1, %cst {dimension_numbers = #tpu.dot_dimension_numbers<[1], [0], [0], [1], [0, 0, 1, 1], [], []>} : vector<16x1024xbf16>, vector<1024x1024xbf16>, vector<16x1024xf32> -> vector<16x1024xf32>
    %c0_3 = arith.constant 0 : index
    %c0_4 = arith.constant 0 : index
    %3 = vector.load %arg3[%c0_3, %c0_4] : memref<1x1024xf32, #tpu.memory_space<vmem>>, vector<1x1024xf32>
    %4 = vector.broadcast %3 : vector<1x1024xf32> to vector<16x1024xf32>
    %5 = arith.addf %2, %4 : vector<16x1024xf32>
    %cst_5 = arith.constant 0.000000e+00 : f32
    %6 = vector.broadcast %cst_5 : f32 to vector<16x1024xf32>
    %7 = arith.maximumf %5, %6 : vector<16x1024xf32>
    %8 = arith.truncf %7 : vector<16x1024xf32> to vector<16x1024xbf16>
    %c0_6 = arith.constant 0 : index
    %c0_7 = arith.constant 0 : index
    %9 = vector.load %arg4[%c0_6, %c0_7] : memref<1024x256xbf16, #tpu.memory_space<vmem>>, vector<1024x256xbf16>
    %cst_8 = arith.constant dense<0.000000e+00> : vector<16x256xf32>
    %10 = tpu.matmul %8, %9, %cst_8 {dimension_numbers = #tpu.dot_dimension_numbers<[1], [0], [0], [1], [0, 0, 1, 1], [], []>} : vector<16x1024xbf16>, vector<1024x256xbf16>, vector<16x256xf32> -> vector<16x256xf32>
    %c0_9 = arith.constant 0 : index
    %c0_10 = arith.constant 0 : index
    %11 = vector.load %arg5[%c0_9, %c0_10] : memref<1x256xf32, #tpu.memory_space<vmem>>, vector<1x256xf32>
    %12 = vector.broadcast %11 : vector<1x256xf32> to vector<16x256xf32>
    %13 = arith.addf %10, %12 : vector<16x256xf32>
    %cst_11 = arith.constant 0.000000e+00 : f32
    %14 = vector.broadcast %cst_11 : f32 to vector<16x256xf32>
    %15 = arith.maximumf %13, %14 : vector<16x256xf32>
    %16 = arith.truncf %15 : vector<16x256xf32> to vector<16x256xbf16>
    %c0_12 = arith.constant 0 : index
    %c0_13 = arith.constant 0 : index
    %17 = vector.load %arg6[%c0_12, %c0_13] : memref<256x128xbf16, #tpu.memory_space<vmem>>, vector<256x128xbf16>
    %cst_14 = arith.constant dense<0.000000e+00> : vector<16x128xf32>
    %18 = tpu.matmul %16, %17, %cst_14 {dimension_numbers = #tpu.dot_dimension_numbers<[1], [0], [0], [1], [0, 0, 1, 1], [], []>} : vector<16x256xbf16>, vector<256x128xbf16>, vector<16x128xf32> -> vector<16x128xf32>
    %c0_15 = arith.constant 0 : index
    %c0_16 = arith.constant 0 : index
    %19 = vector.load %arg7[%c0_15, %c0_16] : memref<1x128xf32, #tpu.memory_space<vmem>>, vector<1x128xf32>
    %20 = vector.broadcast %19 : vector<1x128xf32> to vector<16x128xf32>
    %21 = arith.addf %18, %20 : vector<16x128xf32>
    %c0_17 = arith.constant 0 : index
    %c0_18 = arith.constant 0 : index
    %22 = vector.load %arg8[%c0_17, %c0_18] : memref<16x128xf32, #tpu.memory_space<vmem>>, vector<16x128xf32>
    tpu.vector_store %arg8[%c0_17, %c0_18], %21 {strides = array<i32>} : memref<16x128xf32, #tpu.memory_space<vmem>>, vector<16x128xf32>,
    return
  }
  func.func @transform_0(%arg0: i32) -> (i32, i32) {
    %c0_i32 = arith.constant 0 : i32
    %c0_i32_0 = arith.constant 0 : i32
    return %arg0, %c0_i32 : i32, i32
  }
  func.func @transform_1(%arg0: i32) -> (i32, i32) {
    %c0_i32 = arith.constant 0 : i32
    %c0_i32_0 = arith.constant 0 : i32
    %c0_i32_1 = arith.constant 0 : i32
    return %c0_i32, %c0_i32_0 : i32, i32
  }
  func.func @transform_2(%arg0: i32) -> (i32, i32) {
    %c0_i32 = arith.constant 0 : i32
    %c0_i32_0 = arith.constant 0 : i32
    %c0_i32_1 = arith.constant 0 : i32
    return %c0_i32, %c0_i32_0 : i32, i32
  }
  func.func @transform_3(%arg0: i32) -> (i32, i32) {
    %c0_i32 = arith.constant 0 : i32
    %c0_i32_0 = arith.constant 0 : i32
    %c0_i32_1 = arith.constant 0 : i32
    return %c0_i32, %c0_i32_0 : i32, i32
  }
  func.func @transform_4(%arg0: i32) -> (i32, i32) {
    %c0_i32 = arith.constant 0 : i32
    %c0_i32_0 = arith.constant 0 : i32
    %c0_i32_1 = arith.constant 0 : i32
    return %c0_i32, %c0_i32_0 : i32, i32
  }
  func.func @transform_5(%arg0: i32) -> (i32, i32) {
    %c0_i32 = arith.constant 0 : i32
    %c0_i32_0 = arith.constant 0 : i32
    %c0_i32_1 = arith.constant 0 : i32
    return %c0_i32, %c0_i32_0 : i32, i32
  }
  func.func @transform_6(%arg0: i32) -> (i32, i32) {
    %c0_i32 = arith.constant 0 : i32
    %c0_i32_0 = arith.constant 0 : i32
    %c0_i32_1 = arith.constant 0 : i32
    return %c0_i32, %c0_i32_0 : i32, i32
  }
  func.func @transform_7(%arg0: i32) -> (i32, i32) {
    %c0_i32 = arith.constant 0 : i32
    %c0_i32_0 = arith.constant 0 : i32
    return %arg0, %c0_i32 : i32, i32
  }
}

</mosaic_0001>

<bundles_post_ra>
// kernel: mlp_forward.1
= control target key start
LH: loop header
LB: loop body
LE: loop exit
PB: predicated region body
PF: predicated region fallthrough
CT: control target
= control target key end

     0   :  { %12 = vsyncpa [#allocation3], 0  ;;  %s6569_s0 = inlined_call_operand.vmem [shape: bf16[16,1024], index: 0, kind: input, shape index: {}]   ;;  %s6570_s1 = inlined_call_operand.hbm [shape: bf16[1024,1024], index: 1, kind: input, shape index: {}]   ;;  %s6571_s2 = inlined_call_operand.hbm [shape: f32[1,1024], index: 2, kind: input, shape index: {}]   ;;  %s6572_s3 = inlined_call_operand.hbm [shape: bf16[1024,256], index: 3, kind: input, shape index: {}]   ;;  %s6573_s4 = inlined_call_operand.hbm [shape: f32[1,256], index: 4, kind: input, shape index: {}]   ;;  %s6574_s5 = inlined_call_operand.hbm [shape: bf16[256,128], index: 5, kind: input, shape index: {}]   ;;  %s6575_s6 = inlined_call_operand.hbm [shape: f32[1,128], index: 6, kind: input, shape index: {}]   ;;  %s6576_s7 = inlined_call_operand.hbm [shape: f32[16,128], index: 7, kind: output, shape index: {}]  }
   0x1   :  { %13 = vsyncpa [#allocation6], 0 }
   0x2   :  { %14 = vsyncpa [#allocation9], 0 }
   0x3   :  { %15 = vsyncpa [#allocation12], 0 }
   0x4   :  { %16 = vsyncpa [#allocation4], 0  ;;  %s6287_s24 = smov [#allocation5]   ;;  %s6288_s26 = smov [#allocation8]  }
   0x5   :  { %s37_s25 = sshll.u32 %s6287_s24, 4  ;;  %s59_s27 = sshll.u32 %s6288_s26, 4  ;;  %s38_s25 = int_to_ptr.vmem [resolvable:$true] %s37_s25  ;;  %s60_s27 = int_to_ptr.vmem [resolvable:$true] %s59_s27 }
   0x6   :  { %s6123_s30 = scalar_lea.hbm %s6571_s2, 128 }
   0x7   :  { %p6124_p0 = scmp.ne.s32.totalorder %s6571_s2, %s6123_s30  ;;  %p6127_p1 = scmp.lt.u32.totalorder %s6123_s30, %s6571_s2 }
   0x9   :  { %p6129_p2 = pnand %p6127_p1, %p6124_p0 }
   0xb   :  { %6132 = shalt.err (!%p6129_p2)
}
   0xc   :  { %s6133_s12 = scalar_lea.vmem %s38_s25, 128  ;;  %p6138_p4 = scmp.lt.s32.totalorder %s38_s25, %s38_s25 }
   0xd   :  { %p6134_p3 = scmp.ne.s32.totalorder %s38_s25, %s6133_s12  ;;  %p6139_p5 = scmp.lt.s32.totalorder %s6133_s12, %s6133_s12 }
   0xf   :  { %p6140_p6 = por %p6139_p5, %p6138_p4 }
  0x11   :  { %p6141_p7 = pnand %p6140_p6, %p6134_p3 }
  0x13   :  { %6144 = shalt.err (!%p6141_p7)
}
  0x14   :  { %40 = dma.hbm_to_vmem [thread:$0]  %s6571_s2, 128, %s38_s25, [#allocation6]  }
  0x15   :  { %s6145_s17 = scalar_lea.hbm %s6573_s4, 32 }
  0x16   :  { %p6146_p8 = scmp.ne.s32.totalorder %s6573_s4, %s6145_s17  ;;  %p6149_p9 = scmp.lt.u32.totalorder %s6145_s17, %s6573_s4 }
  0x18   :  { %p6151_p10 = pnand %p6149_p9, %p6146_p8 }
  0x1a   :  { %6154 = shalt.err (!%p6151_p10)
}
  0x1b   :  { %s6155_s22 = scalar_lea.vmem %s60_s27, 32  ;;  %p6160_p12 = scmp.lt.s32.totalorder %s60_s27, %s60_s27 }
  0x1c   :  { %p6156_p11 = scmp.ne.s32.totalorder %s60_s27, %s6155_s22  ;;  %p6161_p13 = scmp.lt.s32.totalorder %s6155_s22, %s6155_s22 }
  0x1e   :  { %p6162_p0 = por %p6161_p13, %p6160_p12 }
  0x20   :  { %p6163_p1 = pnand %p6162_p0, %p6156_p11 }
  0x22   :  { %6166 = shalt.err (!%p6163_p1)
}
  0x23   :  { %62 = dma.hbm_to_vmem [thread:$0]  %s6573_s4, 32, %s60_s27, [#allocation9]  }
  0x24   :  { %s6289_s24 = smov [#allocation2]   ;;  %s6167_s29 = scalar_lea.hbm %s6570_s1, 65536 }
  0x25   :  { %s24_s25 = sshll.u32 %s6289_s24, 4  ;;  %p6168_p2 = scmp.ne.s32.totalorder %s6570_s1, %s6167_s29  ;;  %s25_s25 = int_to_ptr.vmem [resolvable:$true] %s24_s25 }
  0x26   :  { %p6171_p3 = scmp.lt.u32.totalorder %s6167_s29, %s6570_s1 }
  0x28   :  { %p6173_p4 = pnand %p6171_p3, %p6168_p2 }
  0x2a   :  { %6176 = shalt.err (!%p6173_p4)
}
  0x2b   :  { %s6177_s11 = scalar_lea.vmem %s25_s25, 65536  ;;  %p6182_p6 = scmp.lt.s32.totalorder %s25_s25, %s25_s25 }
  0x2c   :  { %p6178_p5 = scmp.ne.s32.totalorder %s25_s25, %s6177_s11  ;;  %p6183_p7 = scmp.lt.s32.totalorder %s6177_s11, %s6177_s11 }
  0x2e   :  { %p6184_p8 = por %p6183_p7, %p6182_p6 }
  0x30   :  { %p6185_p9 = pnand %p6184_p8, %p6178_p5 }
  0x32   :  { %6188 = shalt.err (!%p6185_p9)
}
  0x33   :  { %s6290_s4 = smov 512   ;;  %s6291_s27 = smov 32  }
  0x34   :  { %30 = dma.hbm_to_vmem [thread:$0]  %s6570_s1, 65536, %s25_s25, [#allocation3], %s6290_s4, %s6290_s4, %s6291_s27  }
  0x35   :  { %s6292_s14 = smov [#allocation7]   ;;  %s6189_s18 = scalar_lea.hbm %s6572_s3, 16384 }
  0x36   :  { %s46_s15 = sshll.u32 %s6292_s14, 4  ;;  %p6190_p10 = scmp.ne.s32.totalorder %s6572_s3, %s6189_s18  ;;  %s47_s15 = int_to_ptr.vmem [resolvable:$true] %s46_s15 }
  0x37   :  { %p6193_p11 = scmp.lt.u32.totalorder %s6189_s18, %s6572_s3 }
  0x39   :  { %p6195_p12 = pnand %p6193_p11, %p6190_p10 }
  0x3b   :  { %6198 = shalt.err (!%p6195_p12)
}
  0x3c   :  { %s6199_s2 = scalar_lea.vmem %s47_s15, 16384  ;;  %p6204_p0 = scmp.lt.s32.totalorder %s47_s15, %s47_s15 }
  0x3d   :  { %p6200_p13 = scmp.ne.s32.totalorder %s47_s15, %s6199_s2  ;;  %p6205_p1 = scmp.lt.s32.totalorder %s6199_s2, %s6199_s2 }
  0x3f   :  { %p6206_p2 = por %p6205_p1, %p6204_p0 }
  0x41   :  { %p6207_p3 = pnand %p6206_p2, %p6200_p13 }
  0x43   :  { %6210 = shalt.err (!%p6207_p3)
}
  0x44   :  { %s6293_s1 = smov 128   ;;  %s6294_s23 = smov 8  }
  0x45   :  { %52 = dma.hbm_to_vmem [thread:$0]  %s6572_s3, 16384, %s47_s15, [#allocation6], %s6293_s1, %s6293_s1, %s6294_s23  }
  0x46   :  { %s6295_s26 = smov [#allocation10]   ;;  %s6211_s8 = scalar_lea.hbm %s6574_s5, 2048 }
  0x47   :  { %s68_s28 = sshll.u32 %s6295_s26, 4  ;;  %p6212_p4 = scmp.ne.s32.totalorder %s6574_s5, %s6211_s8  ;;  %s69_s28 = int_to_ptr.vmem [resolvable:$true] %s68_s28 }
  0x48   :  { %p6215_p5 = scmp.lt.u32.totalorder %s6211_s8, %s6574_s5 }
  0x4a   :  { %p6217_p6 = pnand %p6215_p5, %p6212_p4 }
  0x4c   :  { %6220 = shalt.err (!%p6217_p6)
}
  0x4d   :  { %s6221_s27 = scalar_lea.vmem %s69_s28, 2048  ;;  %p6226_p8 = scmp.lt.s32.totalorder %s69_s28, %s69_s28 }
  0x4e   :  { %p6222_p7 = scmp.ne.s32.totalorder %s69_s28, %s6221_s27  ;;  %p6227_p9 = scmp.lt.s32.totalorder %s6221_s27, %s6221_s27 }
  0x50   :  { %p6228_p10 = por %p6227_p9, %p6226_p8 }
  0x52   :  { %p6229_p11 = pnand %p6228_p10, %p6222_p7 }
  0x54   :  { %6232 = shalt.err (!%p6229_p11)
}
  0x55   :  { %s6296_s3 = smov 64   ;;  %s6297_s12 = smov 4  }
  0x56   :  { %74 = dma.hbm_to_vmem [thread:$0]  %s6574_s5, 2048, %s69_s28, [#allocation9], %s6296_s3, %s6296_s3, %s6297_s12  }
  0x57   :  { %s6298_s15 = smov [#allocation11]   ;;  %s6233_s19 = scalar_lea.hbm %s6575_s6, 16 }
  0x58   :  { %s81_s16 = sshll.u32 %s6298_s15, 4  ;;  %p6234_p12 = scmp.ne.s32.totalorder %s6575_s6, %s6233_s19  ;;  %s82_s16 = int_to_ptr.vmem [resolvable:$true] %s81_s16 }
  0x59   :  { %p6237_p13 = scmp.lt.u32.totalorder %s6233_s19, %s6575_s6 }
  0x5b   :  { %p6239_p0 = pnand %p6237_p13, %p6234_p12 }
  0x5d   :  { %6242 = shalt.err (!%p6239_p0)
}
  0x5e   :  { %s6243_s24 = scalar_lea.vmem %s82_s16, 16  ;;  %s6247_s5 = scalar_lea.vmem %s82_s16, 32 }
  0x5f   :  { %p6244_p1 = scmp.ne.s32.totalorder %s82_s16, %s6243_s24  ;;  %p6248_p2 = scmp.lt.s32.totalorder %s82_s16, %s82_s16 }
  0x60   :  { %p6249_p3 = scmp.lt.s32.totalorder %s6247_s5, %s6243_s24 }
  0x62   :  { %p6250_p4 = por %p6249_p3, %p6248_p2 }
  0x64   :  { %p6251_p5 = pnand %p6250_p4, %p6244_p1 }
  0x66   :  { %6254 = shalt.err (!%p6251_p5)
}
  0x67   :  { %84 = dma.hbm_to_vmem [thread:$0]  %s6575_s6, 16, %s82_s16, [#allocation12]  }
  0x68   :  { %6277 = dma.done.wait [#allocation3], 65536  }
  0x69   :  { %6278 = vsyncadd [#allocation3], 4294901760 }
  0x6a   :  { %6279 = dma.done.wait [#allocation6], 16512  }
  0x6b   :  { %6280 = vsyncadd [#allocation6], 4294950784 }
  0x6c   :  { %6281 = dma.done.wait [#allocation9], 2080  }
  0x6d   :  { %6282 = vsyncadd [#allocation9], 4294965216 }
  0x6e   :  { %6283 = dma.done.wait [#allocation12], 16  }
  0x6f   :  { %6284 = vsyncadd [#allocation12], 4294967280  ;;  %v112_v0 = vld [vmem:[#allocation2] sm:$0xff]  ;;  %v6432_v59 = vld [vmem:[%s6569_s0 + $0x10] sm:$0xff] }
  0x70   :  { %v116_v1 = vld [vmem:[#allocation2 + $0x20] sm:$0xff]  ;;  %v6437_v62 = vld [vmem:[%s6569_s0 + $0x30] sm:$0xff] }
  0x71   :  { %v368_v2 = vld [vmem:[#allocation2 + $0x800] sm:$0xff]  ;;  %v5143_v3 = vcombine.high %v112_v0, %v116_v1  ;;  %v5142_v5 = vcombine.low %v112_v0, %v116_v1  ;;  %v6442_v0 = vcombine.high %v6432_v59, %v6437_v62 }
  0x72   :  { %v372_v4 = vld [vmem:[#allocation2 + $0x820] sm:$0xff] }
  0x73   :  { %v120_v6 = vld [vmem:[#allocation2 + $0x40] sm:$0xff]  ;;  %v5399_v8 = vcombine.high %v368_v2, %v372_v4  ;;  %v5398_v9 = vcombine.low %v368_v2, %v372_v4  ;;  %3266 = vmatprep.subr.bf16.mxu1 %v5143_v3  ;;  %3384 = vmatprep.mubr.bf16.mxu0 %v6442_v0 }
  0x74   :  { %v124_v7 = vld [vmem:[#allocation2 + $0x60] sm:$0xff]  ;;  %3267 = vmatpush1.bf16.msra.mxu1 %v5142_v5 }
  0x75   :  { %v5151_v10 = vcombine.high %v120_v6, %v124_v7  ;;  %v376_v11 = vld [vmem:[#allocation2 + $0x840] sm:$0xff]  ;;  %3352 = vmatprep.subr.bf16.mxu0 %v5399_v8  ;;  %v5150_v18 = vcombine.low %v120_v6, %v124_v7 }
  0x76   :  { %v380_v12 = vld [vmem:[#allocation2 + $0x860] sm:$0xff]  ;;  %3353 = vmatpush1.bf16.msra.mxu0 %v5398_v9 }
  0x77   :  { %v128_v13 = vld [vmem:[#allocation2 + $0x80] sm:$0xff]  ;;  %v5407_v14 = vcombine.high %v376_v11, %v380_v12  ;;  %3268 = vmatprep.subr.bf16.mxu1 %v5151_v10  ;;  %v5406_v19 = vcombine.low %v376_v11, %v380_v12 }
  0x78   :  { %v132_v15 = vld [vmem:[#allocation2 + $0xa0] sm:$0xff]  ;;  %3269 = vmatpush1.bf16.msra.mxu1 %v5150_v18 }
  0x79   :  { %v384_v16 = vld [vmem:[#allocation2 + $0x880] sm:$0xff]  ;;  %v5159_v20 = vcombine.high %v128_v13, %v132_v15  ;;  %3354 = vmatprep.subr.bf16.mxu0 %v5407_v14  ;;  %v5158_v26 = vcombine.low %v128_v13, %v132_v15 }
  0x7a   :  { %v388_v17 = vld [vmem:[#allocation2 + $0x8a0] sm:$0xff]  ;;  %3355 = vmatpush1.bf16.msra.mxu0 %v5406_v19 }
  0x7b   :  { %v5415_v21 = vcombine.high %v384_v16, %v388_v17  ;;  %v136_v22 = vld [vmem:[#allocation2 + $0xc0] sm:$0xff]  ;;  %3270 = vmatprep.subr.bf16.mxu1 %v5159_v20  ;;  %v5414_v27 = vcombine.low %v384_v16, %v388_v17 }
  0x7c   :  { %v140_v23 = vld [vmem:[#allocation2 + $0xe0] sm:$0xff]  ;;  %3271 = vmatpush1.bf16.msra.mxu1 %v5158_v26 }
  0x7d   :  { %v392_v24 = vld [vmem:[#allocation2 + $0x8c0] sm:$0xff]  ;;  %v5167_v28 = vcombine.high %v136_v22, %v140_v23  ;;  %3356 = vmatprep.subr.bf16.mxu0 %v5415_v21  ;;  %v5166_v34 = vcombine.low %v136_v22, %v140_v23 }
  0x7e   :  { %v396_v25 = vld [vmem:[#allocation2 + $0x8e0] sm:$0xff]  ;;  %3357 = vmatpush1.bf16.msra.mxu0 %v5414_v27 }
  0x7f   :  { %v5423_v29 = vcombine.high %v392_v24, %v396_v25  ;;  %v144_v30 = vld [vmem:[#allocation2 + $0x100] sm:$0xff]  ;;  %3272 = vmatprep.subr.bf16.mxu1 %v5167_v28  ;;  %v5422_v35 = vcombine.low %v392_v24, %v396_v25 }
  0x80   :  { %v148_v31 = vld [vmem:[#allocation2 + $0x120] sm:$0xff]  ;;  %3273 = vmatpush1.bf16.msra.mxu1 %v5166_v34 }
  0x81   :  { %v400_v32 = vld [vmem:[#allocation2 + $0x900] sm:$0xff]  ;;  %v5175_v36 = vcombine.high %v144_v30, %v148_v31  ;;  %3358 = vmatprep.subr.bf16.mxu0 %v5423_v29  ;;  %v5174_v42 = vcombine.low %v144_v30, %v148_v31 }
  0x82   :  { %v404_v33 = vld [vmem:[#allocation2 + $0x920] sm:$0xff]  ;;  %3359 = vmatpush1.bf16.msra.mxu0 %v5422_v35 }
  0x83   :  { %v5431_v37 = vcombine.high %v400_v32, %v404_v33  ;;  %v152_v38 = vld [vmem:[#allocation2 + $0x140] sm:$0xff]  ;;  %3274 = vmatprep.subr.bf16.mxu1 %v5175_v36  ;;  %v5430_v43 = vcombine.low %v400_v32, %v404_v33 }
  0x84   :  { %v156_v39 = vld [vmem:[#allocation2 + $0x160] sm:$0xff]  ;;  %3275 = vmatpush1.bf16.msra.mxu1 %v5174_v42 }
  0x85   :  { %v408_v40 = vld [vmem:[#allocation2 + $0x940] sm:$0xff]  ;;  %v5183_v44 = vcombine.high %v152_v38, %v156_v39  ;;  %3360 = vmatprep.subr.bf16.mxu0 %v5431_v37  ;;  %v5182_v50 = vcombine.low %v152_v38, %v156_v39 }
  0x86   :  { %v412_v41 = vld [vmem:[#allocation2 + $0x960] sm:$0xff]  ;;  %3361 = vmatpush1.bf16.msra.mxu0 %v5430_v43 }
  0x87   :  { %v5439_v45 = vcombine.high %v408_v40, %v412_v41  ;;  %v160_v46 = vld [vmem:[#allocation2 + $0x180] sm:$0xff]  ;;  %3276 = vmatprep.subr.bf16.mxu1 %v5183_v44  ;;  %v5438_v51 = vcombine.low %v408_v40, %v412_v41 }
  0x88   :  { %v164_v47 = vld [vmem:[#allocation2 + $0x1a0] sm:$0xff]  ;;  %3277 = vmatpush1.bf16.msra.mxu1 %v5182_v50 }
  0x89   :  { %v416_v48 = vld [vmem:[#allocation2 + $0x980] sm:$0xff]  ;;  %v5191_v52 = vcombine.high %v160_v46, %v164_v47  ;;  %3362 = vmatprep.subr.bf16.mxu0 %v5439_v45  ;;  %v5190_v63 = vcombine.low %v160_v46, %v164_v47 }
  0x8a   :  { %v420_v49 = vld [vmem:[#allocation2 + $0x9a0] sm:$0xff]  ;;  %3363 = vmatpush1.bf16.msra.mxu0 %v5438_v51 }
  0x8b   :  { %v6418_v53 = vld [vmem:[%s6569_s0] sm:$0xff]  ;;  %v5447_v55 = vcombine.high %v416_v48, %v420_v49  ;;  %3278 = vmatprep.subr.bf16.mxu1 %v5191_v52  ;;  %v5446_v1 = vcombine.low %v416_v48, %v420_v49 }
  0x8c   :  { %v6423_v54 = vld [vmem:[%s6569_s0 + $0x20] sm:$0xff]  ;;  %3279 = vmatpush1.bf16.msra.mxu1 %v5190_v63 }
  0x8d   :  { %v168_v56 = vld [vmem:[#allocation2 + $0x1c0] sm:$0xff]  ;;  %v6427_v58 = vcombine.high %v6418_v53, %v6423_v54  ;;  %3364 = vmatprep.subr.bf16.mxu0 %v5447_v55 }
  0x8e   :  { %v172_v57 = vld [vmem:[#allocation2 + $0x1e0] sm:$0xff]  ;;  %3365 = vmatpush1.bf16.msra.mxu0 %v5446_v1 }
  0x8f   :  { %v424_v60 = vld [vmem:[#allocation2 + $0x9c0] sm:$0xff]  ;;  %3298 = vmatprep.mubr.bf16.mxu1 %v6427_v58  ;;  %v5199_v2 = vcombine.high %v168_v56, %v172_v57  ;;  %v5198_v8 = vcombine.low %v168_v56, %v172_v57 }
  0x90   :  { %v428_v61 = vld [vmem:[#allocation2 + $0x9e0] sm:$0xff] }
  0x91   :  { %v5455_v3 = vcombine.high %v424_v60, %v428_v61  ;;  %v176_v4 = vld [vmem:[#allocation2 + $0x200] sm:$0xff]  ;;  %3280 = vmatprep.subr.bf16.mxu1 %v5199_v2  ;;  %v5454_v9 = vcombine.low %v424_v60, %v428_v61 }
  0x92   :  { %v180_v5 = vld [vmem:[#allocation2 + $0x220] sm:$0xff]  ;;  %3281 = vmatpush1.bf16.msra.mxu1 %v5198_v8 }
  0x93   :  { %v432_v6 = vld [vmem:[#allocation2 + $0xa00] sm:$0xff]  ;;  %v5207_v10 = vcombine.high %v176_v4, %v180_v5  ;;  %3366 = vmatprep.subr.bf16.mxu0 %v5455_v3  ;;  %v5206_v16 = vcombine.low %v176_v4, %v180_v5 }
  0x94   :  { %v436_v7 = vld [vmem:[#allocation2 + $0xa20] sm:$0xff]  ;;  %3367 = vmatpush1.bf16.msra.mxu0 %v5454_v9 }
  0x95   :  { %v5463_v11 = vcombine.high %v432_v6, %v436_v7  ;;  %v184_v12 = vld [vmem:[#allocation2 + $0x240] sm:$0xff]  ;;  %3282 = vmatprep.subr.bf16.mxu1 %v5207_v10  ;;  %v5462_v17 = vcombine.low %v432_v6, %v436_v7 }
  0x96   :  { %v188_v13 = vld [vmem:[#allocation2 + $0x260] sm:$0xff]  ;;  %3283 = vmatpush1.bf16.msra.mxu1 %v5206_v16 }
  0x97   :  { %v440_v14 = vld [vmem:[#allocation2 + $0xa40] sm:$0xff]  ;;  %v5215_v18 = vcombine.high %v184_v12, %v188_v13  ;;  %3368 = vmatprep.subr.bf16.mxu0 %v5463_v11  ;;  %v5214_v24 = vcombine.low %v184_v12, %v188_v13 }
  0x98   :  { %v444_v15 = vld [vmem:[#allocation2 + $0xa60] sm:$0xff]  ;;  %3369 = vmatpush1.bf16.msra.mxu0 %v5462_v17 }
  0x99   :  { %v5471_v19 = vcombine.high %v440_v14, %v444_v15  ;;  %v192_v20 = vld [vmem:[#allocation2 + $0x280] sm:$0xff]  ;;  %3284 = vmatprep.subr.bf16.mxu1 %v5215_v18  ;;  %v5470_v25 = vcombine.low %v440_v14, %v444_v15 }
  0x9a   :  { %v196_v21 = vld [vmem:[#allocation2 + $0x2a0] sm:$0xff]  ;;  %3285 = vmatpush1.bf16.msra.mxu1 %v5214_v24  ;;  %v6457_v24 = vld [vmem:[%s6569_s0 + $0x28] sm:$0xff] }
  0x9b   :  { %v448_v22 = vld [vmem:[#allocation2 + $0xa80] sm:$0xff]  ;;  %v5223_v26 = vcombine.high %v192_v20, %v196_v21  ;;  %3370 = vmatprep.subr.bf16.mxu0 %v5471_v19  ;;  %v5222_v32 = vcombine.low %v192_v20, %v196_v21  ;;  %v6447_v21 = vcombine.low %v6418_v53, %v6423_v54  ;;  %v6466_v53 = vld [vmem:[%s6569_s0 + $0x18] sm:$0xff] }
  0x9c   :  { %v452_v23 = vld [vmem:[#allocation2 + $0xaa0] sm:$0xff]  ;;  %3371 = vmatpush1.bf16.msra.mxu0 %v5470_v25  ;;  %v6471_v54 = vld [vmem:[%s6569_s0 + $0x38] sm:$0xff] }
  0x9d   :  { %v5479_v27 = vcombine.high %v448_v22, %v452_v23  ;;  %v200_v28 = vld [vmem:[#allocation2 + $0x2c0] sm:$0xff]  ;;  %3286 = vmatprep.subr.bf16.mxu1 %v5223_v26  ;;  %v5478_v33 = vcombine.low %v448_v22, %v452_v23  ;;  %v6452_v23 = vld [vmem:[%s6569_s0 + $0x8] sm:$0xff]  ;;  %v6461_v26 = vcombine.low %v6432_v59, %v6437_v62  ;;  %s6299_s0 = smov [#allocation13]  }
  0x9e   :  { %v204_v29 = vld [vmem:[#allocation2 + $0x2e0] sm:$0xff]  ;;  %3287 = vmatpush1.bf16.msra.mxu1 %v5222_v32  ;;  %v6475_v59 = vcombine.high %v6452_v23, %v6457_v24  ;;  %s5119_s17 = sshll.u32 %s6299_s0, 4  ;;  %s5120_s17 = int_to_ptr.vmem [resolvable:$true] %s5119_s17 }
  0x9f   :  { %v456_v30 = vld [vmem:[#allocation2 + $0xac0] sm:$0xff]  ;;  %v5231_v34 = vcombine.high %v200_v28, %v204_v29  ;;  %3372 = vmatprep.subr.bf16.mxu0 %v5479_v27  ;;  %v5230_v40 = vcombine.low %v200_v28, %v204_v29  ;;  %s6255_s18 = scalar_lea.vmem %s5120_s17, 256  ;;  %p6260_p7 = scmp.lt.s32.totalorder %s5120_s17, %s5120_s17 }
  0xa0   :  { %v460_v31 = vld [vmem:[#allocation2 + $0xae0] sm:$0xff]  ;;  %3373 = vmatpush1.bf16.msra.mxu0 %v5478_v33  ;;  %v6480_v33 = vcombine.high %v6466_v53, %v6471_v54  ;;  %p6256_p6 = scmp.ne.s32.totalorder %s5120_s17, %s6255_s18  ;;  %p6261_p8 = scmp.lt.s32.totalorder %s6255_s18, %s6255_s18 }
  0xa1   :  { %v5487_v35 = vcombine.high %v456_v30, %v460_v31  ;;  %v208_v36 = vld [vmem:[#allocation2 + $0x300] sm:$0xff]  ;;  %3288 = vmatprep.subr.bf16.mxu1 %v5231_v34  ;;  %v5486_v41 = vcombine.low %v456_v30, %v460_v31 }
  0xa2   :  { %v212_v37 = vld [vmem:[#allocation2 + $0x320] sm:$0xff]  ;;  %3289 = vmatpush1.bf16.msra.mxu1 %v5230_v40  ;;  %p6262_p9 = por %p6261_p8, %p6260_p7 }
  0xa3   :  { %v464_v38 = vld [vmem:[#allocation2 + $0xb00] sm:$0xff]  ;;  %v5239_v42 = vcombine.high %v208_v36, %v212_v37  ;;  %3374 = vmatprep.subr.bf16.mxu0 %v5487_v35  ;;  %v5238_v48 = vcombine.low %v208_v36, %v212_v37 }
  0xa4   :  { %v468_v39 = vld [vmem:[#allocation2 + $0xb20] sm:$0xff]  ;;  %3375 = vmatpush1.bf16.msra.mxu0 %v5486_v41  ;;  %p6263_p10 = pnand %p6262_p9, %p6256_p6 }
  0xa5   :  { %v5495_v43 = vcombine.high %v464_v38, %v468_v39  ;;  %v216_v44 = vld [vmem:[#allocation2 + $0x340] sm:$0xff]  ;;  %3290 = vmatprep.subr.bf16.mxu1 %v5239_v42  ;;  %v5494_v49 = vcombine.low %v464_v38, %v468_v39 }
  0xa6   :  { %v220_v45 = vld [vmem:[#allocation2 + $0x360] sm:$0xff]  ;;  %3291 = vmatpush1.bf16.msra.mxu1 %v5238_v48 }
  0xa7   :  { %v472_v46 = vld [vmem:[#allocation2 + $0xb40] sm:$0xff]  ;;  %v5247_v50 = vcombine.high %v216_v44, %v220_v45  ;;  %3376 = vmatprep.subr.bf16.mxu0 %v5495_v43  ;;  %v5246_v60 = vcombine.low %v216_v44, %v220_v45 }
  0xa8   :  { %v476_v47 = vld [vmem:[#allocation2 + $0xb60] sm:$0xff]  ;;  %3377 = vmatpush1.bf16.msra.mxu0 %v5494_v49 }
  0xa9   :  { %v5503_v51 = vcombine.high %v472_v46, %v476_v47  ;;  %v224_v52 = vld [vmem:[#allocation2 + $0x380] sm:$0xff]  ;;  %3292 = vmatprep.subr.bf16.mxu1 %v5247_v50  ;;  %v5502_v61 = vcombine.low %v472_v46, %v476_v47 }
  0xaa   :  { %v228_v55 = vld [vmem:[#allocation2 + $0x3a0] sm:$0xff]  ;;  %3293 = vmatpush1.bf16.msra.mxu1 %v5246_v60 }
  0xab   :  { %v480_v56 = vld [vmem:[#allocation2 + $0xb80] sm:$0xff]  ;;  %v5255_v63 = vcombine.high %v224_v52, %v228_v55  ;;  %3378 = vmatprep.subr.bf16.mxu0 %v5503_v51  ;;  %v5254_v6 = vcombine.low %v224_v52, %v228_v55 }
  0xac   :  { %v484_v57 = vld [vmem:[#allocation2 + $0xba0] sm:$0xff]  ;;  %3379 = vmatpush1.bf16.msra.mxu0 %v5502_v61 }
  0xad   :  { %v5511_v1 = vcombine.high %v480_v56, %v484_v57  ;;  %v232_v2 = vld [vmem:[#allocation2 + $0x3c0] sm:$0xff]  ;;  %3294 = vmatprep.subr.bf16.mxu1 %v5255_v63  ;;  %v5510_v7 = vcombine.low %v480_v56, %v484_v57 }
  0xae   :  { %v236_v3 = vld [vmem:[#allocation2 + $0x3e0] sm:$0xff]  ;;  %3295 = vmatpush1.bf16.msra.mxu1 %v5254_v6 }
  0xaf   :  { %v488_v4 = vld [vmem:[#allocation2 + $0xbc0] sm:$0xff]  ;;  %v5263_v8 = vcombine.high %v232_v2, %v236_v3  ;;  %3380 = vmatprep.subr.bf16.mxu0 %v5511_v1  ;;  %v5262_v14 = vcombine.low %v232_v2, %v236_v3 }
  0xb0   :  { %v492_v5 = vld [vmem:[#allocation2 + $0xbe0] sm:$0xff]  ;;  %3381 = vmatpush1.bf16.msra.mxu0 %v5510_v7 }
  0xb1   :  { %v5519_v9 = vcombine.high %v488_v4, %v492_v5  ;;  %v240_v10 = vld [vmem:[#allocation2 + $0x400] sm:$0xff]  ;;  %3296 = vmatprep.subr.bf16.mxu1 %v5263_v8  ;;  %v5518_v15 = vcombine.low %v488_v4, %v492_v5 }
  0xb2   :  { %v244_v11 = vld [vmem:[#allocation2 + $0x420] sm:$0xff]  ;;  %3297 = vmatpush1.bf16.msra.mxu1 %v5262_v14 }
  0xb3   :  { %v496_v12 = vld [vmem:[#allocation2 + $0xc00] sm:$0xff]  ;;  %v5271_v16 = vcombine.high %v240_v10, %v244_v11  ;;  %3382 = vmatprep.subr.bf16.mxu0 %v5519_v9  ;;  %v5270_v25 = vcombine.low %v240_v10, %v244_v11 }
  0xb4   :  { %v500_v13 = vld [vmem:[#allocation2 + $0xc20] sm:$0xff]  ;;  %3383 = vmatpush1.bf16.msra.mxu0 %v5518_v15 }
  0xb5   :  { %v5527_v17 = vcombine.high %v496_v12, %v500_v13  ;;  %v248_v18 = vld [vmem:[#allocation2 + $0x440] sm:$0xff]  ;;  %3309 = vmatprep.subr.bf16.mxu1 %v5271_v16  ;;  %v5526_v27 = vcombine.low %v496_v12, %v500_v13  ;;  %3299 = vmatmul.mubr.bf16.vlgmr.msra.gmra.mrb[0].mxu1 %v6447_v21 }
  0xb6   :  { %v252_v19 = vld [vmem:[#allocation2 + $0x460] sm:$0xff]  ;;  %3310 = vmatpush1.bf16.msra.mxu1 %v5270_v25  ;;  %3341 = vmatprep.mubr.bf16.mxu1 %v6475_v59 }
  0xb7   :  { %v504_v20 = vld [vmem:[#allocation2 + $0xc40] sm:$0xff]  ;;  %v5279_v28 = vcombine.high %v248_v18, %v252_v19  ;;  %3395 = vmatprep.subr.bf16.mxu0 %v5527_v17  ;;  %3385 = vmatmul.mubr.bf16.vlgmr.msra.gmra.mrb[0].mxu0 %v6461_v26  ;;  %v5278_v34 = vcombine.low %v248_v18, %v252_v19 }
  0xb8   :  { %v508_v22 = vld [vmem:[#allocation2 + $0xc60] sm:$0xff]  ;;  %3396 = vmatpush1.bf16.msra.mxu0 %v5526_v27  ;;  %3427 = vmatprep.mubr.bf16.mxu0 %v6480_v33 }
  0xb9   :  { %v5535_v29 = vcombine.high %v504_v20, %v508_v22  ;;  %v256_v30 = vld [vmem:[#allocation2 + $0x480] sm:$0xff]  ;;  %3311 = vmatprep.subr.bf16.mxu1 %v5279_v28  ;;  %v5534_v35 = vcombine.low %v504_v20, %v508_v22 }
  0xba   :  { %v260_v31 = vld [vmem:[#allocation2 + $0x4a0] sm:$0xff]  ;;  %3312 = vmatpush1.bf16.msra.mxu1 %v5278_v34 }
  0xbb   :  { %v512_v62 = vld [vmem:[#allocation2 + $0xc80] sm:$0xff]  ;;  %v5287_v36 = vcombine.high %v256_v30, %v260_v31  ;;  %3397 = vmatprep.subr.bf16.mxu0 %v5535_v29  ;;  %v5286_v42 = vcombine.low %v256_v30, %v260_v31 }
  0xbc   :  { %v516_v32 = vld [vmem:[#allocation2 + $0xca0] sm:$0xff]  ;;  %3398 = vmatpush1.bf16.msra.mxu0 %v5534_v35 }
  0xbd   :  { %v264_v37 = vld [vmem:[#allocation2 + $0x4c0] sm:$0xff]  ;;  %v5543_v40 = vcombine.high %v512_v62, %v516_v32  ;;  %3313 = vmatprep.subr.bf16.mxu1 %v5287_v36  ;;  %v5542_v43 = vcombine.low %v512_v62, %v516_v32 }
  0xbe   :  { %v268_v38 = vld [vmem:[#allocation2 + $0x4e0] sm:$0xff]  ;;  %3314 = vmatpush1.bf16.msra.mxu1 %v5286_v42 }
  0xbf   :  { %v520_v39 = vld [vmem:[#allocation2 + $0xcc0] sm:$0xff]  ;;  %v5295_v44 = vcombine.high %v264_v37, %v268_v38  ;;  %3399 = vmatprep.subr.bf16.mxu0 %v5543_v40  ;;  %v5294_v50 = vcombine.low %v264_v37, %v268_v38 }
  0xc0   :  { %v524_v41 = vld [vmem:[#allocation2 + $0xce0] sm:$0xff]  ;;  %3400 = vmatpush1.bf16.msra.mxu0 %v5542_v43 }
  0xc1   :  { %v272_v45 = vld [vmem:[#allocation2 + $0x500] sm:$0xff]  ;;  %v5551_v48 = vcombine.high %v520_v39, %v524_v41  ;;  %3315 = vmatprep.subr.bf16.mxu1 %v5295_v44  ;;  %v5550_v51 = vcombine.low %v520_v39, %v524_v41 }
  0xc2   :  { %v276_v46 = vld [vmem:[#allocation2 + $0x520] sm:$0xff]  ;;  %3316 = vmatpush1.bf16.msra.mxu1 %v5294_v50 }
  0xc3   :  { %v528_v47 = vld [vmem:[#allocation2 + $0xd00] sm:$0xff]  ;;  %v5303_v52 = vcombine.high %v272_v45, %v276_v46  ;;  %3401 = vmatprep.subr.bf16.mxu0 %v5551_v48  ;;  %v5302_v63 = vcombine.low %v272_v45, %v276_v46 }
  0xc4   :  { %v532_v49 = vld [vmem:[#allocation2 + $0xd20] sm:$0xff]  ;;  %3402 = vmatpush1.bf16.msra.mxu0 %v5550_v51 }
  0xc5   :  { %v280_v55 = vld [vmem:[#allocation2 + $0x540] sm:$0xff]  ;;  %v5559_v60 = vcombine.high %v528_v47, %v532_v49  ;;  %3317 = vmatprep.subr.bf16.mxu1 %v5303_v52  ;;  %v5558_v1 = vcombine.low %v528_v47, %v532_v49 }
  0xc6   :  { %v284_v56 = vld [vmem:[#allocation2 + $0x560] sm:$0xff]  ;;  %3318 = vmatpush1.bf16.msra.mxu1 %v5302_v63 }
  0xc7   :  { %v536_v57 = vld [vmem:[#allocation2 + $0xd40] sm:$0xff]  ;;  %v5311_v2 = vcombine.high %v280_v55, %v284_v56  ;;  %3403 = vmatprep.subr.bf16.mxu0 %v5559_v60  ;;  %v5310_v8 = vcombine.low %v280_v55, %v284_v56 }
  0xc8   :  { %v540_v61 = vld [vmem:[#allocation2 + $0xd60] sm:$0xff]  ;;  %3404 = vmatpush1.bf16.msra.mxu0 %v5558_v1 }
  0xc9   :  { %v288_v3 = vld [vmem:[#allocation2 + $0x580] sm:$0xff]  ;;  %v5567_v6 = vcombine.high %v536_v57, %v540_v61  ;;  %3319 = vmatprep.subr.bf16.mxu1 %v5311_v2  ;;  %v5566_v9 = vcombine.low %v536_v57, %v540_v61 }
  0xca   :  { %v292_v4 = vld [vmem:[#allocation2 + $0x5a0] sm:$0xff]  ;;  %3320 = vmatpush1.bf16.msra.mxu1 %v5310_v8 }
  0xcb   :  { %v544_v5 = vld [vmem:[#allocation2 + $0xd80] sm:$0xff]  ;;  %v5319_v10 = vcombine.high %v288_v3, %v292_v4  ;;  %3405 = vmatprep.subr.bf16.mxu0 %v5567_v6  ;;  %v5318_v16 = vcombine.low %v288_v3, %v292_v4 }
  0xcc   :  { %v548_v7 = vld [vmem:[#allocation2 + $0xda0] sm:$0xff]  ;;  %3406 = vmatpush1.bf16.msra.mxu0 %v5566_v9 }
  0xcd   :  { %v296_v11 = vld [vmem:[#allocation2 + $0x5c0] sm:$0xff]  ;;  %v5575_v14 = vcombine.high %v544_v5, %v548_v7  ;;  %3321 = vmatprep.subr.bf16.mxu1 %v5319_v10  ;;  %v5574_v17 = vcombine.low %v544_v5, %v548_v7 }
  0xce   :  { %v300_v12 = vld [vmem:[#allocation2 + $0x5e0] sm:$0xff]  ;;  %3322 = vmatpush1.bf16.msra.mxu1 %v5318_v16 }
  0xcf   :  { %v552_v13 = vld [vmem:[#allocation2 + $0xdc0] sm:$0xff]  ;;  %v5327_v18 = vcombine.high %v296_v11, %v300_v12  ;;  %3407 = vmatprep.subr.bf16.mxu0 %v5575_v14  ;;  %v5326_v28 = vcombine.low %v296_v11, %v300_v12 }
  0xd0   :  { %v556_v15 = vld [vmem:[#allocation2 + $0xde0] sm:$0xff]  ;;  %3408 = vmatpush1.bf16.msra.mxu0 %v5574_v17 }
  0xd1   :  { %v304_v19 = vld [vmem:[#allocation2 + $0x600] sm:$0xff]  ;;  %v5583_v25 = vcombine.high %v552_v13, %v556_v15  ;;  %3323 = vmatprep.subr.bf16.mxu1 %v5327_v18  ;;  %v5582_v29 = vcombine.low %v552_v13, %v556_v15 }
  0xd2   :  { %v308_v20 = vld [vmem:[#allocation2 + $0x620] sm:$0xff]  ;;  %3324 = vmatpush1.bf16.msra.mxu1 %v5326_v28 }
  0xd3   :  { %v560_v22 = vld [vmem:[#allocation2 + $0xe00] sm:$0xff]  ;;  %v5335_v30 = vcombine.high %v304_v19, %v308_v20  ;;  %3409 = vmatprep.subr.bf16.mxu0 %v5583_v25  ;;  %v5334_v36 = vcombine.low %v304_v19, %v308_v20 }
  0xd4   :  { %v564_v27 = vld [vmem:[#allocation2 + $0xe20] sm:$0xff]  ;;  %3410 = vmatpush1.bf16.msra.mxu0 %v5582_v29 }
  0xd5   :  { %v312_v31 = vld [vmem:[#allocation2 + $0x640] sm:$0xff]  ;;  %v5591_v34 = vcombine.high %v560_v22, %v564_v27  ;;  %3325 = vmatprep.subr.bf16.mxu1 %v5335_v30  ;;  %v5590_v37 = vcombine.low %v560_v22, %v564_v27 }
  0xd6   :  { %v316_v62 = vld [vmem:[#allocation2 + $0x660] sm:$0xff]  ;;  %3326 = vmatpush1.bf16.msra.mxu1 %v5334_v36 }
  0xd7   :  { %v568_v32 = vld [vmem:[#allocation2 + $0xe40] sm:$0xff]  ;;  %v5343_v38 = vcombine.high %v312_v31, %v316_v62  ;;  %3411 = vmatprep.subr.bf16.mxu0 %v5591_v34  ;;  %v5342_v44 = vcombine.low %v312_v31, %v316_v62  ;;  %v117_v34 = vld [vmem:[#allocation2 + $0x28] sm:$0xff] }
  0xd8   :  { %v572_v35 = vld [vmem:[#allocation2 + $0xe60] sm:$0xff]  ;;  %3412 = vmatpush1.bf16.msra.mxu0 %v5590_v37  ;;  %v118_v37 = vld [vmem:[#allocation2 + $0x30] sm:$0xff] }
  0xd9   :  { %v320_v39 = vld [vmem:[#allocation2 + $0x680] sm:$0xff]  ;;  %v5599_v42 = vcombine.high %v568_v32, %v572_v35  ;;  %3327 = vmatprep.subr.bf16.mxu1 %v5343_v38  ;;  %v5598_v45 = vcombine.low %v568_v32, %v572_v35  ;;  %v113_v32 = vld [vmem:[#allocation2 + $0x8] sm:$0xff]  ;;  %v114_v35 = vld [vmem:[#allocation2 + $0x10] sm:$0xff] }
  0xda   :  { %v324_v40 = vld [vmem:[#allocation2 + $0x6a0] sm:$0xff]  ;;  %3328 = vmatpush1.bf16.msra.mxu1 %v5342_v44  ;;  %v5147_v44 = vcombine.high %v114_v35, %v118_v37 }
  0xdb   :  { %v576_v41 = vld [vmem:[#allocation2 + $0xe80] sm:$0xff]  ;;  %v5351_v46 = vcombine.high %v320_v39, %v324_v40  ;;  %3413 = vmatprep.subr.bf16.mxu0 %v5599_v42  ;;  %v5350_v52 = vcombine.low %v320_v39, %v324_v40  ;;  %v5145_v40 = vcombine.high %v113_v32, %v117_v34  ;;  %v125_v42 = vld [vmem:[#allocation2 + $0x68] sm:$0xff] }
  0xdc   :  { %v580_v43 = vld [vmem:[#allocation2 + $0xea0] sm:$0xff]  ;;  %3414 = vmatpush1.bf16.msra.mxu0 %v5598_v45  ;;  %v126_v45 = vld [vmem:[#allocation2 + $0x70] sm:$0xff] }
  0xdd   :  { %v328_v47 = vld [vmem:[#allocation2 + $0x6c0] sm:$0xff]  ;;  %v5607_v50 = vcombine.high %v576_v41, %v580_v43  ;;  %3329 = vmatprep.subr.bf16.mxu1 %v5351_v46  ;;  %v5606_v55 = vcombine.low %v576_v41, %v580_v43  ;;  %v121_v41 = vld [vmem:[#allocation2 + $0x48] sm:$0xff]  ;;  %v122_v43 = vld [vmem:[#allocation2 + $0x50] sm:$0xff]  ;;  %v6487_v46 = vcombine.low %v6452_v23, %v6457_v24 }
  0xde   :  { %v332_v48 = vld [vmem:[#allocation2 + $0x6e0] sm:$0xff]  ;;  %3330 = vmatpush1.bf16.msra.mxu1 %v5350_v52  ;;  %v133_v52 = vld [vmem:[#allocation2 + $0xa8] sm:$0xff]  ;;  %v5152_v23 = vcombine.low %v121_v41, %v125_v42  ;;  %v5154_v24 = vcombine.low %v122_v43, %v126_v45 }
  0xdf   :  { %v584_v49 = vld [vmem:[#allocation2 + $0xec0] sm:$0xff]  ;;  %v5359_v56 = vcombine.high %v328_v47, %v332_v48  ;;  %3415 = vmatprep.subr.bf16.mxu0 %v5607_v50  ;;  %v5358_v2 = vcombine.low %v328_v47, %v332_v48  ;;  %v5144_v47 = vcombine.low %v113_v32, %v117_v34  ;;  %v6491_v48 = vcombine.low %v6466_v53, %v6471_v54  ;;  %v137_v54 = vld [vmem:[#allocation2 + $0xc8] sm:$0xff] }
  0xe0   :  { %v588_v51 = vld [vmem:[#allocation2 + $0xee0] sm:$0xff]  ;;  %3416 = vmatpush1.bf16.msra.mxu0 %v5606_v55  ;;  %v5153_v50 = vcombine.high %v121_v41, %v125_v42  ;;  %v130_v55 = vld [vmem:[#allocation2 + $0x90] sm:$0xff]  ;;  %v169_v34 = vld [vmem:[#allocation2 + $0x1c8] sm:$0xff] }
  0xe1   :  { %v336_v57 = vld [vmem:[#allocation2 + $0x700] sm:$0xff]  ;;  %v5615_v63 = vcombine.high %v584_v49, %v588_v51  ;;  %3331 = vmatprep.subr.bf16.mxu1 %v5359_v56  ;;  %v5614_v3 = vcombine.low %v584_v49, %v588_v51  ;;  %v5146_v49 = vcombine.low %v114_v35, %v118_v37  ;;  %v129_v51 = vld [vmem:[#allocation2 + $0x88] sm:$0xff]  ;;  %v5155_v56 = vcombine.high %v122_v43, %v126_v45  ;;  %v174_v37 = vld [vmem:[#allocation2 + $0x1f0] sm:$0xff] }
  0xe2   :  { %v340_v60 = vld [vmem:[#allocation2 + $0x720] sm:$0xff]  ;;  %3332 = vmatpush1.bf16.msra.mxu1 %v5358_v2  ;;  %v5161_v53 = vcombine.high %v129_v51, %v133_v52  ;;  %v5160_v2 = vcombine.low %v129_v51, %v133_v52  ;;  %v173_v35 = vld [vmem:[#allocation2 + $0x1e8] sm:$0xff]  ;;  %v182_v45 = vld [vmem:[#allocation2 + $0x230] sm:$0xff] }
  0xe3   :  { %v592_v61 = vld [vmem:[#allocation2 + $0xf00] sm:$0xff]  ;;  %v5367_v4 = vcombine.high %v336_v57, %v340_v60  ;;  %3417 = vmatprep.subr.bf16.mxu0 %v5615_v63  ;;  %v5366_v10 = vcombine.low %v336_v57, %v340_v60  ;;  %v134_v57 = vld [vmem:[#allocation2 + $0xb0] sm:$0xff]  ;;  %v141_v60 = vld [vmem:[#allocation2 + $0xe8] sm:$0xff] }
  0xe4   :  { %v596_v1 = vld [vmem:[#allocation2 + $0xf20] sm:$0xff]  ;;  %3418 = vmatpush1.bf16.msra.mxu0 %v5614_v3  ;;  %v5163_v63 = vcombine.high %v130_v55, %v134_v57  ;;  %v5162_v3 = vcombine.low %v130_v55, %v134_v57  ;;  %v177_v42 = vld [vmem:[#allocation2 + $0x208] sm:$0xff]  ;;  %v190_v57 = vld [vmem:[#allocation2 + $0x270] sm:$0xff] }
  0xe5   :  { %v344_v5 = vld [vmem:[#allocation2 + $0x740] sm:$0xff]  ;;  %v5623_v8 = vcombine.high %v592_v61, %v596_v1  ;;  %3333 = vmatprep.subr.bf16.mxu1 %v5367_v4  ;;  %v5622_v11 = vcombine.low %v592_v61, %v596_v1  ;;  %v138_v61 = vld [vmem:[#allocation2 + $0xd0] sm:$0xff]  ;;  %v5169_v4 = vcombine.high %v137_v54, %v141_v60  ;;  %v181_v43 = vld [vmem:[#allocation2 + $0x228] sm:$0xff] }
  0xe6   :  { %v348_v6 = vld [vmem:[#allocation2 + $0x760] sm:$0xff]  ;;  %3334 = vmatpush1.bf16.msra.mxu1 %v5366_v10  ;;  %v142_v1 = vld [vmem:[#allocation2 + $0xf0] sm:$0xff]  ;;  %v5168_v10 = vcombine.low %v137_v54, %v141_v60  ;;  %v185_v52 = vld [vmem:[#allocation2 + $0x248] sm:$0xff] }
  0xe7   :  { %v600_v7 = vld [vmem:[#allocation2 + $0xf40] sm:$0xff]  ;;  %v5375_v12 = vcombine.high %v344_v5, %v348_v6  ;;  %3419 = vmatprep.subr.bf16.mxu0 %v5623_v8  ;;  %v5374_v18 = vcombine.low %v344_v5, %v348_v6  ;;  %v145_v5 = vld [vmem:[#allocation2 + $0x108] sm:$0xff]  ;;  %v5171_v8 = vcombine.high %v138_v61, %v142_v1 }
  0xe8   :  { %v604_v9 = vld [vmem:[#allocation2 + $0xf60] sm:$0xff]  ;;  %3420 = vmatpush1.bf16.msra.mxu0 %v5622_v11  ;;  %v149_v6 = vld [vmem:[#allocation2 + $0x128] sm:$0xff]  ;;  %v5170_v11 = vcombine.low %v138_v61, %v142_v1  ;;  %v198_v1 = vld [vmem:[#allocation2 + $0x2b0] sm:$0xff] }
  0xe9   :  { %v352_v13 = vld [vmem:[#allocation2 + $0x780] sm:$0xff]  ;;  %v5631_v16 = vcombine.high %v600_v7, %v604_v9  ;;  %3335 = vmatprep.subr.bf16.mxu1 %v5375_v12  ;;  %v5630_v19 = vcombine.low %v600_v7, %v604_v9  ;;  %v146_v7 = vld [vmem:[#allocation2 + $0x110] sm:$0xff]  ;;  %v5177_v12 = vcombine.high %v145_v5, %v149_v6  ;;  %v189_v55 = vld [vmem:[#allocation2 + $0x268] sm:$0xff] }
  0xea   :  { %v356_v14 = vld [vmem:[#allocation2 + $0x7a0] sm:$0xff]  ;;  %3336 = vmatpush1.bf16.msra.mxu1 %v5374_v18  ;;  %v150_v9 = vld [vmem:[#allocation2 + $0x130] sm:$0xff]  ;;  %v5176_v18 = vcombine.low %v145_v5, %v149_v6  ;;  %v193_v60 = vld [vmem:[#allocation2 + $0x288] sm:$0xff] }
  0xeb   :  { %v608_v15 = vld [vmem:[#allocation2 + $0xf80] sm:$0xff]  ;;  %v5383_v20 = vcombine.high %v352_v13, %v356_v14  ;;  %3421 = vmatprep.subr.bf16.mxu0 %v5631_v16  ;;  %v5382_v30 = vcombine.low %v352_v13, %v356_v14  ;;  %v153_v13 = vld [vmem:[#allocation2 + $0x148] sm:$0xff]  ;;  %v5179_v16 = vcombine.high %v146_v7, %v150_v9 }
  0xec   :  { %v612_v17 = vld [vmem:[#allocation2 + $0xfa0] sm:$0xff]  ;;  %3422 = vmatpush1.bf16.msra.mxu0 %v5630_v19  ;;  %v157_v14 = vld [vmem:[#allocation2 + $0x168] sm:$0xff]  ;;  %v5178_v19 = vcombine.low %v146_v7, %v150_v9  ;;  %v206_v9 = vld [vmem:[#allocation2 + $0x2f0] sm:$0xff] }
  0xed   :  { %v360_v22 = vld [vmem:[#allocation2 + $0x7c0] sm:$0xff]  ;;  %v5639_v28 = vcombine.high %v608_v15, %v612_v17  ;;  %3337 = vmatprep.subr.bf16.mxu1 %v5383_v20  ;;  %v5638_v31 = vcombine.low %v608_v15, %v612_v17  ;;  %v154_v15 = vld [vmem:[#allocation2 + $0x150] sm:$0xff]  ;;  %v5185_v20 = vcombine.high %v153_v13, %v157_v14  ;;  %v197_v61 = vld [vmem:[#allocation2 + $0x2a8] sm:$0xff] }
  0xee   :  { %v364_v25 = vld [vmem:[#allocation2 + $0x7e0] sm:$0xff]  ;;  %3338 = vmatpush1.bf16.msra.mxu1 %v5382_v30  ;;  %v158_v17 = vld [vmem:[#allocation2 + $0x170] sm:$0xff]  ;;  %v5184_v30 = vcombine.low %v153_v13, %v157_v14  ;;  %v201_v6 = vld [vmem:[#allocation2 + $0x2c8] sm:$0xff] }
  0xef   :  { %v616_v27 = vld [vmem:[#allocation2 + $0xfc0] sm:$0xff]  ;;  %v5391_v62 = vcombine.high %v360_v22, %v364_v25  ;;  %3423 = vmatprep.subr.bf16.mxu0 %v5639_v28  ;;  %v5390_v38 = vcombine.low %v360_v22, %v364_v25  ;;  %v161_v22 = vld [vmem:[#allocation2 + $0x188] sm:$0xff]  ;;  %v5187_v28 = vcombine.high %v154_v15, %v158_v17 }
  0xf0   :  { %v620_v29 = vld [vmem:[#allocation2 + $0xfe0] sm:$0xff]  ;;  %3424 = vmatpush1.bf16.msra.mxu0 %v5638_v31  ;;  %v165_v25 = vld [vmem:[#allocation2 + $0x1a8] sm:$0xff]  ;;  %v5186_v31 = vcombine.low %v154_v15, %v158_v17  ;;  %v214_v17 = vld [vmem:[#allocation2 + $0x330] sm:$0xff] }
  0xf1   :  { %v5647_v36 = vcombine.high %v616_v27, %v620_v29  ;;  %3339 = vmatprep.subr.bf16.mxu1 %v5391_v62  ;;  %v5646_v39 = vcombine.low %v616_v27, %v620_v29  ;;  %v162_v27 = vld [vmem:[#allocation2 + $0x190] sm:$0xff]  ;;  %v5193_v62 = vcombine.high %v161_v22, %v165_v25  ;;  %v205_v7 = vld [vmem:[#allocation2 + $0x2e8] sm:$0xff] }
  0xf2   :  { %3340 = vmatpush1.bf16.msra.mxu1 %v5390_v38  ;;  %v166_v29 = vld [vmem:[#allocation2 + $0x1b0] sm:$0xff]  ;;  %v5192_v38 = vcombine.low %v161_v22, %v165_v25  ;;  %v209_v14 = vld [vmem:[#allocation2 + $0x308] sm:$0xff] }
  0xf3   :  { %3425 = vmatprep.subr.bf16.mxu0 %v5647_v36  ;;  %3438 = vmatprep.subr.bf16.mxu1 %v5145_v40  ;;  %v5195_v32 = vcombine.high %v162_v27, %v166_v29  ;;  %v170_v36 = vld [vmem:[#allocation2 + $0x1d0] sm:$0xff]  ;;  %v5201_v40 = vcombine.high %v169_v34, %v173_v35  ;;  %v213_v15 = vld [vmem:[#allocation2 + $0x328] sm:$0xff] }
  0xf4   :  { %3426 = vmatpush1.bf16.msra.mxu0 %v5646_v39  ;;  %v5194_v39 = vcombine.low %v162_v27, %v166_v29  ;;  %v5203_v41 = vcombine.high %v170_v36, %v174_v37  ;;  %v217_v25 = vld [vmem:[#allocation2 + $0x348] sm:$0xff]  ;;  %v222_v29 = vld [vmem:[#allocation2 + $0x370] sm:$0xff] }
  0xf5   :  { %3610 = vmatprep.subr.bf16.mxu0 %v5147_v44  ;;  %3342 = vmatmul.mubr.bf16.vlgmr.msra.gmra.mrb[0].mxu1 %v6487_v46  ;;  %v178_v44 = vld [vmem:[#allocation2 + $0x210] sm:$0xff]  ;;  %v221_v27 = vld [vmem:[#allocation2 + $0x368] sm:$0xff] }
  0xf6   :  { %3439 = vmatpush1.bf16.msra.mxu1 %v5144_v47  ;;  %3470 = vmatprep.mubr.bf16.mxu1 %v6427_v58  ;;  %v5200_v47 = vcombine.low %v169_v34, %v173_v35  ;;  %v5211_v51 = vcombine.high %v178_v44, %v182_v45  ;;  %v225_v34 = vld [vmem:[#allocation2 + $0x388] sm:$0xff] }
  0xf7   :  { %3428 = vmatmul.mubr.bf16.vlgmr.msra.gmra.mrb[0].mxu0 %v6491_v48  ;;  %3440 = vmatprep.subr.bf16.mxu1 %v5153_v50  ;;  %v5209_v50 = vcombine.high %v177_v42, %v181_v43  ;;  %v229_v35 = vld [vmem:[#allocation2 + $0x3a8] sm:$0xff] }
  0xf8   :  { %3611 = vmatpush1.bf16.msra.mxu0 %v5146_v49  ;;  %3642 = vmatprep.mubr.bf16.mxu0 %v6427_v58  ;;  %v5202_v49 = vcombine.low %v170_v36, %v174_v37  ;;  %v226_v36 = vld [vmem:[#allocation2 + $0x390] sm:$0xff] }
  0xf9   :  { %3612 = vmatprep.subr.bf16.mxu0 %v5155_v56  ;;  %v186_v56 = vld [vmem:[#allocation2 + $0x250] sm:$0xff] }
  0xfa   :  { %3441 = vmatpush1.bf16.msra.mxu1 %v5152_v23  ;;  %v5208_v23 = vcombine.low %v177_v42, %v181_v43  ;;  %v5219_v54 = vcombine.high %v186_v56, %v190_v57  ;;  %v230_v37 = vld [vmem:[#allocation2 + $0x3b0] sm:$0xff]  ;;  %v233_v42 = vld [vmem:[#allocation2 + $0x3c8] sm:$0xff] }
  0xfb   :  { %3442 = vmatprep.subr.bf16.mxu1 %v5161_v53  ;;  %v5217_v53 = vcombine.high %v185_v52, %v189_v55  ;;  %v237_v43 = vld [vmem:[#allocation2 + $0x3e8] sm:$0xff] }
  0xfc   :  { %3613 = vmatpush1.bf16.msra.mxu0 %v5154_v24  ;;  %v5210_v24 = vcombine.low %v178_v44, %v182_v45  ;;  %v234_v44 = vld [vmem:[#allocation2 + $0x3d0] sm:$0xff] }
  0xfd   :  { %3614 = vmatprep.subr.bf16.mxu0 %v5163_v63  ;;  %v194_v63 = vld [vmem:[#allocation2 + $0x290] sm:$0xff] }
  0xfe   :  { %3443 = vmatpush1.bf16.msra.mxu1 %v5160_v2  ;;  %v5216_v2 = vcombine.low %v185_v52, %v189_v55  ;;  %v5227_v5 = vcombine.high %v194_v63, %v198_v1  ;;  %v238_v45 = vld [vmem:[#allocation2 + $0x3f0] sm:$0xff]  ;;  %v241_v52 = vld [vmem:[#allocation2 + $0x408] sm:$0xff] }
  0xff   :  { %3444 = vmatprep.subr.bf16.mxu1 %v5169_v4  ;;  %v5225_v4 = vcombine.high %v193_v60, %v197_v61  ;;  %v245_v55 = vld [vmem:[#allocation2 + $0x428] sm:$0xff] }
 0x100   :  { %3615 = vmatpush1.bf16.msra.mxu0 %v5162_v3  ;;  %v5218_v3 = vcombine.low %v186_v56, %v190_v57  ;;  %v242_v56 = vld [vmem:[#allocation2 + $0x410] sm:$0xff] }
 0x101   :  { %3616 = vmatprep.subr.bf16.mxu0 %v5171_v8  ;;  %v202_v8 = vld [vmem:[#allocation2 + $0x2d0] sm:$0xff] }
 0x102   :  { %3445 = vmatpush1.bf16.msra.mxu1 %v5168_v10  ;;  %v5224_v10 = vcombine.low %v193_v60, %v197_v61  ;;  %v5235_v13 = vcombine.high %v202_v8, %v206_v9  ;;  %v246_v57 = vld [vmem:[#allocation2 + $0x430] sm:$0xff]  ;;  %v249_v60 = vld [vmem:[#allocation2 + $0x448] sm:$0xff] }
 0x103   :  { %3446 = vmatprep.subr.bf16.mxu1 %v5177_v12  ;;  %v5233_v12 = vcombine.high %v201_v6, %v205_v7  ;;  %v253_v61 = vld [vmem:[#allocation2 + $0x468] sm:$0xff] }
 0x104   :  { %3617 = vmatpush1.bf16.msra.mxu0 %v5170_v11  ;;  %v5226_v11 = vcombine.low %v194_v63, %v198_v1  ;;  %v250_v63 = vld [vmem:[#allocation2 + $0x450] sm:$0xff] }
 0x105   :  { %3618 = vmatprep.subr.bf16.mxu0 %v5179_v16  ;;  %v210_v16 = vld [vmem:[#allocation2 + $0x310] sm:$0xff] }
 0x106   :  { %3447 = vmatpush1.bf16.msra.mxu1 %v5176_v18  ;;  %v5232_v18 = vcombine.low %v201_v6, %v205_v7  ;;  %v5243_v22 = vcombine.high %v210_v16, %v214_v17  ;;  %v254_v1 = vld [vmem:[#allocation2 + $0x470] sm:$0xff]  ;;  %v257_v6 = vld [vmem:[#allocation2 + $0x488] sm:$0xff] }
 0x107   :  { %3448 = vmatprep.subr.bf16.mxu1 %v5185_v20  ;;  %v5241_v20 = vcombine.high %v209_v14, %v213_v15  ;;  %v261_v7 = vld [vmem:[#allocation2 + $0x4a8] sm:$0xff] }
 0x108   :  { %3619 = vmatpush1.bf16.msra.mxu0 %v5178_v19  ;;  %v5234_v19 = vcombine.low %v202_v8, %v206_v9  ;;  %v258_v8 = vld [vmem:[#allocation2 + $0x490] sm:$0xff] }
 0x109   :  { %3620 = vmatprep.subr.bf16.mxu0 %v5187_v28  ;;  %v218_v28 = vld [vmem:[#allocation2 + $0x350] sm:$0xff] }
 0x10a   :  { %3449 = vmatpush1.bf16.msra.mxu1 %v5184_v30  ;;  %v5240_v30 = vcombine.low %v209_v14, %v213_v15  ;;  %v262_v9 = vld [vmem:[#allocation2 + $0x4b0] sm:$0xff]  ;;  %v265_v14 = vld [vmem:[#allocation2 + $0x4c8] sm:$0xff] }
 0x10b   :  { %3450 = vmatprep.subr.bf16.mxu1 %v5193_v62  ;;  %v5249_v62 = vcombine.high %v217_v25, %v221_v27  ;;  %v269_v15 = vld [vmem:[#allocation2 + $0x4e8] sm:$0xff] }
 0x10c   :  { %3621 = vmatpush1.bf16.msra.mxu0 %v5186_v31  ;;  %v5242_v31 = vcombine.low %v210_v16, %v214_v17  ;;  %v266_v16 = vld [vmem:[#allocation2 + $0x4d0] sm:$0xff] }
 0x10d   :  { %3622 = vmatprep.subr.bf16.mxu0 %v5195_v32  ;;  %v5251_v32 = vcombine.high %v218_v28, %v222_v29  ;;  %v270_v17 = vld [vmem:[#allocation2 + $0x4f0] sm:$0xff] }
 0x10e   :  { %3451 = vmatpush1.bf16.msra.mxu1 %v5192_v38  ;;  %v5248_v38 = vcombine.low %v217_v25, %v221_v27  ;;  %v273_v25 = vld [vmem:[#allocation2 + $0x508] sm:$0xff] }
 0x10f   :  { %3452 = vmatprep.subr.bf16.mxu1 %v5201_v40  ;;  %v5257_v40 = vcombine.high %v225_v34, %v229_v35  ;;  %v277_v27 = vld [vmem:[#allocation2 + $0x528] sm:$0xff] }
 0x110   :  { %3623 = vmatpush1.bf16.msra.mxu0 %v5194_v39  ;;  %v5250_v39 = vcombine.low %v218_v28, %v222_v29  ;;  %v274_v28 = vld [vmem:[#allocation2 + $0x510] sm:$0xff] }
 0x111   :  { %3624 = vmatprep.subr.bf16.mxu0 %v5203_v41  ;;  %v5259_v41 = vcombine.high %v226_v36, %v230_v37  ;;  %v278_v29 = vld [vmem:[#allocation2 + $0x530] sm:$0xff] }
 0x112   :  { %3453 = vmatpush1.bf16.msra.mxu1 %v5200_v47  ;;  %v5256_v47 = vcombine.low %v225_v34, %v229_v35  ;;  %v281_v34 = vld [vmem:[#allocation2 + $0x548] sm:$0xff] }
 0x113   :  { %3454 = vmatprep.subr.bf16.mxu1 %v5209_v50  ;;  %v5265_v50 = vcombine.high %v233_v42, %v237_v43  ;;  %v285_v35 = vld [vmem:[#allocation2 + $0x568] sm:$0xff] }
 0x114   :  { %3625 = vmatpush1.bf16.msra.mxu0 %v5202_v49  ;;  %v5258_v49 = vcombine.low %v226_v36, %v230_v37  ;;  %v282_v36 = vld [vmem:[#allocation2 + $0x550] sm:$0xff] }
 0x115   :  { %3626 = vmatprep.subr.bf16.mxu0 %v5211_v51  ;;  %v5267_v51 = vcombine.high %v234_v44, %v238_v45  ;;  %v286_v37 = vld [vmem:[#allocation2 + $0x570] sm:$0xff] }
 0x116   :  { %3455 = vmatpush1.bf16.msra.mxu1 %v5208_v23  ;;  %v5264_v23 = vcombine.low %v233_v42, %v237_v43  ;;  %v289_v42 = vld [vmem:[#allocation2 + $0x588] sm:$0xff] }
 0x117   :  { %3456 = vmatprep.subr.bf16.mxu1 %v5217_v53  ;;  %v5273_v53 = vcombine.high %v241_v52, %v245_v55  ;;  %v293_v43 = vld [vmem:[#allocation2 + $0x5a8] sm:$0xff] }
 0x118   :  { %3627 = vmatpush1.bf16.msra.mxu0 %v5210_v24  ;;  %v5266_v24 = vcombine.low %v234_v44, %v238_v45  ;;  %v290_v44 = vld [vmem:[#allocation2 + $0x590] sm:$0xff] }
 0x119   :  { %3628 = vmatprep.subr.bf16.mxu0 %v5219_v54  ;;  %v5275_v54 = vcombine.high %v242_v56, %v246_v57  ;;  %v294_v45 = vld [vmem:[#allocation2 + $0x5b0] sm:$0xff] }
 0x11a   :  { %3457 = vmatpush1.bf16.msra.mxu1 %v5216_v2  ;;  %v5272_v2 = vcombine.low %v241_v52, %v245_v55  ;;  %v297_v52 = vld [vmem:[#allocation2 + $0x5c8] sm:$0xff] }
 0x11b   :  { %3458 = vmatprep.subr.bf16.mxu1 %v5225_v4  ;;  %v5281_v4 = vcombine.high %v249_v60, %v253_v61  ;;  %v301_v55 = vld [vmem:[#allocation2 + $0x5e8] sm:$0xff] }
 0x11c   :  { %3629 = vmatpush1.bf16.msra.mxu0 %v5218_v3  ;;  %v5274_v3 = vcombine.low %v242_v56, %v246_v57  ;;  %v298_v56 = vld [vmem:[#allocation2 + $0x5d0] sm:$0xff] }
 0x11d   :  { %3630 = vmatprep.subr.bf16.mxu0 %v5227_v5  ;;  %v5283_v5 = vcombine.high %v250_v63, %v254_v1  ;;  %v302_v57 = vld [vmem:[#allocation2 + $0x5f0] sm:$0xff] }
 0x11e   :  { %3459 = vmatpush1.bf16.msra.mxu1 %v5224_v10  ;;  %v5280_v10 = vcombine.low %v249_v60, %v253_v61  ;;  %v305_v60 = vld [vmem:[#allocation2 + $0x608] sm:$0xff] }
 0x11f   :  { %3460 = vmatprep.subr.bf16.mxu1 %v5233_v12  ;;  %v5289_v12 = vcombine.high %v257_v6, %v261_v7  ;;  %v309_v61 = vld [vmem:[#allocation2 + $0x628] sm:$0xff] }
 0x120   :  { %3631 = vmatpush1.bf16.msra.mxu0 %v5226_v11  ;;  %v5282_v11 = vcombine.low %v250_v63, %v254_v1  ;;  %v306_v63 = vld [vmem:[#allocation2 + $0x610] sm:$0xff] }
 0x121   :  { %3632 = vmatprep.subr.bf16.mxu0 %v5235_v13  ;;  %v5291_v13 = vcombine.high %v258_v8, %v262_v9  ;;  %v310_v1 = vld [vmem:[#allocation2 + $0x630] sm:$0xff] }
 0x122   :  { %3461 = vmatpush1.bf16.msra.mxu1 %v5232_v18  ;;  %v5288_v18 = vcombine.low %v257_v6, %v261_v7  ;;  %v313_v6 = vld [vmem:[#allocation2 + $0x648] sm:$0xff] }
 0x123   :  { %3462 = vmatprep.subr.bf16.mxu1 %v5241_v20  ;;  %v5297_v20 = vcombine.high %v265_v14, %v269_v15  ;;  %v317_v7 = vld [vmem:[#allocation2 + $0x668] sm:$0xff] }
 0x124   :  { %3633 = vmatpush1.bf16.msra.mxu0 %v5234_v19  ;;  %v5290_v19 = vcombine.low %v258_v8, %v262_v9  ;;  %v314_v8 = vld [vmem:[#allocation2 + $0x650] sm:$0xff] }
 0x125   :  { %3634 = vmatprep.subr.bf16.mxu0 %v5243_v22  ;;  %v5299_v22 = vcombine.high %v266_v16, %v270_v17  ;;  %v318_v9 = vld [vmem:[#allocation2 + $0x670] sm:$0xff] }
 0x126   :  { %3463 = vmatpush1.bf16.msra.mxu1 %v5240_v30  ;;  %v5296_v30 = vcombine.low %v265_v14, %v269_v15  ;;  %v321_v14 = vld [vmem:[#allocation2 + $0x688] sm:$0xff] }
 0x127   :  { %3464 = vmatprep.subr.bf16.mxu1 %v5249_v62  ;;  %v5305_v62 = vcombine.high %v273_v25, %v277_v27  ;;  %v325_v15 = vld [vmem:[#allocation2 + $0x6a8] sm:$0xff] }
 0x128   :  { %3635 = vmatpush1.bf16.msra.mxu0 %v5242_v31  ;;  %v5298_v31 = vcombine.low %v266_v16, %v270_v17  ;;  %v322_v16 = vld [vmem:[#allocation2 + $0x690] sm:$0xff] }
 0x129   :  { %3636 = vmatprep.subr.bf16.mxu0 %v5251_v32  ;;  %v5307_v32 = vcombine.high %v274_v28, %v278_v29  ;;  %v326_v17 = vld [vmem:[#allocation2 + $0x6b0] sm:$0xff] }
 0x12a   :  { %3465 = vmatpush1.bf16.msra.mxu1 %v5248_v38  ;;  %v5304_v38 = vcombine.low %v273_v25, %v277_v27  ;;  %v329_v25 = vld [vmem:[#allocation2 + $0x6c8] sm:$0xff] }
 0x12b   :  { %3466 = vmatprep.subr.bf16.mxu1 %v5257_v40  ;;  %v5313_v40 = vcombine.high %v281_v34, %v285_v35  ;;  %v333_v27 = vld [vmem:[#allocation2 + $0x6e8] sm:$0xff] }
 0x12c   :  { %3637 = vmatpush1.bf16.msra.mxu0 %v5250_v39  ;;  %v5306_v39 = vcombine.low %v274_v28, %v278_v29  ;;  %v330_v28 = vld [vmem:[#allocation2 + $0x6d0] sm:$0xff] }
 0x12d   :  { %3638 = vmatprep.subr.bf16.mxu0 %v5259_v41  ;;  %v5315_v41 = vcombine.high %v282_v36, %v286_v37  ;;  %v334_v29 = vld [vmem:[#allocation2 + $0x6f0] sm:$0xff] }
 0x12e   :  { %3467 = vmatpush1.bf16.msra.mxu1 %v5256_v47  ;;  %v5312_v47 = vcombine.low %v281_v34, %v285_v35  ;;  %v337_v34 = vld [vmem:[#allocation2 + $0x708] sm:$0xff] }
 0x12f   :  { %3468 = vmatprep.subr.bf16.mxu1 %v5265_v50  ;;  %v5321_v50 = vcombine.high %v289_v42, %v293_v43  ;;  %v341_v35 = vld [vmem:[#allocation2 + $0x728] sm:$0xff] }
 0x130   :  { %3639 = vmatpush1.bf16.msra.mxu0 %v5258_v49  ;;  %v5314_v49 = vcombine.low %v282_v36, %v286_v37  ;;  %v338_v36 = vld [vmem:[#allocation2 + $0x710] sm:$0xff] }
 0x131   :  { %3640 = vmatprep.subr.bf16.mxu0 %v5267_v51  ;;  %v5323_v51 = vcombine.high %v290_v44, %v294_v45  ;;  %v342_v37 = vld [vmem:[#allocation2 + $0x730] sm:$0xff] }
 0x132   :  { %3469 = vmatpush1.bf16.msra.mxu1 %v5264_v23  ;;  %v5320_v23 = vcombine.low %v289_v42, %v293_v43  ;;  %v345_v42 = vld [vmem:[#allocation2 + $0x748] sm:$0xff] }
 0x133   :  { %3481 = vmatprep.subr.bf16.mxu1 %v5273_v53  ;;  %v5329_v53 = vcombine.high %v297_v52, %v301_v55  ;;  %v349_v43 = vld [vmem:[#allocation2 + $0x768] sm:$0xff] }
 0x134   :  { %3641 = vmatpush1.bf16.msra.mxu0 %v5266_v24  ;;  %v5322_v24 = vcombine.low %v290_v44, %v294_v45  ;;  %v346_v44 = vld [vmem:[#allocation2 + $0x750] sm:$0xff] }
 0x135   :  { %3653 = vmatprep.subr.bf16.mxu0 %v5275_v54  ;;  %3471 = vmatmul.mubr.bf16.vlgmr.msra.gmra.mrb[4].mxu1 %v6447_v21  ;;  %v5331_v54 = vcombine.high %v298_v56, %v302_v57  ;;  %v350_v45 = vld [vmem:[#allocation2 + $0x770] sm:$0xff] }
 0x136   :  { %3482 = vmatpush1.bf16.msra.mxu1 %v5272_v2  ;;  %3513 = vmatprep.mubr.bf16.mxu1 %v6475_v59  ;;  %v5328_v2 = vcombine.low %v297_v52, %v301_v55  ;;  %v353_v52 = vld [vmem:[#allocation2 + $0x788] sm:$0xff] }
 0x137   :  { %3643 = vmatmul.mubr.bf16.vlgmr.msra.gmra.mrb[4].mxu0 %v6447_v21  ;;  %3483 = vmatprep.subr.bf16.mxu1 %v5281_v4  ;;  %v5337_v4 = vcombine.high %v305_v60, %v309_v61  ;;  %v357_v55 = vld [vmem:[#allocation2 + $0x7a8] sm:$0xff] }
 0x138   :  { %3654 = vmatpush1.bf16.msra.mxu0 %v5274_v3  ;;  %3685 = vmatprep.mubr.bf16.mxu0 %v6475_v59  ;;  %v5330_v3 = vcombine.low %v298_v56, %v302_v57  ;;  %v354_v56 = vld [vmem:[#allocation2 + $0x790] sm:$0xff] }
 0x139   :  { %3655 = vmatprep.subr.bf16.mxu0 %v5283_v5  ;;  %v5339_v5 = vcombine.high %v306_v63, %v310_v1  ;;  %v358_v57 = vld [vmem:[#allocation2 + $0x7b0] sm:$0xff] }
 0x13a   :  { %3484 = vmatpush1.bf16.msra.mxu1 %v5280_v10  ;;  %v5336_v10 = vcombine.low %v305_v60, %v309_v61  ;;  %v361_v60 = vld [vmem:[#allocation2 + $0x7c8] sm:$0xff] }
 0x13b   :  { %3485 = vmatprep.subr.bf16.mxu1 %v5289_v12  ;;  %v5345_v12 = vcombine.high %v313_v6, %v317_v7  ;;  %v365_v61 = vld [vmem:[#allocation2 + $0x7e8] sm:$0xff] }
 0x13c   :  { %3656 = vmatpush1.bf16.msra.mxu0 %v5282_v11  ;;  %v5338_v11 = vcombine.low %v306_v63, %v310_v1  ;;  %v362_v63 = vld [vmem:[#allocation2 + $0x7d0] sm:$0xff] }
 0x13d   :  { %3657 = vmatprep.subr.bf16.mxu0 %v5291_v13  ;;  %v5347_v13 = vcombine.high %v314_v8, %v318_v9  ;;  %v366_v1 = vld [vmem:[#allocation2 + $0x7f0] sm:$0xff] }
 0x13e   :  { %3486 = vmatpush1.bf16.msra.mxu1 %v5288_v18  ;;  %v5344_v18 = vcombine.low %v313_v6, %v317_v7  ;;  %v369_v6 = vld [vmem:[#allocation2 + $0x808] sm:$0xff] }
 0x13f   :  { %3487 = vmatprep.subr.bf16.mxu1 %v5297_v20  ;;  %v5353_v20 = vcombine.high %v321_v14, %v325_v15  ;;  %v373_v7 = vld [vmem:[#allocation2 + $0x828] sm:$0xff] }
 0x140   :  { %3658 = vmatpush1.bf16.msra.mxu0 %v5290_v19  ;;  %v5346_v19 = vcombine.low %v314_v8, %v318_v9  ;;  %v370_v8 = vld [vmem:[#allocation2 + $0x810] sm:$0xff] }
 0x141   :  { %3659 = vmatprep.subr.bf16.mxu0 %v5299_v22  ;;  %v5355_v22 = vcombine.high %v322_v16, %v326_v17  ;;  %v374_v9 = vld [vmem:[#allocation2 + $0x830] sm:$0xff] }
 0x142   :  { %3488 = vmatpush1.bf16.msra.mxu1 %v5296_v30  ;;  %v5352_v30 = vcombine.low %v321_v14, %v325_v15  ;;  %v377_v14 = vld [vmem:[#allocation2 + $0x848] sm:$0xff] }
 0x143   :  { %3489 = vmatprep.subr.bf16.mxu1 %v5305_v62  ;;  %v5361_v62 = vcombine.high %v329_v25, %v333_v27  ;;  %v381_v15 = vld [vmem:[#allocation2 + $0x868] sm:$0xff] }
 0x144   :  { %3660 = vmatpush1.bf16.msra.mxu0 %v5298_v31  ;;  %v5354_v31 = vcombine.low %v322_v16, %v326_v17  ;;  %v378_v16 = vld [vmem:[#allocation2 + $0x850] sm:$0xff] }
 0x145   :  { %3661 = vmatprep.subr.bf16.mxu0 %v5307_v32  ;;  %v5363_v32 = vcombine.high %v330_v28, %v334_v29  ;;  %v382_v17 = vld [vmem:[#allocation2 + $0x870] sm:$0xff] }
 0x146   :  { %3490 = vmatpush1.bf16.msra.mxu1 %v5304_v38  ;;  %v5360_v38 = vcombine.low %v329_v25, %v333_v27  ;;  %v385_v25 = vld [vmem:[#allocation2 + $0x888] sm:$0xff] }
 0x147   :  { %3491 = vmatprep.subr.bf16.mxu1 %v5313_v40  ;;  %v5369_v40 = vcombine.high %v337_v34, %v341_v35  ;;  %v389_v27 = vld [vmem:[#allocation2 + $0x8a8] sm:$0xff] }
 0x148   :  { %3662 = vmatpush1.bf16.msra.mxu0 %v5306_v39  ;;  %v5362_v39 = vcombine.low %v330_v28, %v334_v29  ;;  %v386_v28 = vld [vmem:[#allocation2 + $0x890] sm:$0xff] }
 0x149   :  { %3663 = vmatprep.subr.bf16.mxu0 %v5315_v41  ;;  %v5371_v41 = vcombine.high %v338_v36, %v342_v37  ;;  %v390_v29 = vld [vmem:[#allocation2 + $0x8b0] sm:$0xff] }
 0x14a   :  { %3492 = vmatpush1.bf16.msra.mxu1 %v5312_v47  ;;  %v5368_v47 = vcombine.low %v337_v34, %v341_v35  ;;  %v393_v34 = vld [vmem:[#allocation2 + $0x8c8] sm:$0xff] }
 0x14b   :  { %3493 = vmatprep.subr.bf16.mxu1 %v5321_v50  ;;  %v5377_v50 = vcombine.high %v345_v42, %v349_v43  ;;  %v397_v35 = vld [vmem:[#allocation2 + $0x8e8] sm:$0xff] }
 0x14c   :  { %3664 = vmatpush1.bf16.msra.mxu0 %v5314_v49  ;;  %v5370_v49 = vcombine.low %v338_v36, %v342_v37  ;;  %v394_v36 = vld [vmem:[#allocation2 + $0x8d0] sm:$0xff] }
 0x14d   :  { %3665 = vmatprep.subr.bf16.mxu0 %v5323_v51  ;;  %v5379_v51 = vcombine.high %v346_v44, %v350_v45  ;;  %v398_v37 = vld [vmem:[#allocation2 + $0x8f0] sm:$0xff] }
 0x14e   :  { %3494 = vmatpush1.bf16.msra.mxu1 %v5320_v23  ;;  %v5376_v23 = vcombine.low %v345_v42, %v349_v43  ;;  %v401_v42 = vld [vmem:[#allocation2 + $0x908] sm:$0xff] }
 0x14f   :  { %3495 = vmatprep.subr.bf16.mxu1 %v5329_v53  ;;  %v5385_v53 = vcombine.high %v353_v52, %v357_v55  ;;  %v405_v43 = vld [vmem:[#allocation2 + $0x928] sm:$0xff] }
 0x150   :  { %3666 = vmatpush1.bf16.msra.mxu0 %v5322_v24  ;;  %v5378_v24 = vcombine.low %v346_v44, %v350_v45  ;;  %v402_v44 = vld [vmem:[#allocation2 + $0x910] sm:$0xff] }
 0x151   :  { %3667 = vmatprep.subr.bf16.mxu0 %v5331_v54  ;;  %v5387_v54 = vcombine.high %v354_v56, %v358_v57  ;;  %v406_v45 = vld [vmem:[#allocation2 + $0x930] sm:$0xff] }
 0x152   :  { %3496 = vmatpush1.bf16.msra.mxu1 %v5328_v2  ;;  %v5384_v2 = vcombine.low %v353_v52, %v357_v55  ;;  %v409_v52 = vld [vmem:[#allocation2 + $0x948] sm:$0xff] }
 0x153   :  { %3497 = vmatprep.subr.bf16.mxu1 %v5337_v4  ;;  %v5393_v4 = vcombine.high %v361_v60, %v365_v61  ;;  %v413_v55 = vld [vmem:[#allocation2 + $0x968] sm:$0xff] }
 0x154   :  { %3668 = vmatpush1.bf16.msra.mxu0 %v5330_v3  ;;  %v5386_v3 = vcombine.low %v354_v56, %v358_v57  ;;  %v410_v56 = vld [vmem:[#allocation2 + $0x950] sm:$0xff] }
 0x155   :  { %3669 = vmatprep.subr.bf16.mxu0 %v5339_v5  ;;  %v5395_v5 = vcombine.high %v362_v63, %v366_v1  ;;  %v414_v57 = vld [vmem:[#allocation2 + $0x970] sm:$0xff] }
 0x156   :  { %3498 = vmatpush1.bf16.msra.mxu1 %v5336_v10  ;;  %v5392_v10 = vcombine.low %v361_v60, %v365_v61  ;;  %v417_v60 = vld [vmem:[#allocation2 + $0x988] sm:$0xff] }
 0x157   :  { %3499 = vmatprep.subr.bf16.mxu1 %v5345_v12  ;;  %v5401_v12 = vcombine.high %v369_v6, %v373_v7  ;;  %v421_v61 = vld [vmem:[#allocation2 + $0x9a8] sm:$0xff] }
 0x158   :  { %3670 = vmatpush1.bf16.msra.mxu0 %v5338_v11  ;;  %v5394_v11 = vcombine.low %v362_v63, %v366_v1  ;;  %v418_v63 = vld [vmem:[#allocation2 + $0x990] sm:$0xff] }
 0x159   :  { %3671 = vmatprep.subr.bf16.mxu0 %v5347_v13  ;;  %v5403_v13 = vcombine.high %v370_v8, %v374_v9  ;;  %v422_v1 = vld [vmem:[#allocation2 + $0x9b0] sm:$0xff] }
 0x15a   :  { %3500 = vmatpush1.bf16.msra.mxu1 %v5344_v18  ;;  %v5400_v18 = vcombine.low %v369_v6, %v373_v7  ;;  %v425_v6 = vld [vmem:[#allocation2 + $0x9c8] sm:$0xff] }
 0x15b   :  { %3501 = vmatprep.subr.bf16.mxu1 %v5353_v20  ;;  %v5409_v20 = vcombine.high %v377_v14, %v381_v15  ;;  %v429_v7 = vld [vmem:[#allocation2 + $0x9e8] sm:$0xff] }
 0x15c   :  { %3672 = vmatpush1.bf16.msra.mxu0 %v5346_v19  ;;  %v5402_v19 = vcombine.low %v370_v8, %v374_v9  ;;  %v426_v8 = vld [vmem:[#allocation2 + $0x9d0] sm:$0xff] }
 0x15d   :  { %3673 = vmatprep.subr.bf16.mxu0 %v5355_v22  ;;  %v5411_v22 = vcombine.high %v378_v16, %v382_v17  ;;  %v430_v9 = vld [vmem:[#allocation2 + $0x9f0] sm:$0xff] }
 0x15e   :  { %3502 = vmatpush1.bf16.msra.mxu1 %v5352_v30  ;;  %v5408_v30 = vcombine.low %v377_v14, %v381_v15  ;;  %v433_v14 = vld [vmem:[#allocation2 + $0xa08] sm:$0xff] }
 0x15f   :  { %3503 = vmatprep.subr.bf16.mxu1 %v5361_v62  ;;  %v5417_v62 = vcombine.high %v385_v25, %v389_v27  ;;  %v437_v15 = vld [vmem:[#allocation2 + $0xa28] sm:$0xff] }
 0x160   :  { %3674 = vmatpush1.bf16.msra.mxu0 %v5354_v31  ;;  %v5410_v31 = vcombine.low %v378_v16, %v382_v17  ;;  %v434_v16 = vld [vmem:[#allocation2 + $0xa10] sm:$0xff] }
 0x161   :  { %3675 = vmatprep.subr.bf16.mxu0 %v5363_v32  ;;  %v5419_v32 = vcombine.high %v386_v28, %v390_v29  ;;  %v438_v17 = vld [vmem:[#allocation2 + $0xa30] sm:$0xff] }
 0x162   :  { %3504 = vmatpush1.bf16.msra.mxu1 %v5360_v38  ;;  %v5416_v38 = vcombine.low %v385_v25, %v389_v27  ;;  %v441_v25 = vld [vmem:[#allocation2 + $0xa48] sm:$0xff] }
 0x163   :  { %3505 = vmatprep.subr.bf16.mxu1 %v5369_v40  ;;  %v5425_v40 = vcombine.high %v393_v34, %v397_v35  ;;  %v445_v27 = vld [vmem:[#allocation2 + $0xa68] sm:$0xff] }
 0x164   :  { %3676 = vmatpush1.bf16.msra.mxu0 %v5362_v39  ;;  %v5418_v39 = vcombine.low %v386_v28, %v390_v29  ;;  %v442_v28 = vld [vmem:[#allocation2 + $0xa50] sm:$0xff] }
 0x165   :  { %3677 = vmatprep.subr.bf16.mxu0 %v5371_v41  ;;  %v5427_v41 = vcombine.high %v394_v36, %v398_v37  ;;  %v446_v29 = vld [vmem:[#allocation2 + $0xa70] sm:$0xff] }
 0x166   :  { %3506 = vmatpush1.bf16.msra.mxu1 %v5368_v47  ;;  %v5424_v47 = vcombine.low %v393_v34, %v397_v35  ;;  %v449_v34 = vld [vmem:[#allocation2 + $0xa88] sm:$0xff] }
 0x167   :  { %3507 = vmatprep.subr.bf16.mxu1 %v5377_v50  ;;  %v5433_v50 = vcombine.high %v401_v42, %v405_v43  ;;  %v453_v35 = vld [vmem:[#allocation2 + $0xaa8] sm:$0xff] }
 0x168   :  { %3678 = vmatpush1.bf16.msra.mxu0 %v5370_v49  ;;  %v5426_v49 = vcombine.low %v394_v36, %v398_v37  ;;  %v450_v36 = vld [vmem:[#allocation2 + $0xa90] sm:$0xff] }
 0x169   :  { %3679 = vmatprep.subr.bf16.mxu0 %v5379_v51  ;;  %v5435_v51 = vcombine.high %v402_v44, %v406_v45  ;;  %v454_v37 = vld [vmem:[#allocation2 + $0xab0] sm:$0xff] }
 0x16a   :  { %3508 = vmatpush1.bf16.msra.mxu1 %v5376_v23  ;;  %v5432_v23 = vcombine.low %v401_v42, %v405_v43  ;;  %v457_v42 = vld [vmem:[#allocation2 + $0xac8] sm:$0xff] }
 0x16b   :  { %3509 = vmatprep.subr.bf16.mxu1 %v5385_v53  ;;  %v5441_v53 = vcombine.high %v409_v52, %v413_v55  ;;  %v461_v43 = vld [vmem:[#allocation2 + $0xae8] sm:$0xff] }
 0x16c   :  { %3680 = vmatpush1.bf16.msra.mxu0 %v5378_v24  ;;  %v5434_v24 = vcombine.low %v402_v44, %v406_v45  ;;  %v458_v44 = vld [vmem:[#allocation2 + $0xad0] sm:$0xff] }
 0x16d   :  { %3681 = vmatprep.subr.bf16.mxu0 %v5387_v54  ;;  %v5443_v54 = vcombine.high %v410_v56, %v414_v57  ;;  %v462_v45 = vld [vmem:[#allocation2 + $0xaf0] sm:$0xff] }
 0x16e   :  { %3510 = vmatpush1.bf16.msra.mxu1 %v5384_v2  ;;  %v5440_v2 = vcombine.low %v409_v52, %v413_v55  ;;  %v465_v52 = vld [vmem:[#allocation2 + $0xb08] sm:$0xff] }
 0x16f   :  { %3511 = vmatprep.subr.bf16.mxu1 %v5393_v4  ;;  %v5449_v4 = vcombine.high %v417_v60, %v421_v61  ;;  %v469_v55 = vld [vmem:[#allocation2 + $0xb28] sm:$0xff] }
 0x170   :  { %3682 = vmatpush1.bf16.msra.mxu0 %v5386_v3  ;;  %v5442_v3 = vcombine.low %v410_v56, %v414_v57  ;;  %v466_v56 = vld [vmem:[#allocation2 + $0xb10] sm:$0xff] }
 0x171   :  { %3683 = vmatprep.subr.bf16.mxu0 %v5395_v5  ;;  %v5451_v5 = vcombine.high %v418_v63, %v422_v1  ;;  %v470_v57 = vld [vmem:[#allocation2 + $0xb30] sm:$0xff] }
 0x172   :  { %3512 = vmatpush1.bf16.msra.mxu1 %v5392_v10  ;;  %v5448_v10 = vcombine.low %v417_v60, %v421_v61  ;;  %v473_v60 = vld [vmem:[#allocation2 + $0xb48] sm:$0xff] }
 0x173   :  { %3524 = vmatprep.subr.bf16.mxu1 %v5401_v12  ;;  %v5457_v12 = vcombine.high %v425_v6, %v429_v7  ;;  %v477_v61 = vld [vmem:[#allocation2 + $0xb68] sm:$0xff] }
 0x174   :  { %3684 = vmatpush1.bf16.msra.mxu0 %v5394_v11  ;;  %v5450_v11 = vcombine.low %v418_v63, %v422_v1  ;;  %v474_v63 = vld [vmem:[#allocation2 + $0xb50] sm:$0xff] }
 0x175   :  { %3696 = vmatprep.subr.bf16.mxu0 %v5403_v13  ;;  %3514 = vmatmul.mubr.bf16.vlgmr.msra.gmra.mrb[4].mxu1 %v6487_v46  ;;  %v5459_v13 = vcombine.high %v426_v8, %v430_v9  ;;  %v478_v1 = vld [vmem:[#allocation2 + $0xb70] sm:$0xff] }
 0x176   :  { %3525 = vmatpush1.bf16.msra.mxu1 %v5400_v18  ;;  %3556 = vmatprep.mubr.bf16.mxu1 %v6442_v0  ;;  %v5456_v18 = vcombine.low %v425_v6, %v429_v7  ;;  %v481_v6 = vld [vmem:[#allocation2 + $0xb88] sm:$0xff] }
 0x177   :  { %3686 = vmatmul.mubr.bf16.vlgmr.msra.gmra.mrb[4].mxu0 %v6487_v46  ;;  %3526 = vmatprep.subr.bf16.mxu1 %v5409_v20  ;;  %v5465_v20 = vcombine.high %v433_v14, %v437_v15  ;;  %v485_v7 = vld [vmem:[#allocation2 + $0xba8] sm:$0xff] }
 0x178   :  { %3697 = vmatpush1.bf16.msra.mxu0 %v5402_v19  ;;  %3728 = vmatprep.mubr.bf16.mxu0 %v6442_v0  ;;  %v5458_v19 = vcombine.low %v426_v8, %v430_v9  ;;  %v482_v8 = vld [vmem:[#allocation2 + $0xb90] sm:$0xff] }
 0x179   :  { %3698 = vmatprep.subr.bf16.mxu0 %v5411_v22  ;;  %v5467_v22 = vcombine.high %v434_v16, %v438_v17  ;;  %v486_v9 = vld [vmem:[#allocation2 + $0xbb0] sm:$0xff] }
 0x17a   :  { %3527 = vmatpush1.bf16.msra.mxu1 %v5408_v30  ;;  %v5464_v30 = vcombine.low %v433_v14, %v437_v15  ;;  %v489_v14 = vld [vmem:[#allocation2 + $0xbc8] sm:$0xff] }
 0x17b   :  { %3528 = vmatprep.subr.bf16.mxu1 %v5417_v62  ;;  %v5473_v62 = vcombine.high %v441_v25, %v445_v27  ;;  %v493_v15 = vld [vmem:[#allocation2 + $0xbe8] sm:$0xff] }
 0x17c   :  { %3699 = vmatpush1.bf16.msra.mxu0 %v5410_v31  ;;  %v5466_v31 = vcombine.low %v434_v16, %v438_v17  ;;  %v490_v16 = vld [vmem:[#allocation2 + $0xbd0] sm:$0xff] }
 0x17d   :  { %3700 = vmatprep.subr.bf16.mxu0 %v5419_v32  ;;  %v5475_v32 = vcombine.high %v442_v28, %v446_v29  ;;  %v494_v17 = vld [vmem:[#allocation2 + $0xbf0] sm:$0xff] }
 0x17e   :  { %3529 = vmatpush1.bf16.msra.mxu1 %v5416_v38  ;;  %v5472_v38 = vcombine.low %v441_v25, %v445_v27  ;;  %v497_v25 = vld [vmem:[#allocation2 + $0xc08] sm:$0xff] }
 0x17f   :  { %3530 = vmatprep.subr.bf16.mxu1 %v5425_v40  ;;  %v5481_v40 = vcombine.high %v449_v34, %v453_v35  ;;  %v501_v27 = vld [vmem:[#allocation2 + $0xc28] sm:$0xff] }
 0x180   :  { %3701 = vmatpush1.bf16.msra.mxu0 %v5418_v39  ;;  %v5474_v39 = vcombine.low %v442_v28, %v446_v29  ;;  %v498_v28 = vld [vmem:[#allocation2 + $0xc10] sm:$0xff] }
 0x181   :  { %3702 = vmatprep.subr.bf16.mxu0 %v5427_v41  ;;  %v5483_v41 = vcombine.high %v450_v36, %v454_v37  ;;  %v502_v29 = vld [vmem:[#allocation2 + $0xc30] sm:$0xff] }
 0x182   :  { %3531 = vmatpush1.bf16.msra.mxu1 %v5424_v47  ;;  %v5480_v47 = vcombine.low %v449_v34, %v453_v35  ;;  %v505_v34 = vld [vmem:[#allocation2 + $0xc48] sm:$0xff] }
 0x183   :  { %3532 = vmatprep.subr.bf16.mxu1 %v5433_v50  ;;  %v5489_v50 = vcombine.high %v457_v42, %v461_v43  ;;  %v509_v35 = vld [vmem:[#allocation2 + $0xc68] sm:$0xff] }
 0x184   :  { %3703 = vmatpush1.bf16.msra.mxu0 %v5426_v49  ;;  %v5482_v49 = vcombine.low %v450_v36, %v454_v37  ;;  %v506_v36 = vld [vmem:[#allocation2 + $0xc50] sm:$0xff] }
 0x185   :  { %3704 = vmatprep.subr.bf16.mxu0 %v5435_v51  ;;  %v5491_v51 = vcombine.high %v458_v44, %v462_v45  ;;  %v510_v37 = vld [vmem:[#allocation2 + $0xc70] sm:$0xff] }
 0x186   :  { %3533 = vmatpush1.bf16.msra.mxu1 %v5432_v23  ;;  %v5488_v23 = vcombine.low %v457_v42, %v461_v43  ;;  %v513_v42 = vld [vmem:[#allocation2 + $0xc88] sm:$0xff] }
 0x187   :  { %3534 = vmatprep.subr.bf16.mxu1 %v5441_v53  ;;  %v5497_v53 = vcombine.high %v465_v52, %v469_v55  ;;  %v517_v43 = vld [vmem:[#allocation2 + $0xca8] sm:$0xff] }
 0x188   :  { %3705 = vmatpush1.bf16.msra.mxu0 %v5434_v24  ;;  %v5490_v24 = vcombine.low %v458_v44, %v462_v45  ;;  %v514_v44 = vld [vmem:[#allocation2 + $0xc90] sm:$0xff] }
 0x189   :  { %3706 = vmatprep.subr.bf16.mxu0 %v5443_v54  ;;  %v5499_v54 = vcombine.high %v466_v56, %v470_v57  ;;  %v518_v45 = vld [vmem:[#allocation2 + $0xcb0] sm:$0xff] }
 0x18a   :  { %3535 = vmatpush1.bf16.msra.mxu1 %v5440_v2  ;;  %v5496_v2 = vcombine.low %v465_v52, %v469_v55  ;;  %v521_v52 = vld [vmem:[#allocation2 + $0xcc8] sm:$0xff] }
 0x18b   :  { %3536 = vmatprep.subr.bf16.mxu1 %v5449_v4  ;;  %v5505_v4 = vcombine.high %v473_v60, %v477_v61  ;;  %v525_v55 = vld [vmem:[#allocation2 + $0xce8] sm:$0xff] }
 0x18c   :  { %3707 = vmatpush1.bf16.msra.mxu0 %v5442_v3  ;;  %v5498_v3 = vcombine.low %v466_v56, %v470_v57  ;;  %v522_v56 = vld [vmem:[#allocation2 + $0xcd0] sm:$0xff] }
 0x18d   :  { %3708 = vmatprep.subr.bf16.mxu0 %v5451_v5  ;;  %v5507_v5 = vcombine.high %v474_v63, %v478_v1  ;;  %v526_v57 = vld [vmem:[#allocation2 + $0xcf0] sm:$0xff] }
 0x18e   :  { %3537 = vmatpush1.bf16.msra.mxu1 %v5448_v10  ;;  %v5504_v10 = vcombine.low %v473_v60, %v477_v61  ;;  %v5555_v60 = vcombine.high %v522_v56, %v526_v57  ;;  %v529_v61 = vld [vmem:[#allocation2 + $0xd08] sm:$0xff] }
 0x18f   :  { %3538 = vmatprep.subr.bf16.mxu1 %v5457_v12  ;;  %v5513_v12 = vcombine.high %v481_v6, %v485_v7 }
 0x190   :  { %3709 = vmatpush1.bf16.msra.mxu0 %v5450_v11  ;;  %v5506_v11 = vcombine.low %v474_v63, %v478_v1  ;;  %v533_v63 = vld [vmem:[#allocation2 + $0xd28] sm:$0xff]  ;;  %v530_v1 = vld [vmem:[#allocation2 + $0xd10] sm:$0xff] }
 0x191   :  { %3710 = vmatprep.subr.bf16.mxu0 %v5459_v13  ;;  %v5515_v13 = vcombine.high %v482_v8, %v486_v9 }
 0x192   :  { %3539 = vmatpush1.bf16.msra.mxu1 %v5456_v18  ;;  %v5512_v18 = vcombine.low %v481_v6, %v485_v7  ;;  %v5561_v6 = vcombine.high %v529_v61, %v533_v63 }
 0x193   :  { %3540 = vmatprep.subr.bf16.mxu1 %v5465_v20  ;;  %v5521_v20 = vcombine.high %v489_v14, %v493_v15 }
 0x194   :  { %3711 = vmatpush1.bf16.msra.mxu0 %v5458_v19  ;;  %v5514_v19 = vcombine.low %v482_v8, %v486_v9  ;;  %v537_v8 = vld [vmem:[#allocation2 + $0xd48] sm:$0xff] }
 0x195   :  { %3712 = vmatprep.subr.bf16.mxu0 %v5467_v22  ;;  %v5523_v22 = vcombine.high %v490_v16, %v494_v17  ;;  %v541_v9 = vld [vmem:[#allocation2 + $0xd68] sm:$0xff] }
 0x196   :  { %3541 = vmatpush1.bf16.msra.mxu1 %v5464_v30  ;;  %v5520_v30 = vcombine.low %v489_v14, %v493_v15  ;;  %v624_v14 = vld [vmem:[#allocation5] sm:$0xff] }
 0x197   :  { %3542 = vmatprep.subr.bf16.mxu1 %v5473_v62  ;;  %v5529_v62 = vcombine.high %v497_v25, %v501_v27 }
 0x198   :  { %3713 = vmatpush1.bf16.msra.mxu0 %v5466_v31  ;;  %v5522_v31 = vcombine.low %v490_v16, %v494_v17  ;;  %v5569_v17 = vcombine.high %v537_v8, %v541_v9 }
 0x199   :  { %3714 = vmatprep.subr.bf16.mxu0 %v5475_v32  ;;  %v5531_v32 = vcombine.high %v498_v28, %v502_v29 }
 0x19a   :  { %3543 = vmatpush1.bf16.msra.mxu1 %v5472_v38  ;;  %v5528_v38 = vcombine.low %v497_v25, %v501_v27  ;;  %v546_v25 = vld [vmem:[#allocation2 + $0xd90] sm:$0xff] }
 0x19b   :  { %3544 = vmatprep.subr.bf16.mxu1 %v5481_v40  ;;  %v5537_v40 = vcombine.high %v505_v34, %v509_v35  ;;  %v550_v27 = vld [vmem:[#allocation2 + $0xdb0] sm:$0xff] }
 0x19c   :  { %3715 = vmatpush1.bf16.msra.mxu0 %v5474_v39  ;;  %v5530_v39 = vcombine.low %v498_v28, %v502_v29  ;;  %v5568_v29 = vcombine.low %v537_v8, %v541_v9 }
 0x19d   :  { %3716 = vmatprep.subr.bf16.mxu0 %v5483_v41  ;;  %v5539_v41 = vcombine.high %v506_v36, %v510_v37 }
 0x19e   :  { %3545 = vmatpush1.bf16.msra.mxu1 %v5480_v47  ;;  %v5536_v47 = vcombine.low %v505_v34, %v509_v35  ;;  %v553_v34 = vld [vmem:[#allocation2 + $0xdc8] sm:$0xff] }
 0x19f   :  { %3546 = vmatprep.subr.bf16.mxu1 %v5489_v50  ;;  %v5545_v50 = vcombine.high %v513_v42, %v517_v43  ;;  %v557_v35 = vld [vmem:[#allocation2 + $0xde8] sm:$0xff] }
 0x1a0   :  { %3717 = vmatpush1.bf16.msra.mxu0 %v5482_v49  ;;  %v5538_v49 = vcombine.low %v506_v36, %v510_v37 }
 0x1a1   :  { %3718 = vmatprep.subr.bf16.mxu0 %v5491_v51  ;;  %v5547_v51 = vcombine.high %v514_v44, %v518_v45 }
 0x1a2   :  { %3547 = vmatpush1.bf16.msra.mxu1 %v5488_v23  ;;  %v626_v23 = vlaneseq }
 0x1a3   :  { %3548 = vmatprep.subr.bf16.mxu1 %v5497_v53  ;;  %v5546_v53 = vcombine.low %v514_v44, %v518_v45  ;;  %v5578_v45 = vcombine.low %v546_v25, %v550_v27 }
 0x1a4   :  { %3719 = vmatpush1.bf16.msra.mxu0 %v5490_v24  ;;  %v5544_v24 = vcombine.low %v513_v42, %v517_v43 }
 0x1a5   :  { %3720 = vmatprep.subr.bf16.mxu0 %v5499_v54  ;;  %v5553_v54 = vcombine.high %v521_v52, %v525_v55 }
 0x1a6   :  { %3549 = vmatpush1.bf16.msra.mxu1 %v5496_v2  ;;  %v534_v2 = vld [vmem:[#allocation2 + $0xd30] sm:$0xff] }
 0x1a7   :  { %3550 = vmatprep.subr.bf16.mxu1 %v5505_v4  ;;  %v5552_v4 = vcombine.low %v521_v52, %v525_v55  ;;  %v5563_v7 = vcombine.high %v530_v1, %v534_v2  ;;  %v5562_v16 = vcombine.low %v530_v1, %v534_v2  ;;  %v5585_v52 = vcombine.high %v553_v34, %v557_v35 }
 0x1a8   :  { %3721 = vmatpush1.bf16.msra.mxu0 %v5498_v3  ;;  %v6509_v3 = vshrl.u32 %v626_v23, 7  ;;  %v5584_v1 = vcombine.low %v553_v34, %v557_v35  ;;  %v585_v34 = vld [vmem:[#allocation2 + $0xec8] sm:$0xff] }
 0x1a9   :  { %3722 = vmatprep.subr.bf16.mxu0 %v5507_v5  ;;  %v5554_v5 = vcombine.low %v522_v56, %v526_v57  ;;  %v589_v35 = vld [vmem:[#allocation2 + $0xee8] sm:$0xff] }
 0x1aa   :  { %3551 = vmatpush1.bf16.msra.mxu1 %v5504_v10  ;;  %v628_v10 = vsub.s32 0, %v6509_v3  ;;  %v632_v15 = vsub.s32 1, %v6509_v3 }
 0x1ab   :  { %3552 = vmatprep.subr.bf16.mxu1 %v5513_v12  ;;  %v542_v12 = vld [vmem:[#allocation2 + $0xd70] sm:$0xff] }
 0x1ac   :  { %3723 = vmatpush1.bf16.msra.mxu0 %v5506_v11  ;;  %v538_v11 = vld [vmem:[#allocation2 + $0xd50] sm:$0xff]  ;;  %v633_v28 = vrot.slane %v624_v14, %v632_v15 }
 0x1ad   :  { %3724 = vmatprep.subr.bf16.mxu0 %v5515_v13  ;;  %v5560_v13 = vcombine.low %v529_v61, %v533_v63  ;;  %v566_v61 = vld [vmem:[#allocation2 + $0xe30] sm:$0xff] }
 0x1ae   :  { %3553 = vmatpush1.bf16.msra.mxu1 %v5512_v18  ;;  %v5571_v18 = vcombine.high %v538_v11, %v542_v12 }
 0x1af   :  { %3554 = vmatprep.subr.bf16.mxu1 %v5521_v20  ;;  %v549_v20 = vld [vmem:[#allocation2 + $0xda8] sm:$0xff] }
 0x1b0   :  { %3725 = vmatpush1.bf16.msra.mxu0 %v5514_v19  ;;  %v545_v19 = vld [vmem:[#allocation2 + $0xd88] sm:$0xff] }
 0x1b1   :  { %3726 = vmatprep.subr.bf16.mxu0 %v5523_v22  ;;  %v629_v22 = vrot.slane %v624_v14, %v628_v10  ;;  %v5576_v44 = vcombine.low %v545_v19, %v549_v20  ;;  %v570_v14 = vld [vmem:[#allocation2 + $0xe50] sm:$0xff] }
 0x1b2   :  { %3555 = vmatpush1.bf16.msra.mxu1 %v5520_v30  ;;  %v5570_v30 = vcombine.low %v538_v11, %v542_v12  ;;  %v569_v11 = vld [vmem:[#allocation2 + $0xe48] sm:$0xff] }
 0x1b3   :  { %3567 = vmatprep.subr.bf16.mxu1 %v5529_v62  ;;  %v573_v12 = vld [vmem:[#allocation2 + $0xe68] sm:$0xff] }
 0x1b4   :  { %3727 = vmatpush1.bf16.msra.mxu0 %v5522_v31  ;;  %v5577_v31 = vcombine.high %v545_v19, %v549_v20  ;;  %v5601_v20 = vcombine.high %v569_v11, %v573_v12 }
 0x1b5   :  { %3739 = vmatprep.subr.bf16.mxu0 %v5531_v32  ;;  %3557 = vmatmul.mubr.bf16.vlgmr.msra.gmra.mrb[4].mxu1 %v6461_v26  ;;  %v5579_v32 = vcombine.high %v546_v25, %v550_v27  ;;  %v577_v25 = vld [vmem:[#allocation2 + $0xe88] sm:$0xff] }
 0x1b6   :  { %3568 = vmatpush1.bf16.msra.mxu1 %v5528_v38  ;;  %3599 = vmatprep.mubr.bf16.mxu1 %v6480_v33  ;;  %v581_v27 = vld [vmem:[#allocation2 + $0xea8] sm:$0xff] }
 0x1b7   :  { %3729 = vmatmul.mubr.bf16.vlgmr.msra.gmra.mrb[4].mxu0 %v6461_v26  ;;  %3569 = vmatprep.subr.bf16.mxu1 %v5537_v40  ;;  %v558_v40 = vld [vmem:[#allocation2 + $0xdf0] sm:$0xff] }
 0x1b8   :  { %3740 = vmatpush1.bf16.msra.mxu0 %v5530_v39  ;;  %3771 = vmatprep.mubr.bf16.mxu0 %v6480_v33  ;;  %v554_v39 = vld [vmem:[#allocation2 + $0xdd0] sm:$0xff] }
 0x1b9   :  { %3741 = vmatprep.subr.bf16.mxu0 %v5539_v41  ;;  %v5587_v23 = vcombine.high %v554_v39, %v558_v40 }
 0x1ba   :  { %3570 = vmatpush1.bf16.msra.mxu1 %v5536_v47 }
 0x1bb   :  { %3571 = vmatprep.subr.bf16.mxu1 %v5545_v50 }
 0x1bc   :  { %3742 = vmatpush1.bf16.msra.mxu0 %v5538_v49 }
 0x1bd   :  { %3743 = vmatprep.subr.bf16.mxu0 %v5547_v51 }
 0x1be   :  { %3572 = vmatpush1.bf16.msra.mxu1 %v5544_v24  ;;  %v561_v24 = vld [vmem:[#allocation2 + $0xe08] sm:$0xff] }
 0x1bf   :  { %3573 = vmatprep.subr.bf16.mxu1 %v5553_v54 }
 0x1c0   :  { %3744 = vmatpush1.bf16.msra.mxu0 %v5546_v53  ;;  %v565_v53 = vld [vmem:[#allocation2 + $0xe28] sm:$0xff] }
 0x1c1   :  { %3745 = vmatprep.subr.bf16.mxu0 %v5555_v60  ;;  %v562_v60 = vld [vmem:[#allocation2 + $0xe10] sm:$0xff] }
 0x1c2   :  { %3574 = vmatpush1.bf16.msra.mxu1 %v5552_v4  ;;  %v5595_v9 = vcombine.high %v562_v60, %v566_v61  ;;  %v5594_v19 = vcombine.low %v562_v60, %v566_v61  ;;  %v609_v60 = vld [vmem:[#allocation2 + $0xf88] sm:$0xff] }
 0x1c3   :  { %3575 = vmatprep.subr.bf16.mxu1 %v5561_v6  ;;  %v5593_v6 = vcombine.high %v561_v24, %v565_v53  ;;  %v613_v61 = vld [vmem:[#allocation2 + $0xfa8] sm:$0xff] }
 0x1c4   :  { %3746 = vmatpush1.bf16.msra.mxu0 %v5554_v5  ;;  %v5586_v5 = vcombine.low %v554_v39, %v558_v40  ;;  %v5617_v40 = vcombine.high %v585_v34, %v589_v35 }
 0x1c5   :  { %3747 = vmatprep.subr.bf16.mxu0 %v5563_v7 }
 0x1c6   :  { %3576 = vmatpush1.bf16.msra.mxu1 %v5560_v13 }
 0x1c7   :  { %3577 = vmatprep.subr.bf16.mxu1 %v5569_v17 }
 0x1c8   :  { %3748 = vmatpush1.bf16.msra.mxu0 %v5562_v16  ;;  %v3343_v62 = vpop.f32.mrb[0].mxu1  ;;  %v574_v16 = vld [vmem:[#allocation2 + $0xe70] sm:$0xff] }
 0x1c9   :  { %3749 = vmatprep.subr.bf16.mxu0 %v5571_v18  ;;  %v5821_v36 = vadd.f32 %v3343_v62, %v629_v22  ;;  %v3345_v37 = vpop.f32.mrb[1].mxu1  ;;  %v5592_v18 = vcombine.low %v561_v24, %v565_v53  ;;  %v5609_v62 = vcombine.high %v577_v25, %v581_v27 }
 0x1ca   :  { %v3429_v38 = vpop.f32.mrb[0].mxu0  ;;  %v5823_v41 = vadd.f32 %v3345_v37, %v633_v28  ;;  %v3347_v42 = vpop.f32.mrb[2].mxu1  ;;  %3578 = vmatpush1.bf16.msra.mxu1 %v5568_v29  ;;  %v582_v29 = vld [vmem:[#allocation2 + $0xeb0] sm:$0xff] }
 0x1cb   :  { %v3431_v43 = vpop.f32.mrb[1].mxu0  ;;  %v5825_v47 = vadd.f32 %v3347_v42, %v629_v22  ;;  %v5822_v49 = vadd.f32 %v5821_v36, %v3429_v38  ;;  %v3349_v50 = vpop.f32.mrb[3].mxu1  ;;  %3579 = vmatprep.subr.bf16.mxu1 %v5577_v31  ;;  %v5603_v22 = vcombine.high %v570_v14, %v574_v16  ;;  %v5602_v31 = vcombine.low %v570_v14, %v574_v16  ;;  %v586_v36 = vld [vmem:[#allocation2 + $0xed0] sm:$0xff]  ;;  %v593_v42 = vld [vmem:[#allocation2 + $0xf08] sm:$0xff] }
 0x1cc   :  { %3750 = vmatpush1.bf16.msra.mxu0 %v5570_v30  ;;  %v3433_v51 = vpop.f32.mrb[2].mxu0  ;;  %v5827_v55 = vadd.f32 %v3349_v50, %v633_v28  ;;  %v5824_v56 = vadd.f32 %v5823_v41, %v3431_v43  ;;  %v578_v28 = vld [vmem:[#allocation2 + $0xe90] sm:$0xff]  ;;  %v5600_v30 = vcombine.low %v569_v11, %v573_v12  ;;  %v5608_v38 = vcombine.low %v577_v25, %v581_v27  ;;  %v597_v43 = vld [vmem:[#allocation2 + $0xf28] sm:$0xff] }
 0x1cd   :  { %v3435_v57 = vpop.f32.mrb[3].mxu0  ;;  %3751 = vmatprep.subr.bf16.mxu0 %v5579_v32  ;;  %v5826_v54 = vadd.f32 %v5825_v47, %v3433_v51  ;;  %v3954_v2 = vmax.f32 %v5822_v49, 0.0  ;;  %v5611_v32 = vcombine.high %v578_v28, %v582_v29  ;;  %v590_v37 = vld [vmem:[#allocation2 + $0xef0] sm:$0xff]  ;;  %v5610_v39 = vcombine.low %v578_v28, %v582_v29  ;;  %v123_v29 = vld [vmem:[#allocation2 + $0x58] sm:$0xff] }
 0x1ce   :  { %v5828_v63 = vadd.f32 %v5827_v55, %v3435_v57  ;;  %3580 = vmatpush1.bf16.msra.mxu1 %v5576_v44  ;;  %v3955_v7 = vmax.f32 %v5824_v56, 0.0  ;;  %v5619_v41 = vcombine.high %v586_v36, %v590_v37  ;;  %v594_v44 = vld [vmem:[#allocation2 + $0xf10] sm:$0xff]  ;;  %v5616_v47 = vcombine.low %v585_v34, %v589_v35  ;;  %v605_v55 = vld [vmem:[#allocation2 + $0xf68] sm:$0xff]  ;;  %v5919_v34 = vld [vmem:[#allocation7 + $0x14] ss:$8 sps:$4 sm:$0xff]  }
 0x1cf   :  { %v3962_v4 = vmax.f32 %v5826_v54, 0.0  ;;  %3581 = vmatprep.subr.bf16.mxu1 %v5585_v52  ;;  %v5618_v49 = vcombine.low %v586_v36, %v590_v37  ;;  %v5625_v50 = vcombine.high %v593_v42, %v597_v43  ;;  %v601_v52 = vld [vmem:[#allocation2 + $0xf48] sm:$0xff]  ;;  %v602_v56 = vld [vmem:[#allocation2 + $0xf50] sm:$0xff]  ;;  %v5640_v12 = vcombine.low %v609_v60, %v613_v61  ;;  %v131_v35 = vld [vmem:[#allocation2 + $0x98] sm:$0xff] }
 0x1d0   :  { %3752 = vmatpush1.bf16.msra.mxu0 %v5578_v45  ;;  %v3963_v8 = vmax.f32 %v5828_v63, 0.0  ;;  %v598_v45 = vld [vmem:[#allocation2 + $0xf30] sm:$0xff]  ;;  %v5633_v53 = vcombine.high %v601_v52, %v605_v55  ;;  %v135_v36 = vld [vmem:[#allocation2 + $0xb8] sm:$0xff] }
 0x1d1   :  { %3753 = vmatprep.subr.bf16.mxu0 %v5587_v23  ;;  %v6517_v13 = vpack.c.bf16 %v3962_v4, %v3954_v2  ;;  %v5627_v51 = vcombine.high %v594_v44, %v598_v45  ;;  %v606_v57 = vld [vmem:[#allocation2 + $0xf70] sm:$0xff]  ;;  %v5624_v23 = vcombine.low %v593_v42, %v597_v43  ;;  %v5626_v24 = vcombine.low %v594_v44, %v598_v45  ;;  %v143_v42 = vld [vmem:[#allocation2 + $0xf8] sm:$0xff] }
 0x1d2   :  { %v6519_v17 = vpack.c.bf16 %v3963_v8, %v3955_v7  ;;  %3582 = vmatpush1.bf16.msra.mxu1 %v5584_v1  ;;  %v5635_v54 = vcombine.high %v602_v56, %v606_v57  ;;  %v610_v63 = vld [vmem:[#allocation2 + $0xf90] sm:$0xff]  ;;  %v5632_v2 = vcombine.low %v601_v52, %v605_v55  ;;  %v5634_v4 = vcombine.low %v602_v56, %v606_v57  ;;  %v617_v7 = vld [vmem:[#allocation2 + $0xfc8] sm:$0xff]  ;;  %v155_v56 = vld [vmem:[#allocation2 + $0x158] sm:$0xff] }
 0x1d3   :  { %3583 = vmatprep.subr.bf16.mxu1 %v5593_v6  ;;  %v614_v1 = vld [vmem:[#allocation2 + $0xfb0] sm:$0xff]  ;;  %v621_v8 = vld [vmem:[#allocation2 + $0xfe8] sm:$0xff]  ;;  %v5164_v43 = vcombine.low %v131_v35, %v135_v36 }
 0x1d4   :  { %3754 = vmatpush1.bf16.msra.mxu0 %v5586_v5  ;;  %v5641_v5 = vcombine.high %v609_v60, %v613_v61  ;;  %v5643_v6 = vcombine.high %v610_v63, %v614_v1  ;;  %v622_v11 = vld [vmem:[#allocation2 + $0xff0] sm:$0xff]  ;;  %v5642_v14 = vcombine.low %v610_v63, %v614_v1  ;;  %v5649_v16 = vcombine.high %v617_v7, %v621_v8  ;;  %v167_v60 = vld [vmem:[#allocation2 + $0x1b8] sm:$0xff] }
 0x1d5   :  { %3755 = vmatprep.subr.bf16.mxu0 %v5595_v9  ;;  %v618_v9 = vld [vmem:[#allocation2 + $0xfd0] sm:$0xff]  ;;  %v5929_v63 = vld [vmem:[#allocation7 + $0x50] ss:$8 sps:$4 sm:$0xff]  }
 0x1d6   :  { %3584 = vmatpush1.bf16.msra.mxu1 %v5592_v18  ;;  %v5651_v18 = vcombine.high %v618_v9, %v622_v11  ;;  %v5650_v25 = vcombine.low %v618_v9, %v622_v11  ;;  %v5916_v28 = vld [vmem:[#allocation7 + $0x4] ss:$8 sps:$4 sm:$0xff]   ;;  %v5920_v44 = vld [vmem:[#allocation7 + $0x20] ss:$8 sps:$4 sm:$0xff]   ;;  %v5937_v9 = vld [vmem:[#allocation7 + $0x74] ss:$8 sps:$4 sm:$0xff]  }
 0x1d7   :  { %3585 = vmatprep.subr.bf16.mxu1 %v5601_v20  ;;  %v119_v20 = vld [vmem:[#allocation2 + $0x38] sm:$0xff]  ;;  %v5928_v55 = vld [vmem:[#allocation7 + $0x44] ss:$8 sps:$4 sm:$0xff]  }
 0x1d8   :  { %3756 = vmatpush1.bf16.msra.mxu0 %v5594_v19  ;;  %v115_v19 = vld [vmem:[#allocation2 + $0x18] sm:$0xff] }
 0x1d9   :  { %3757 = vmatprep.subr.bf16.mxu0 %v5603_v22  ;;  %v5648_v22 = vcombine.low %v617_v7, %v621_v8  ;;  %v5149_v27 = vcombine.high %v115_v19, %v119_v20  ;;  %v5932_v7 = vld [vmem:[#allocation7 + $0x60] ss:$8 sps:$4 sm:$0xff]   ;;  %v179_v11 = vld [vmem:[#allocation2 + $0x218] sm:$0xff] }
 0x1da   :  { %3586 = vmatpush1.bf16.msra.mxu1 %v5600_v30  ;;  %v127_v30 = vld [vmem:[#allocation2 + $0x78] sm:$0xff] }
 0x1db   :  { %3587 = vmatprep.subr.bf16.mxu1 %v5609_v62  ;;  %v5914_v62 = vld [vmem:[#allocation7] ss:$8 sps:$4 sm:$0xff]   ;;  %v5156_v37 = vcombine.low %v123_v29, %v127_v30 }
 0x1dc   :  { %3758 = vmatpush1.bf16.msra.mxu0 %v5602_v31  ;;  %v5148_v31 = vcombine.low %v115_v19, %v119_v20  ;;  %v5940_v19 = vld [vmem:[#allocation7 + $0x84] ss:$8 sps:$4 sm:$0xff]   ;;  %v187_v20 = vld [vmem:[#allocation2 + $0x258] sm:$0xff] }
 0x1dd   :  { %3759 = vmatprep.subr.bf16.mxu0 %v5611_v32  ;;  %v5157_v32 = vcombine.high %v123_v29, %v127_v30  ;;  %v5943_v29 = vld [vmem:[#allocation7 + $0x94] ss:$8 sps:$4 sm:$0xff]  }
 0x1de   :  { %3588 = vmatpush1.bf16.msra.mxu1 %v5608_v38  ;;  %v5917_v38 = vld [vmem:[#allocation7 + $0x10] ss:$8 sps:$4 sm:$0xff]  }
 0x1df   :  { %3589 = vmatprep.subr.bf16.mxu1 %v5617_v40  ;;  %v5922_v40 = vld [vmem:[#allocation7 + $0x24] ss:$8 sps:$4 sm:$0xff]   ;;  %v195_v30 = vld [vmem:[#allocation2 + $0x298] sm:$0xff] }
 0x1e0   :  { %3760 = vmatpush1.bf16.msra.mxu0 %v5610_v39  ;;  %v5165_v39 = vcombine.high %v131_v35, %v135_v36  ;;  %v5946_v35 = vld [vmem:[#allocation7 + $0xa4] ss:$8 sps:$4 sm:$0xff]   ;;  %v203_v36 = vld [vmem:[#allocation2 + $0x2d8] sm:$0xff] }
 0x1e1   :  { %3761 = vmatprep.subr.bf16.mxu0 %v5619_v41  ;;  %v139_v41 = vld [vmem:[#allocation2 + $0xd8] sm:$0xff] }
 0x1e2   :  { %3590 = vmatpush1.bf16.msra.mxu1 %v5616_v47  ;;  %v5173_v45 = vcombine.high %v139_v41, %v143_v42  ;;  %v5925_v47 = vld [vmem:[#allocation7 + $0x34] ss:$8 sps:$4 sm:$0xff]  }
 0x1e3   :  { %3591 = vmatprep.subr.bf16.mxu1 %v5625_v50  ;;  %v151_v50 = vld [vmem:[#allocation2 + $0x138] sm:$0xff] }
 0x1e4   :  { %3762 = vmatpush1.bf16.msra.mxu0 %v5618_v49  ;;  %v147_v49 = vld [vmem:[#allocation2 + $0x118] sm:$0xff] }
 0x1e5   :  { %3763 = vmatprep.subr.bf16.mxu0 %v5627_v51  ;;  %v5923_v51 = vld [vmem:[#allocation7 + $0x30] ss:$8 sps:$4 sm:$0xff]   ;;  %v5181_v52 = vcombine.high %v147_v49, %v151_v50  ;;  %v5180_v57 = vcombine.low %v147_v49, %v151_v50  ;;  %v5952_v49 = vld [vmem:[#allocation7 + $0xc4] ss:$8 sps:$4 sm:$0xff]  }
 0x1e6   :  { %3592 = vmatpush1.bf16.msra.mxu1 %v5624_v23  ;;  %v5926_v23 = vld [vmem:[#allocation7 + $0x40] ss:$8 sps:$4 sm:$0xff]   ;;  %v219_v50 = vld [vmem:[#allocation2 + $0x358] sm:$0xff] }
 0x1e7   :  { %3593 = vmatprep.subr.bf16.mxu1 %v5633_v53  ;;  %v5931_v53 = vld [vmem:[#allocation7 + $0x54] ss:$8 sps:$4 sm:$0xff]  }
 0x1e8   :  { %3764 = vmatpush1.bf16.msra.mxu0 %v5626_v24 }
 0x1e9   :  { %3765 = vmatprep.subr.bf16.mxu0 %v5635_v54  ;;  %v163_v54 = vld [vmem:[#allocation2 + $0x198] sm:$0xff] }
 0x1ea   :  { %3594 = vmatpush1.bf16.msra.mxu1 %v5632_v2  ;;  %v5197_v1 = vcombine.high %v163_v54, %v167_v60  ;;  %v5934_v2 = vld [vmem:[#allocation7 + $0x64] ss:$8 sps:$4 sm:$0xff]  }
 0x1eb   :  { %3595 = vmatprep.subr.bf16.mxu1 %v5641_v5  ;;  %v175_v5 = vld [vmem:[#allocation2 + $0x1f8] sm:$0xff] }
 0x1ec   :  { %3766 = vmatpush1.bf16.msra.mxu0 %v5634_v4  ;;  %v171_v4 = vld [vmem:[#allocation2 + $0x1d8] sm:$0xff] }
 0x1ed   :  { %3767 = vmatprep.subr.bf16.mxu0 %v5643_v6  ;;  %v5196_v6 = vcombine.low %v163_v54, %v167_v60  ;;  %v5205_v8 = vcombine.high %v171_v4, %v175_v5  ;;  %v5958_v54 = vld [vmem:[#allocation7 + $0xe4] ss:$8 sps:$4 sm:$0xff]   ;;  %v235_v60 = vld [vmem:[#allocation2 + $0x3d8] sm:$0xff] }
 0x1ee   :  { %3596 = vmatpush1.bf16.msra.mxu1 %v5640_v12  ;;  %v183_v12 = vld [vmem:[#allocation2 + $0x238] sm:$0xff] }
 0x1ef   :  { %3597 = vmatprep.subr.bf16.mxu1 %v5649_v16  ;;  %v5935_v16 = vld [vmem:[#allocation7 + $0x70] ss:$8 sps:$4 sm:$0xff]  }
 0x1f0   :  { %3768 = vmatpush1.bf16.msra.mxu0 %v5642_v14  ;;  %v5204_v14 = vcombine.low %v171_v4, %v175_v5  ;;  %v5961_v4 = vld [vmem:[#allocation7 + $0xf4] ss:$8 sps:$4 sm:$0xff]  }
 0x1f1   :  { %3769 = vmatprep.subr.bf16.mxu0 %v5651_v18  ;;  %v5213_v18 = vcombine.high %v179_v11, %v183_v12  ;;  %v243_v5 = vld [vmem:[#allocation2 + $0x418] sm:$0xff] }
 0x1f2   :  { %3598 = vmatpush1.bf16.msra.mxu1 %v5648_v22  ;;  %v191_v22 = vld [vmem:[#allocation2 + $0x278] sm:$0xff] }
 0x1f3   :  { %3782 = vmatprep.subr.bf16.mxu1 %v5149_v27  ;;  %v5938_v27 = vld [vmem:[#allocation7 + $0x80] ss:$8 sps:$4 sm:$0xff]  }
 0x1f4   :  { %3770 = vmatpush1.bf16.msra.mxu0 %v5650_v25  ;;  %v5212_v25 = vcombine.low %v179_v11, %v183_v12  ;;  %v251_v11 = vld [vmem:[#allocation2 + $0x458] sm:$0xff] }
 0x1f5   :  { %4758 = vmatprep.subr.bf16.mxu0 %v5916_v28  ;;  %3600 = vmatmul.mubr.bf16.vlgmr.msra.gmra.mrb[4].mxu1 %v6491_v48  ;;  %v5221_v28 = vcombine.high %v187_v20, %v191_v22  ;;  %v255_v12 = vld [vmem:[#allocation2 + $0x478] sm:$0xff] }
 0x1f6   :  { %3783 = vmatpush1.bf16.msra.mxu1 %v5148_v31  ;;  %3814 = vmatprep.mubr.bf16.mxu1 %v6427_v58  ;;  %v159_v58 = vld [vmem:[#allocation2 + $0x178] sm:$0xff] }
 0x1f7   :  { %3772 = vmatmul.mubr.bf16.vlgmr.msra.gmra.mrb[4].mxu0 %v6491_v48  ;;  %3784 = vmatprep.subr.bf16.mxu1 %v5157_v32  ;;  %v5189_v24 = vcombine.high %v155_v56, %v159_v58  ;;  %v5188_v61 = vcombine.low %v155_v56, %v159_v58  ;;  %v199_v31 = vld [vmem:[#allocation2 + $0x2b8] sm:$0xff] }
 0x1f8   :  { %4759 = vmatpush1.bf16.msra.mxu0 %v5914_v62  ;;  %4790 = vmatprep.mubr.bf16.mxu0 %v6519_v17  ;;  %v5172_v17 = vcombine.low %v139_v41, %v143_v42  ;;  %v5220_v62 = vcombine.low %v187_v20, %v191_v22  ;;  %v5941_v32 = vld [vmem:[#allocation7 + $0x90] ss:$8 sps:$4 sm:$0xff]   ;;  %v5949_v41 = vld [vmem:[#allocation7 + $0xb4] ss:$8 sps:$4 sm:$0xff]   ;;  %v5962_v22 = vld [vmem:[#allocation7 + $0x100] ss:$8 sps:$4 sm:$0xff]  }
 0x1f9   :  { %4760 = vmatprep.subr.bf16.mxu0 %v5919_v34  ;;  %v5229_v34 = vcombine.high %v195_v30, %v199_v31  ;;  %v211_v42 = vld [vmem:[#allocation2 + $0x318] sm:$0xff] }
 0x1fa   :  { %3785 = vmatpush1.bf16.msra.mxu1 %v5156_v37  ;;  %v207_v37 = vld [vmem:[#allocation2 + $0x2f8] sm:$0xff] }
 0x1fb   :  { %3786 = vmatprep.subr.bf16.mxu1 %v5165_v39  ;;  %v5944_v39 = vld [vmem:[#allocation7 + $0xa0] ss:$8 sps:$4 sm:$0xff]   ;;  %v5955_v56 = vld [vmem:[#allocation7 + $0xd4] ss:$8 sps:$4 sm:$0xff]  }
 0x1fc   :  { %4761 = vmatpush1.bf16.msra.mxu0 %v5917_v38  ;;  %v5228_v38 = vcombine.low %v195_v30, %v199_v31  ;;  %v227_v58 = vld [vmem:[#allocation2 + $0x398] sm:$0xff] }
 0x1fd   :  { %4762 = vmatprep.subr.bf16.mxu0 %v5922_v40  ;;  %v5237_v40 = vcombine.high %v203_v36, %v207_v37  ;;  %v263_v20 = vld [vmem:[#allocation2 + $0x4b8] sm:$0xff] }
 0x1fe   :  { %3787 = vmatpush1.bf16.msra.mxu1 %v5164_v43  ;;  %v215_v43 = vld [vmem:[#allocation2 + $0x338] sm:$0xff] }
 0x1ff   :  { %3788 = vmatprep.subr.bf16.mxu1 %v5173_v45  ;;  %v5947_v45 = vld [vmem:[#allocation7 + $0xb0] ss:$8 sps:$4 sm:$0xff]  }
 0x200   :  { %4763 = vmatpush1.bf16.msra.mxu0 %v5920_v44  ;;  %v5236_v44 = vcombine.low %v203_v36, %v207_v37  ;;  %v271_v30 = vld [vmem:[#allocation2 + $0x4f8] sm:$0xff] }
 0x201   :  { %4764 = vmatprep.subr.bf16.mxu0 %v5925_v47  ;;  %v5245_v47 = vcombine.high %v211_v42, %v215_v43  ;;  %v5965_v31 = vld [vmem:[#allocation7 + $0x110] ss:$8 sps:$4 sm:$0xff]   ;;  %v5973_v36 = vld [vmem:[#allocation7 + $0x134] ss:$8 sps:$4 sm:$0xff]  }
 0x202   :  { %3789 = vmatpush1.bf16.msra.mxu1 %v5172_v17  ;;  %v223_v17 = vld [vmem:[#allocation2 + $0x378] sm:$0xff] }
 0x203   :  { %3790 = vmatprep.subr.bf16.mxu1 %v5181_v52  ;;  %v5950_v52 = vld [vmem:[#allocation7 + $0xc0] ss:$8 sps:$4 sm:$0xff]  }
 0x204   :  { %4765 = vmatpush1.bf16.msra.mxu0 %v5923_v51  ;;  %v5244_v51 = vcombine.low %v211_v42, %v215_v43 }
 0x205   :  { %4766 = vmatprep.subr.bf16.mxu0 %v5928_v55  ;;  %v5253_v55 = vcombine.high %v219_v50, %v223_v17 }
 0x206   :  { %3791 = vmatpush1.bf16.msra.mxu1 %v5180_v57  ;;  %v231_v57 = vld [vmem:[#allocation2 + $0x3b8] sm:$0xff] }
 0x207   :  { %3792 = vmatprep.subr.bf16.mxu1 %v5189_v24  ;;  %v5953_v24 = vld [vmem:[#allocation7 + $0xd0] ss:$8 sps:$4 sm:$0xff]  }
 0x208   :  { %4767 = vmatpush1.bf16.msra.mxu0 %v5926_v23  ;;  %v5252_v23 = vcombine.low %v219_v50, %v223_v17 }
 0x209   :  { %4768 = vmatprep.subr.bf16.mxu0 %v5931_v53  ;;  %v5261_v53 = vcombine.high %v227_v58, %v231_v57 }
 0x20a   :  { %3793 = vmatpush1.bf16.msra.mxu1 %v5188_v61  ;;  %v239_v61 = vld [vmem:[#allocation2 + $0x3f8] sm:$0xff] }
 0x20b   :  { %3794 = vmatprep.subr.bf16.mxu1 %v5197_v1  ;;  %v5956_v1 = vld [vmem:[#allocation7 + $0xe0] ss:$8 sps:$4 sm:$0xff]  }
 0x20c   :  { %4769 = vmatpush1.bf16.msra.mxu0 %v5929_v63  ;;  %v5260_v63 = vcombine.low %v227_v58, %v231_v57 }
 0x20d   :  { %4770 = vmatprep.subr.bf16.mxu0 %v5934_v2  ;;  %v5269_v2 = vcombine.high %v235_v60, %v239_v61 }
 0x20e   :  { %3795 = vmatpush1.bf16.msra.mxu1 %v5196_v6  ;;  %v247_v6 = vld [vmem:[#allocation2 + $0x438] sm:$0xff] }
 0x20f   :  { %3796 = vmatprep.subr.bf16.mxu1 %v5205_v8  ;;  %v5959_v8 = vld [vmem:[#allocation7 + $0xf0] ss:$8 sps:$4 sm:$0xff]  }
 0x210   :  { %4771 = vmatpush1.bf16.msra.mxu0 %v5932_v7  ;;  %v5268_v7 = vcombine.low %v235_v60, %v239_v61 }
 0x211   :  { %4772 = vmatprep.subr.bf16.mxu0 %v5937_v9  ;;  %v5277_v9 = vcombine.high %v243_v5, %v247_v6 }
 0x212   :  { %3797 = vmatpush1.bf16.msra.mxu1 %v5204_v14  ;;  %v5964_v14 = vld [vmem:[#allocation7 + $0x104] ss:$8 sps:$4 sm:$0xff]  }
 0x213   :  { %3798 = vmatprep.subr.bf16.mxu1 %v5213_v18  ;;  %v5285_v18 = vcombine.high %v251_v11, %v255_v12 }
 0x214   :  { %4773 = vmatpush1.bf16.msra.mxu0 %v5935_v16  ;;  %v5276_v16 = vcombine.low %v243_v5, %v247_v6 }
 0x215   :  { %4774 = vmatprep.subr.bf16.mxu0 %v5940_v19  ;;  %v259_v19 = vld [vmem:[#allocation2 + $0x498] sm:$0xff] }
 0x216   :  { %3799 = vmatpush1.bf16.msra.mxu1 %v5212_v25  ;;  %v5967_v25 = vld [vmem:[#allocation7 + $0x114] ss:$8 sps:$4 sm:$0xff]  }
 0x217   :  { %3800 = vmatprep.subr.bf16.mxu1 %v5221_v28  ;;  %v5293_v28 = vcombine.high %v259_v19, %v263_v20 }
 0x218   :  { %4775 = vmatpush1.bf16.msra.mxu0 %v5938_v27  ;;  %v5284_v27 = vcombine.low %v251_v11, %v255_v12  ;;  %v5991_v11 = vld [vmem:[#allocation7 + $0x194] ss:$8 sps:$4 sm:$0xff]  }
 0x219   :  { %4776 = vmatprep.subr.bf16.mxu0 %v5943_v29  ;;  %v267_v29 = vld [vmem:[#allocation2 + $0x4d8] sm:$0xff] }
 0x21a   :  { %3801 = vmatpush1.bf16.msra.mxu1 %v5220_v62  ;;  %v5970_v62 = vld [vmem:[#allocation7 + $0x124] ss:$8 sps:$4 sm:$0xff]   ;;  %v5300_v37 = vcombine.low %v267_v29, %v271_v30 }
 0x21b   :  { %3802 = vmatprep.subr.bf16.mxu1 %v5229_v34  ;;  %v5301_v34 = vcombine.high %v267_v29, %v271_v30  ;;  %v5992_v29 = vld [vmem:[#allocation7 + $0x1a0] ss:$8 sps:$4 sm:$0xff]   ;;  %v5997_v30 = vld [vmem:[#allocation7 + $0x1b4] ss:$8 sps:$4 sm:$0xff]  }
 0x21c   :  { %4777 = vmatpush1.bf16.msra.mxu0 %v5941_v32  ;;  %v5292_v32 = vcombine.low %v259_v19, %v263_v20  ;;  %v5989_v19 = vld [vmem:[#allocation7 + $0x190] ss:$8 sps:$4 sm:$0xff]   ;;  %v5994_v20 = vld [vmem:[#allocation7 + $0x1a4] ss:$8 sps:$4 sm:$0xff]  }
 0x21d   :  { %4778 = vmatprep.subr.bf16.mxu0 %v5946_v35  ;;  %v279_v35 = vld [vmem:[#allocation2 + $0x538] sm:$0xff] }
 0x21e   :  { %3803 = vmatpush1.bf16.msra.mxu1 %v5228_v38  ;;  %v283_v38 = vld [vmem:[#allocation2 + $0x558] sm:$0xff] }
 0x21f   :  { %3804 = vmatprep.subr.bf16.mxu1 %v5237_v40  ;;  %v5971_v40 = vld [vmem:[#allocation7 + $0x130] ss:$8 sps:$4 sm:$0xff]  }
 0x220   :  { %4779 = vmatpush1.bf16.msra.mxu0 %v5944_v39  ;;  %v287_v39 = vld [vmem:[#allocation2 + $0x578] sm:$0xff] }
 0x221   :  { %4780 = vmatprep.subr.bf16.mxu0 %v5949_v41  ;;  %v5976_v41 = vld [vmem:[#allocation7 + $0x144] ss:$8 sps:$4 sm:$0xff]   ;;  %v5317_v43 = vcombine.high %v283_v38, %v287_v39  ;;  %v5316_v50 = vcombine.low %v283_v38, %v287_v39  ;;  %v5998_v38 = vld [vmem:[#allocation7 + $0x1c0] ss:$8 sps:$4 sm:$0xff]   ;;  %v6003_v39 = vld [vmem:[#allocation7 + $0x1d4] ss:$8 sps:$4 sm:$0xff]  }
 0x222   :  { %3805 = vmatpush1.bf16.msra.mxu1 %v5236_v44  ;;  %v291_v44 = vld [vmem:[#allocation2 + $0x598] sm:$0xff] }
 0x223   :  { %3806 = vmatprep.subr.bf16.mxu1 %v5245_v47  ;;  %v5974_v47 = vld [vmem:[#allocation7 + $0x140] ss:$8 sps:$4 sm:$0xff]  }
 0x224   :  { %4781 = vmatpush1.bf16.msra.mxu0 %v5947_v45  ;;  %v295_v45 = vld [vmem:[#allocation2 + $0x5b8] sm:$0xff] }
 0x225   :  { %4782 = vmatprep.subr.bf16.mxu0 %v5952_v49  ;;  %v5979_v49 = vld [vmem:[#allocation7 + $0x154] ss:$8 sps:$4 sm:$0xff]   ;;  %v5325_v17 = vcombine.high %v291_v44, %v295_v45  ;;  %v5324_v58 = vcombine.low %v291_v44, %v295_v45  ;;  %v6001_v44 = vld [vmem:[#allocation7 + $0x1d0] ss:$8 sps:$4 sm:$0xff]   ;;  %v6006_v45 = vld [vmem:[#allocation7 + $0x1e4] ss:$8 sps:$4 sm:$0xff]  }
 0x226   :  { %3807 = vmatpush1.bf16.msra.mxu1 %v5244_v51  ;;  %v299_v51 = vld [vmem:[#allocation2 + $0x5d8] sm:$0xff] }
 0x227   :  { %3808 = vmatprep.subr.bf16.mxu1 %v5253_v55  ;;  %v5977_v55 = vld [vmem:[#allocation7 + $0x150] ss:$8 sps:$4 sm:$0xff]  }
 0x228   :  { %4783 = vmatpush1.bf16.msra.mxu0 %v5950_v52  ;;  %v303_v52 = vld [vmem:[#allocation2 + $0x5f8] sm:$0xff] }
 0x229   :  { %4784 = vmatprep.subr.bf16.mxu0 %v5955_v56  ;;  %v5982_v56 = vld [vmem:[#allocation7 + $0x164] ss:$8 sps:$4 sm:$0xff]   ;;  %v5333_v57 = vcombine.high %v299_v51, %v303_v52  ;;  %v5332_v60 = vcombine.low %v299_v51, %v303_v52  ;;  %v6004_v51 = vld [vmem:[#allocation7 + $0x1e0] ss:$8 sps:$4 sm:$0xff]   ;;  %v6009_v52 = vld [vmem:[#allocation7 + $0x1f4] ss:$8 sps:$4 sm:$0xff]  }
 0x22a   :  { %3809 = vmatpush1.bf16.msra.mxu1 %v5252_v23  ;;  %v307_v23 = vld [vmem:[#allocation2 + $0x618] sm:$0xff] }
 0x22b   :  { %3810 = vmatprep.subr.bf16.mxu1 %v5261_v53  ;;  %v5980_v53 = vld [vmem:[#allocation7 + $0x160] ss:$8 sps:$4 sm:$0xff]  }
 0x22c   :  { %4785 = vmatpush1.bf16.msra.mxu0 %v5953_v24  ;;  %v311_v24 = vld [vmem:[#allocation2 + $0x638] sm:$0xff] }
 0x22d   :  { %4786 = vmatprep.subr.bf16.mxu0 %v5958_v54  ;;  %v5985_v54 = vld [vmem:[#allocation7 + $0x174] ss:$8 sps:$4 sm:$0xff]   ;;  %v5341_v61 = vcombine.high %v307_v23, %v311_v24  ;;  %v5340_v5 = vcombine.low %v307_v23, %v311_v24  ;;  %v6007_v23 = vld [vmem:[#allocation7 + $0x1f0] ss:$8 sps:$4 sm:$0xff]   ;;  %v6012_v24 = vld [vmem:[#allocation7 + $0x204] ss:$8 sps:$4 sm:$0xff]  }
 0x22e   :  { %3811 = vmatpush1.bf16.msra.mxu1 %v5260_v63  ;;  %v315_v63 = vld [vmem:[#allocation2 + $0x658] sm:$0xff] }
 0x22f   :  { %3812 = vmatprep.subr.bf16.mxu1 %v5269_v2  ;;  %v5983_v2 = vld [vmem:[#allocation7 + $0x170] ss:$8 sps:$4 sm:$0xff]  }
 0x230   :  { %4787 = vmatpush1.bf16.msra.mxu0 %v5956_v1  ;;  %v319_v1 = vld [vmem:[#allocation2 + $0x678] sm:$0xff] }
 0x231   :  { %4788 = vmatprep.subr.bf16.mxu0 %v5961_v4  ;;  %v5988_v4 = vld [vmem:[#allocation7 + $0x184] ss:$8 sps:$4 sm:$0xff]   ;;  %v5349_v6 = vcombine.high %v315_v63, %v319_v1  ;;  %v5348_v12 = vcombine.low %v315_v63, %v319_v1 }
 0x232   :  { %3813 = vmatpush1.bf16.msra.mxu1 %v5268_v7  ;;  %v323_v7 = vld [vmem:[#allocation2 + $0x698] sm:$0xff] }
 0x233   :  { %3825 = vmatprep.subr.bf16.mxu1 %v5277_v9  ;;  %v5986_v9 = vld [vmem:[#allocation7 + $0x180] ss:$8 sps:$4 sm:$0xff]  }
 0x234   :  { %4789 = vmatpush1.bf16.msra.mxu0 %v5959_v8  ;;  %v327_v8 = vld [vmem:[#allocation2 + $0x6b8] sm:$0xff] }
 0x235   :  { %4801 = vmatprep.subr.bf16.mxu0 %v5964_v14  ;;  %3815 = vmatmul.mubr.bf16.vlgmr.msra.gmra.mrb[8].mxu1 %v6447_v21  ;;  %v275_v21 = vld [vmem:[#allocation2 + $0x518] sm:$0xff]  ;;  %v5357_v14 = vcombine.high %v323_v7, %v327_v8 }
 0x236   :  { %3826 = vmatpush1.bf16.msra.mxu1 %v5276_v16  ;;  %3857 = vmatprep.mubr.bf16.mxu1 %v6475_v59  ;;  %v5309_v59 = vcombine.high %v275_v21, %v279_v35  ;;  %v5308_v42 = vcombine.low %v275_v21, %v279_v35  ;;  %v331_v16 = vld [vmem:[#allocation2 + $0x6d8] sm:$0xff]  ;;  %v6000_v35 = vld [vmem:[#allocation7 + $0x1c4] ss:$8 sps:$4 sm:$0xff]  }
 0x237   :  { %4791 = vmatmul.mubr.bf16.vlgmr.msra.gmra.mrb[8].mxu0 %v6517_v13  ;;  %3827 = vmatprep.subr.bf16.mxu1 %v5285_v18  ;;  %v5968_v13 = vld [vmem:[#allocation7 + $0x120] ss:$8 sps:$4 sm:$0xff]   ;;  %v335_v18 = vld [vmem:[#allocation2 + $0x6f8] sm:$0xff] }
 0x238   :  { %4802 = vmatpush1.bf16.msra.mxu0 %v5962_v22  ;;  %v5356_v22 = vcombine.low %v323_v7, %v327_v8  ;;  %v5995_v21 = vld [vmem:[#allocation7 + $0x1b0] ss:$8 sps:$4 sm:$0xff]  }
 0x239   :  { %4803 = vmatprep.subr.bf16.mxu0 %v5967_v25  ;;  %v5365_v25 = vcombine.high %v331_v16, %v335_v18  ;;  %v403_v7 = vld [vmem:[#allocation2 + $0x918] sm:$0xff] }
 0x23a   :  { %3828 = vmatpush1.bf16.msra.mxu1 %v5284_v27  ;;  %v339_v27 = vld [vmem:[#allocation2 + $0x718] sm:$0xff] }
 0x23b   :  { %3829 = vmatprep.subr.bf16.mxu1 %v5293_v28  ;;  %v343_v28 = vld [vmem:[#allocation2 + $0x738] sm:$0xff] }
 0x23c   :  { %4804 = vmatpush1.bf16.msra.mxu0 %v5965_v31  ;;  %v5364_v31 = vcombine.low %v331_v16, %v335_v18  ;;  %v407_v8 = vld [vmem:[#allocation2 + $0x938] sm:$0xff] }
 0x23d   :  { %4805 = vmatprep.subr.bf16.mxu0 %v5970_v62  ;;  %v5373_v62 = vcombine.high %v339_v27, %v343_v28  ;;  %v419_v16 = vld [vmem:[#allocation2 + $0x998] sm:$0xff] }
 0x23e   :  { %3830 = vmatpush1.bf16.msra.mxu1 %v5292_v32  ;;  %v347_v32 = vld [vmem:[#allocation2 + $0x758] sm:$0xff] }
 0x23f   :  { %3831 = vmatprep.subr.bf16.mxu1 %v5301_v34  ;;  %v351_v34 = vld [vmem:[#allocation2 + $0x778] sm:$0xff] }
 0x240   :  { %4806 = vmatpush1.bf16.msra.mxu0 %v5968_v13  ;;  %v5372_v13 = vcombine.low %v339_v27, %v343_v28  ;;  %v423_v18 = vld [vmem:[#allocation2 + $0x9b8] sm:$0xff] }
 0x241   :  { %4807 = vmatprep.subr.bf16.mxu0 %v5973_v36  ;;  %v5381_v36 = vcombine.high %v347_v32, %v351_v34  ;;  %v5452_v27 = vcombine.low %v419_v16, %v423_v18 }
 0x242   :  { %3832 = vmatpush1.bf16.msra.mxu1 %v5300_v37  ;;  %v355_v37 = vld [vmem:[#allocation2 + $0x798] sm:$0xff] }
 0x243   :  { %3833 = vmatprep.subr.bf16.mxu1 %v5309_v59  ;;  %v359_v59 = vld [vmem:[#allocation2 + $0x7b8] sm:$0xff] }
 0x244   :  { %4808 = vmatpush1.bf16.msra.mxu0 %v5971_v40  ;;  %v5380_v40 = vcombine.low %v347_v32, %v351_v34  ;;  %v443_v32 = vld [vmem:[#allocation2 + $0xa58] sm:$0xff] }
 0x245   :  { %4809 = vmatprep.subr.bf16.mxu0 %v5976_v41  ;;  %v5389_v41 = vcombine.high %v355_v37, %v359_v59  ;;  %v447_v34 = vld [vmem:[#allocation2 + $0xa78] sm:$0xff] }
 0x246   :  { %3834 = vmatpush1.bf16.msra.mxu1 %v5308_v42  ;;  %v363_v42 = vld [vmem:[#allocation2 + $0x7d8] sm:$0xff] }
 0x247   :  { %3835 = vmatprep.subr.bf16.mxu1 %v5317_v43  ;;  %v367_v43 = vld [vmem:[#allocation2 + $0x7f8] sm:$0xff] }
 0x248   :  { %4810 = vmatpush1.bf16.msra.mxu0 %v5974_v47  ;;  %v5388_v47 = vcombine.low %v355_v37, %v359_v59  ;;  %v5476_v37 = vcombine.low %v443_v32, %v447_v34 }
 0x249   :  { %4811 = vmatprep.subr.bf16.mxu0 %v5979_v49  ;;  %v5397_v49 = vcombine.high %v363_v42, %v367_v43 }
 0x24a   :  { %3836 = vmatpush1.bf16.msra.mxu1 %v5316_v50  ;;  %v371_v50 = vld [vmem:[#allocation2 + $0x818] sm:$0xff] }
 0x24b   :  { %3837 = vmatprep.subr.bf16.mxu1 %v5325_v17  ;;  %v375_v17 = vld [vmem:[#allocation2 + $0x838] sm:$0xff] }
 0x24c   :  { %4812 = vmatpush1.bf16.msra.mxu0 %v5977_v55  ;;  %v5396_v55 = vcombine.low %v363_v42, %v367_v43  ;;  %v467_v42 = vld [vmem:[#allocation2 + $0xb18] sm:$0xff] }
 0x24d   :  { %4813 = vmatprep.subr.bf16.mxu0 %v5982_v56  ;;  %v5405_v56 = vcombine.high %v371_v50, %v375_v17  ;;  %v471_v43 = vld [vmem:[#allocation2 + $0xb38] sm:$0xff] }
 0x24e   :  { %3838 = vmatpush1.bf16.msra.mxu1 %v5324_v58  ;;  %v379_v58 = vld [vmem:[#allocation2 + $0x858] sm:$0xff] }
 0x24f   :  { %3839 = vmatprep.subr.bf16.mxu1 %v5333_v57  ;;  %v383_v57 = vld [vmem:[#allocation2 + $0x878] sm:$0xff] }
 0x250   :  { %4814 = vmatpush1.bf16.msra.mxu0 %v5980_v53  ;;  %v5404_v53 = vcombine.low %v371_v50, %v375_v17  ;;  %v5412_v63 = vcombine.low %v379_v58, %v383_v57  ;;  %v5500_v50 = vcombine.low %v467_v42, %v471_v43 }
 0x251   :  { %4815 = vmatprep.subr.bf16.mxu0 %v5985_v54  ;;  %v5413_v54 = vcombine.high %v379_v58, %v383_v57  ;;  %v491_v58 = vld [vmem:[#allocation2 + $0xbd8] sm:$0xff] }
 0x252   :  { %3840 = vmatpush1.bf16.msra.mxu1 %v5332_v60  ;;  %v387_v60 = vld [vmem:[#allocation2 + $0x898] sm:$0xff] }
 0x253   :  { %3841 = vmatprep.subr.bf16.mxu1 %v5341_v61  ;;  %v391_v61 = vld [vmem:[#allocation2 + $0x8b8] sm:$0xff] }
 0x254   :  { %4816 = vmatpush1.bf16.msra.mxu0 %v5983_v2  ;;  %v5421_v1 = vcombine.high %v387_v60, %v391_v61  ;;  %v395_v2 = vld [vmem:[#allocation2 + $0x8d8] sm:$0xff] }
 0x255   :  { %4817 = vmatprep.subr.bf16.mxu0 %v5988_v4  ;;  %v399_v4 = vld [vmem:[#allocation2 + $0x8f8] sm:$0xff] }
 0x256   :  { %3842 = vmatpush1.bf16.msra.mxu1 %v5340_v5  ;;  %v5420_v5 = vcombine.low %v387_v60, %v391_v61  ;;  %v495_v57 = vld [vmem:[#allocation2 + $0xbf8] sm:$0xff] }
 0x257   :  { %3843 = vmatprep.subr.bf16.mxu1 %v5349_v6  ;;  %v5429_v6 = vcombine.high %v395_v2, %v399_v4  ;;  %v5524_v60 = vcombine.low %v491_v58, %v495_v57 }
 0x258   :  { %4818 = vmatpush1.bf16.msra.mxu0 %v5986_v9  ;;  %v5428_v9 = vcombine.low %v395_v2, %v399_v4 }
 0x259   :  { %4819 = vmatprep.subr.bf16.mxu0 %v5991_v11  ;;  %v5437_v11 = vcombine.high %v403_v7, %v407_v8 }
 0x25a   :  { %3844 = vmatpush1.bf16.msra.mxu1 %v5348_v12  ;;  %v415_v12 = vld [vmem:[#allocation2 + $0x978] sm:$0xff] }
 0x25b   :  { %3845 = vmatprep.subr.bf16.mxu1 %v5357_v14  ;;  %v5436_v14 = vcombine.low %v403_v7, %v407_v8 }
 0x25c   :  { %4820 = vmatpush1.bf16.msra.mxu0 %v5989_v19 }
 0x25d   :  { %4821 = vmatprep.subr.bf16.mxu0 %v5994_v20  ;;  %v5453_v20 = vcombine.high %v419_v16, %v423_v18 }
 0x25e   :  { %3846 = vmatpush1.bf16.msra.mxu1 %v5356_v22  ;;  %v427_v22 = vld [vmem:[#allocation2 + $0x9d8] sm:$0xff] }
 0x25f   :  { %3847 = vmatprep.subr.bf16.mxu1 %v5365_v25  ;;  %v431_v25 = vld [vmem:[#allocation2 + $0x9f8] sm:$0xff] }
 0x260   :  { %4822 = vmatpush1.bf16.msra.mxu0 %v5992_v29  ;;  %v5461_v28 = vcombine.high %v427_v22, %v431_v25  ;;  %v435_v29 = vld [vmem:[#allocation2 + $0xa18] sm:$0xff] }
 0x261   :  { %4823 = vmatprep.subr.bf16.mxu0 %v5997_v30  ;;  %v439_v30 = vld [vmem:[#allocation2 + $0xa38] sm:$0xff] }
 0x262   :  { %3848 = vmatpush1.bf16.msra.mxu1 %v5364_v31  ;;  %v5460_v31 = vcombine.low %v427_v22, %v431_v25  ;;  %v644_v22 = vsub.s32 4, %v6509_v3  ;;  %v640_v25 = vsub.s32 3, %v6509_v3 }
 0x263   :  { %3849 = vmatprep.subr.bf16.mxu1 %v5373_v62  ;;  %v5469_v62 = vcombine.high %v435_v29, %v439_v30 }
 0x264   :  { %4824 = vmatpush1.bf16.msra.mxu0 %v5995_v21  ;;  %v5468_v21 = vcombine.low %v435_v29, %v439_v30  ;;  %v547_v29 = vld [vmem:[#allocation2 + $0xd98] sm:$0xff] }
 0x265   :  { %4825 = vmatprep.subr.bf16.mxu0 %v6000_v35  ;;  %v5477_v35 = vcombine.high %v443_v32, %v447_v34  ;;  %v551_v30 = vld [vmem:[#allocation2 + $0xdb8] sm:$0xff] }
 0x266   :  { %3850 = vmatpush1.bf16.msra.mxu1 %v5372_v13  ;;  %v451_v13 = vld [vmem:[#allocation2 + $0xa98] sm:$0xff] }
 0x267   :  { %3851 = vmatprep.subr.bf16.mxu1 %v5381_v36  ;;  %v455_v36 = vld [vmem:[#allocation2 + $0xab8] sm:$0xff] }
 0x268   :  { %4826 = vmatpush1.bf16.msra.mxu0 %v5998_v38  ;;  %v5485_v59 = vcombine.high %v451_v13, %v455_v36  ;;  %v459_v38 = vld [vmem:[#allocation2 + $0xad8] sm:$0xff] }
 0x269   :  { %4827 = vmatprep.subr.bf16.mxu0 %v6003_v39  ;;  %v463_v39 = vld [vmem:[#allocation2 + $0xaf8] sm:$0xff] }
 0x26a   :  { %3852 = vmatpush1.bf16.msra.mxu1 %v5380_v40  ;;  %v5484_v40 = vcombine.low %v451_v13, %v455_v36  ;;  %v5581_v13 = vcombine.high %v547_v29, %v551_v30 }
 0x26b   :  { %3853 = vmatprep.subr.bf16.mxu1 %v5389_v41  ;;  %v5493_v41 = vcombine.high %v459_v38, %v463_v39 }
 0x26c   :  { %4828 = vmatpush1.bf16.msra.mxu0 %v6001_v44  ;;  %v5492_v44 = vcombine.low %v459_v38, %v463_v39 }
 0x26d   :  { %4829 = vmatprep.subr.bf16.mxu0 %v6006_v45  ;;  %v5501_v45 = vcombine.high %v467_v42, %v471_v43 }
 0x26e   :  { %3854 = vmatpush1.bf16.msra.mxu1 %v5388_v47  ;;  %v475_v47 = vld [vmem:[#allocation2 + $0xb58] sm:$0xff] }
 0x26f   :  { %3855 = vmatprep.subr.bf16.mxu1 %v5397_v49  ;;  %v479_v49 = vld [vmem:[#allocation2 + $0xb78] sm:$0xff] }
 0x270   :  { %4830 = vmatpush1.bf16.msra.mxu0 %v6004_v51  ;;  %v5509_v17 = vcombine.high %v475_v47, %v479_v49  ;;  %v483_v51 = vld [vmem:[#allocation2 + $0xb98] sm:$0xff] }
 0x271   :  { %4831 = vmatprep.subr.bf16.mxu0 %v6009_v52  ;;  %v487_v52 = vld [vmem:[#allocation2 + $0xbb8] sm:$0xff] }
 0x272   :  { %3856 = vmatpush1.bf16.msra.mxu1 %v5396_v55  ;;  %v5508_v55 = vcombine.low %v475_v47, %v479_v49 }
 0x273   :  { %3868 = vmatprep.subr.bf16.mxu1 %v5405_v56  ;;  %v5517_v56 = vcombine.high %v483_v51, %v487_v52 }
 0x274   :  { %4832 = vmatpush1.bf16.msra.mxu0 %v6007_v23  ;;  %v5516_v23 = vcombine.low %v483_v51, %v487_v52 }
 0x275   :  { %3858 = vmatmul.mubr.bf16.vlgmr.msra.gmra.mrb[8].mxu1 %v6487_v46  ;;  %4844 = vmatprep.subr.bf16.mxu0 %v6012_v24  ;;  %v411_v46 = vld [vmem:[#allocation2 + $0x958] sm:$0xff]  ;;  %v5525_v24 = vcombine.high %v491_v58, %v495_v57 }
 0x276   :  { %3869 = vmatpush1.bf16.msra.mxu1 %v5404_v53  ;;  %3900 = vmatprep.mubr.bf16.mxu1 %v6442_v0  ;;  %v5445_v0 = vcombine.high %v411_v46, %v415_v12  ;;  %v5444_v19 = vcombine.low %v411_v46, %v415_v12  ;;  %v499_v53 = vld [vmem:[#allocation2 + $0xc18] sm:$0xff] }
 0x277   :  { %3870 = vmatprep.subr.bf16.mxu1 %v5413_v54  ;;  %v503_v54 = vld [vmem:[#allocation2 + $0xc38] sm:$0xff] }
 0x278   :  { %v5533_v61 = vcombine.high %v499_v53, %v503_v54  ;;  %v5532_v2 = vcombine.low %v499_v53, %v503_v54  ;;  %v563_v57 = vld [vmem:[#allocation2 + $0xe18] sm:$0xff] }
 0x27a   :  { %3871 = vmatpush1.bf16.msra.mxu1 %v5412_v63  ;;  %v507_v63 = vld [vmem:[#allocation2 + $0xc58] sm:$0xff] }
 0x27b   :  { %3872 = vmatprep.subr.bf16.mxu1 %v5421_v1  ;;  %v511_v1 = vld [vmem:[#allocation2 + $0xc78] sm:$0xff] }
 0x27c   :  { %v5541_v4 = vcombine.high %v507_v63, %v511_v1  ;;  %v5540_v7 = vcombine.low %v507_v63, %v511_v1 }
 0x27e   :  { %3873 = vmatpush1.bf16.msra.mxu1 %v5420_v5  ;;  %v515_v5 = vld [vmem:[#allocation2 + $0xc98] sm:$0xff] }
 0x27f   :  { %3874 = vmatprep.subr.bf16.mxu1 %v5429_v6  ;;  %v519_v6 = vld [vmem:[#allocation2 + $0xcb8] sm:$0xff] }
 0x280   :  { %v5549_v8 = vcombine.high %v515_v5, %v519_v6  ;;  %v5548_v46 = vcombine.low %v515_v5, %v519_v6 }
 0x282   :  { %3875 = vmatpush1.bf16.msra.mxu1 %v5428_v9  ;;  %v523_v9 = vld [vmem:[#allocation2 + $0xcd8] sm:$0xff] }
 0x283   :  { %3876 = vmatprep.subr.bf16.mxu1 %v5437_v11  ;;  %v527_v11 = vld [vmem:[#allocation2 + $0xcf8] sm:$0xff] }
 0x284   :  { %v5557_v12 = vcombine.high %v523_v9, %v527_v11  ;;  %v5556_v16 = vcombine.low %v523_v9, %v527_v11  ;;  %v6010_v9 = vld [vmem:[#allocation7 + $0x200] ss:$8 sps:$4 sm:$0xff]   ;;  %v571_v11 = vld [vmem:[#allocation2 + $0xe58] sm:$0xff] }
 0x286   :  { %3877 = vmatpush1.bf16.msra.mxu1 %v5436_v14  ;;  %v531_v14 = vld [vmem:[#allocation2 + $0xd18] sm:$0xff] }
 0x287   :  { %3878 = vmatprep.subr.bf16.mxu1 %v5445_v0  ;;  %v535_v0 = vld [vmem:[#allocation2 + $0xd38] sm:$0xff] }
 0x288   :  { %v5565_v18 = vcombine.high %v531_v14, %v535_v0 }
 0x28a   :  { %3879 = vmatpush1.bf16.msra.mxu1 %v5444_v19  ;;  %v539_v19 = vld [vmem:[#allocation2 + $0xd58] sm:$0xff] }
 0x28b   :  { %3880 = vmatprep.subr.bf16.mxu1 %v5453_v20  ;;  %v636_v20 = vsub.s32 2, %v6509_v3 }
 0x28e   :  { %3881 = vmatpush1.bf16.msra.mxu1 %v5452_v27  ;;  %v648_v27 = vsub.s32 5, %v6509_v3 }
 0x28f   :  { %3882 = vmatprep.subr.bf16.mxu1 %v5461_v28 }
 0x292   :  { %3883 = vmatpush1.bf16.msra.mxu1 %v5460_v31  ;;  %v6536_v31 = vld [vmem:[#allocation5] sm:$0xff] }
 0x293   :  { %3884 = vmatprep.subr.bf16.mxu1 %v5469_v62  ;;  %v637_v62 = vrot.slane %v6536_v31, %v636_v20  ;;  %v645_v32 = vrot.slane %v6536_v31, %v644_v22  ;;  %v641_v34 = vrot.slane %v6536_v31, %v640_v25  ;;  %v6018_v20 = vld [vmem:[#allocation7 + $0x224] ss:$8 sps:$4 sm:$0xff]   ;;  %v6016_v25 = vld [vmem:[#allocation7 + $0x220] ss:$8 sps:$4 sm:$0xff]  }
 0x296   :  { %3885 = vmatpush1.bf16.msra.mxu1 %v5468_v21 }
 0x297   :  { %3886 = vmatprep.subr.bf16.mxu1 %v5477_v35  ;;  %v649_v35 = vrot.slane %v6536_v31, %v648_v27  ;;  %v587_v27 = vld [vmem:[#allocation2 + $0xed8] sm:$0xff] }
 0x29a   :  { %3887 = vmatpush1.bf16.msra.mxu1 %v5476_v37  ;;  %v555_v37 = vld [vmem:[#allocation2 + $0xdd8] sm:$0xff] }
 0x29b   :  { %3888 = vmatprep.subr.bf16.mxu1 %v5485_v59  ;;  %v559_v59 = vld [vmem:[#allocation2 + $0xdf8] sm:$0xff] }
 0x29c   :  { %v5589_v51 = vcombine.high %v555_v37, %v559_v59 }
 0x29e   :  { %3889 = vmatpush1.bf16.msra.mxu1 %v5484_v40 }
 0x29f   :  { %3890 = vmatprep.subr.bf16.mxu1 %v5493_v41 }
 0x2a2   :  { %3891 = vmatpush1.bf16.msra.mxu1 %v5492_v44 }
 0x2a3   :  { %3892 = vmatprep.subr.bf16.mxu1 %v5501_v45  ;;  %v5580_v45 = vcombine.low %v547_v29, %v551_v30  ;;  %v6021_v29 = vld [vmem:[#allocation7 + $0x234] ss:$8 sps:$4 sm:$0xff]  }
 0x2a6   :  { %3893 = vmatpush1.bf16.msra.mxu1 %v5500_v50 }
 0x2a7   :  { %3894 = vmatprep.subr.bf16.mxu1 %v5509_v17 }
 0x2aa   :  { %3895 = vmatpush1.bf16.msra.mxu1 %v5508_v55 }
 0x2ab   :  { %3896 = vmatprep.subr.bf16.mxu1 %v5517_v56 }
 0x2ae   :  { %3897 = vmatpush1.bf16.msra.mxu1 %v5516_v23  ;;  %v567_v23 = vld [vmem:[#allocation2 + $0xe38] sm:$0xff] }
 0x2af   :  { %3898 = vmatprep.subr.bf16.mxu1 %v5525_v24  ;;  %v5597_v6 = vcombine.high %v563_v57, %v567_v23 }
 0x2b2   :  { %3899 = vmatpush1.bf16.msra.mxu1 %v5524_v60 }
 0x2b3   :  { %3911 = vmatprep.subr.bf16.mxu1 %v5533_v61 }
 0x2b5   :  { %3901 = vmatmul.mubr.bf16.vlgmr.msra.gmra.mrb[8].mxu1 %v6461_v26  ;;  %v543_v26 = vld [vmem:[#allocation2 + $0xd78] sm:$0xff] }
 0x2b6   :  { %3912 = vmatpush1.bf16.msra.mxu1 %v5532_v2  ;;  %3943 = vmatprep.mubr.bf16.mxu1 %v6480_v33  ;;  %v5564_v33 = vcombine.low %v531_v14, %v535_v0  ;;  %v5573_v28 = vcombine.high %v539_v19, %v543_v26  ;;  %v5572_v21 = vcombine.low %v539_v19, %v543_v26  ;;  %v6015_v14 = vld [vmem:[#allocation7 + $0x214] ss:$8 sps:$4 sm:$0xff]  }
 0x2b7   :  { %3913 = vmatprep.subr.bf16.mxu1 %v5541_v4  ;;  %v5588_v2 = vcombine.low %v555_v37, %v559_v59  ;;  %v5596_v0 = vcombine.low %v563_v57, %v567_v23  ;;  %v579_v19 = vld [vmem:[#allocation2 + $0xe98] sm:$0xff]  ;;  %v6022_v37 = vld [vmem:[#allocation7 + $0x240] ss:$8 sps:$4 sm:$0xff]   ;;  %v6036_v57 = vld [vmem:[#allocation7 + $0x284] ss:$8 sps:$4 sm:$0xff]  }
 0x2b8   :  { %v583_v26 = vld [vmem:[#allocation2 + $0xeb8] sm:$0xff] }
 0x2b9   :  { %v5613_v22 = vcombine.high %v579_v19, %v583_v26  ;;  %v5612_v30 = vcombine.low %v579_v19, %v583_v26  ;;  %v603_v59 = vld [vmem:[#allocation2 + $0xf58] sm:$0xff] }
 0x2ba   :  { %3914 = vmatpush1.bf16.msra.mxu1 %v5540_v7  ;;  %v6069_v19 = vld [vmem:[#allocation7 + $0x334] ss:$8 sps:$4 sm:$0xff]   ;;  %v6067_v26 = vld [vmem:[#allocation7 + $0x330] ss:$8 sps:$4 sm:$0xff]  }
 0x2bb   :  { %3915 = vmatprep.subr.bf16.mxu1 %v5549_v8 }
 0x2be   :  { %3916 = vmatpush1.bf16.msra.mxu1 %v5548_v46  ;;  %v575_v46 = vld [vmem:[#allocation2 + $0xe78] sm:$0xff] }
 0x2bf   :  { %3917 = vmatprep.subr.bf16.mxu1 %v5557_v12 }
 0x2c2   :  { %3918 = vmatpush1.bf16.msra.mxu1 %v5556_v16  ;;  %v5605_v16 = vcombine.high %v571_v11, %v575_v46 }
 0x2c3   :  { %3919 = vmatprep.subr.bf16.mxu1 %v5565_v18  ;;  %v6013_v18 = vld [vmem:[#allocation7 + $0x210] ss:$8 sps:$4 sm:$0xff]  }
 0x2c6   :  { %3920 = vmatpush1.bf16.msra.mxu1 %v5564_v33  ;;  %v5604_v33 = vcombine.low %v571_v11, %v575_v46  ;;  %v6055_v11 = vld [vmem:[#allocation7 + $0x2f0] ss:$8 sps:$4 sm:$0xff]   ;;  %v6060_v46 = vld [vmem:[#allocation7 + $0x304] ss:$8 sps:$4 sm:$0xff]  }
 0x2c7   :  { %3921 = vmatprep.subr.bf16.mxu1 %v5573_v28  ;;  %v591_v28 = vld [vmem:[#allocation2 + $0xef8] sm:$0xff] }
 0x2c8   :  { %v3601_v36 = vpop.f32.mrb[4].mxu1 }
 0x2c9   :  { %v5829_v38 = vadd.f32 %v3601_v36, %v637_v62  ;;  %v3603_v40 = vpop.f32.mrb[5].mxu1 }
 0x2ca   :  { %v3773_v39 = vpop.f32.mrb[4].mxu0  ;;  %v5830_v42 = vadd.f32 %v3603_v40, %v641_v34  ;;  %v3605_v44 = vpop.f32.mrb[6].mxu1  ;;  %3922 = vmatpush1.bf16.msra.mxu1 %v5572_v21  ;;  %v599_v21 = vld [vmem:[#allocation2 + $0xf38] sm:$0xff] }
 0x2cb   :  { %v5833_v41 = vadd.f32 %v3773_v39, %v645_v32  ;;  %v3775_v43 = vpop.f32.mrb[5].mxu0  ;;  %v5831_v49 = vadd.f32 %v3605_v44, %v637_v62  ;;  %v3607_v17 = vpop.f32.mrb[7].mxu1  ;;  %3923 = vmatprep.subr.bf16.mxu1 %v5581_v13  ;;  %v3956_v24 = vmax.f32 %v5829_v38, 0.0  ;;  %v5621_v62 = vcombine.high %v587_v27, %v591_v28  ;;  %v607_v38 = vld [vmem:[#allocation2 + $0xf78] sm:$0xff] }
 0x2cc   :  { %v5834_v47 = vadd.f32 %v3775_v43, %v649_v35  ;;  %v3777_v50 = vpop.f32.mrb[6].mxu0  ;;  %v5832_v56 = vadd.f32 %v3607_v17, %v641_v34  ;;  %v3957_v61 = vmax.f32 %v5830_v42, 0.0  ;;  %v595_v34 = vld [vmem:[#allocation2 + $0xf18] sm:$0xff]  ;;  %v5620_v13 = vcombine.low %v587_v27, %v591_v28  ;;  %v6076_v27 = vld [vmem:[#allocation7 + $0x360] ss:$8 sps:$4 sm:$0xff]  }
 0x2cd   :  { %v3958_v52 = vmax.f32 %v5833_v41, 0.0  ;;  %v5835_v55 = vadd.f32 %v3777_v50, %v645_v32  ;;  %v3779_v58 = vpop.f32.mrb[7].mxu0  ;;  %v3964_v54 = vmax.f32 %v5831_v49, 0.0  ;;  %v6019_v32 = vld [vmem:[#allocation7 + $0x230] ss:$8 sps:$4 sm:$0xff]   ;;  %v5629_v36 = vcombine.high %v595_v34, %v599_v21 }
 0x2ce   :  { %v3959_v53 = vmax.f32 %v5834_v47, 0.0  ;;  %v5836_v60 = vadd.f32 %v3779_v58, %v649_v35  ;;  %v3965_v1 = vmax.f32 %v5832_v56, 0.0  ;;  %3924 = vmatpush1.bf16.msra.mxu1 %v5580_v45  ;;  %v6024_v35 = vld [vmem:[#allocation7 + $0x244] ss:$8 sps:$4 sm:$0xff]   ;;  %v6027_v39 = vld [vmem:[#allocation7 + $0x254] ss:$8 sps:$4 sm:$0xff]   ;;  %v5628_v40 = vcombine.low %v595_v34, %v599_v21 }
 0x2cf   :  { %v3966_v63 = vmax.f32 %v5835_v55, 0.0  ;;  %v3972_v4 = vpack.c.bf16 %v3964_v54, %v3956_v24  ;;  %3925 = vmatprep.subr.bf16.mxu1 %v5589_v51  ;;  %v5637_v41 = vcombine.high %v603_v59, %v607_v38  ;;  %v6025_v42 = vld [vmem:[#allocation7 + $0x250] ss:$8 sps:$4 sm:$0xff]   ;;  %v6030_v45 = vld [vmem:[#allocation7 + $0x264] ss:$8 sps:$4 sm:$0xff]   ;;  %v5636_v47 = vcombine.low %v603_v59, %v607_v38 }
 0x2d0   :  { %v3967_v5 = vmax.f32 %v5836_v60, 0.0  ;;  %v3973_v8 = vpack.c.bf16 %v3965_v1, %v3957_v61  ;;  %v611_v43 = vld [vmem:[#allocation2 + $0xf98] sm:$0xff]  ;;  %v6028_v50 = vld [vmem:[#allocation7 + $0x260] ss:$8 sps:$4 sm:$0xff]   ;;  %v6042_v60 = vld [vmem:[#allocation7 + $0x2a4] ss:$8 sps:$4 sm:$0xff]  }
 0x2d1   :  { %v6542_v7 = vpack.c.bf16 %v3966_v63, %v3958_v52  ;;  %v615_v44 = vld [vmem:[#allocation2 + $0xfb8] sm:$0xff]  ;;  %v6034_v24 = vld [vmem:[#allocation7 + $0x280] ss:$8 sps:$4 sm:$0xff]   ;;  %v6090_v21 = vld [vmem:[#allocation7 + $0x3a4] ss:$8 sps:$4 sm:$0xff]  }
 0x2d2   :  { %v3975_v12 = vpack.c.bf16 %v3967_v5, %v3959_v53  ;;  %3926 = vmatpush1.bf16.msra.mxu1 %v5588_v2  ;;  %4833 = vmatprep.mubr.bf16.mxu0 %v3973_v8  ;;  %v5645_v49 = vcombine.high %v611_v43, %v615_v44  ;;  %v619_v17 = vld [vmem:[#allocation2 + $0xfd8] sm:$0xff]  ;;  %v5644_v55 = vcombine.low %v611_v43, %v615_v44  ;;  %v6040_v61 = vld [vmem:[#allocation7 + $0x2a0] ss:$8 sps:$4 sm:$0xff]   ;;  %v6048_v2 = vld [vmem:[#allocation7 + $0x2c4] ss:$8 sps:$4 sm:$0xff]  }
 0x2d3   :  { %4834 = vmatmul.mubr.bf16.vlgmr.msra.gmra.mrb[8].mxu0 %v3972_v4  ;;  %3927 = vmatprep.subr.bf16.mxu1 %v5597_v6  ;;  %v623_v51 = vld [vmem:[#allocation2 + $0xff8] sm:$0xff]  ;;  %v6046_v4 = vld [vmem:[#allocation7 + $0x2c0] ss:$8 sps:$4 sm:$0xff]   ;;  %v6054_v8 = vld [vmem:[#allocation7 + $0x2e4] ss:$8 sps:$4 sm:$0xff]  }
 0x2d4   :  { %4845 = vmatpush1.bf16.msra.mxu0 %v6010_v9  ;;  %4876 = vmatprep.mubr.bf16.mxu0 %v3975_v12  ;;  %v6033_v52 = vld [vmem:[#allocation7 + $0x274] ss:$8 sps:$4 sm:$0xff]   ;;  %v5653_v56 = vcombine.high %v619_v17, %v623_v51  ;;  %v6031_v58 = vld [vmem:[#allocation7 + $0x270] ss:$8 sps:$4 sm:$0xff]   ;;  %v5652_v23 = vcombine.low %v619_v17, %v623_v51  ;;  %v6058_v12 = vld [vmem:[#allocation7 + $0x300] ss:$8 sps:$4 sm:$0xff]  }
 0x2d5   :  { %4846 = vmatprep.subr.bf16.mxu0 %v6015_v14  ;;  %v6039_v53 = vld [vmem:[#allocation7 + $0x294] ss:$8 sps:$4 sm:$0xff]   ;;  %v6037_v54 = vld [vmem:[#allocation7 + $0x290] ss:$8 sps:$4 sm:$0xff]   ;;  %v6094_v59 = vld [vmem:[#allocation7 + $0x3c0] ss:$8 sps:$4 sm:$0xff]  }
 0x2d6   :  { %3928 = vmatpush1.bf16.msra.mxu1 %v5596_v0  ;;  %v6045_v63 = vld [vmem:[#allocation7 + $0x2b4] ss:$8 sps:$4 sm:$0xff]   ;;  %v6043_v1 = vld [vmem:[#allocation7 + $0x2b0] ss:$8 sps:$4 sm:$0xff]   ;;  %v6106_v44 = vld [vmem:[#allocation10 + $0x40] sm:$0xff]  }
 0x2d7   :  { %3929 = vmatprep.subr.bf16.mxu1 %v5605_v16  ;;  %v6051_v5 = vld [vmem:[#allocation7 + $0x2d4] ss:$8 sps:$4 sm:$0xff]   ;;  %v6049_v6 = vld [vmem:[#allocation7 + $0x2d0] ss:$8 sps:$4 sm:$0xff]   ;;  %v6066_v16 = vld [vmem:[#allocation7 + $0x324] ss:$8 sps:$4 sm:$0xff]  }
 0x2d8   :  { %4847 = vmatpush1.bf16.msra.mxu0 %v6013_v18  ;;  %v6057_v9 = vld [vmem:[#allocation7 + $0x2f4] ss:$8 sps:$4 sm:$0xff]   ;;  %v6061_v0 = vld [vmem:[#allocation7 + $0x310] ss:$8 sps:$4 sm:$0xff]   ;;  %v6064_v18 = vld [vmem:[#allocation7 + $0x320] ss:$8 sps:$4 sm:$0xff]  }
 0x2d9   :  { %4848 = vmatprep.subr.bf16.mxu0 %v6018_v20  ;;  %v6063_v14 = vld [vmem:[#allocation7 + $0x314] ss:$8 sps:$4 sm:$0xff]   ;;  %v6072_v20 = vld [vmem:[#allocation7 + $0x344] ss:$8 sps:$4 sm:$0xff]   ;;  %v6085_v34 = vld [vmem:[#allocation7 + $0x390] ss:$8 sps:$4 sm:$0xff]  }
 0x2da   :  { %3930 = vmatpush1.bf16.msra.mxu1 %v5604_v33  ;;  %v6070_v33 = vld [vmem:[#allocation7 + $0x340] ss:$8 sps:$4 sm:$0xff]   ;;  %v6081_v28 = vld [vmem:[#allocation7 + $0x374] ss:$8 sps:$4 sm:$0xff]   ;;  %v6103_v43 = vld [vmem:[#allocation7 + $0x3f0] ss:$8 sps:$4 sm:$0xff]  }
 0x2db   :  { %3931 = vmatprep.subr.bf16.mxu1 %v5613_v22  ;;  %v6075_v22 = vld [vmem:[#allocation7 + $0x354] ss:$8 sps:$4 sm:$0xff]  }
 0x2dc   :  { %4849 = vmatpush1.bf16.msra.mxu0 %v6016_v25  ;;  %v6073_v25 = vld [vmem:[#allocation7 + $0x350] ss:$8 sps:$4 sm:$0xff]   ;;  %v6099_v38 = vld [vmem:[#allocation7 + $0x3d4] ss:$8 sps:$4 sm:$0xff]  }
 0x2dd   :  { %4850 = vmatprep.subr.bf16.mxu0 %v6021_v29  ;;  %v6079_v29 = vld [vmem:[#allocation7 + $0x370] ss:$8 sps:$4 sm:$0xff]  }
 0x2de   :  { %3932 = vmatpush1.bf16.msra.mxu1 %v5612_v30  ;;  %v6084_v30 = vld [vmem:[#allocation7 + $0x384] ss:$8 sps:$4 sm:$0xff]   ;;  %v6111_v17 = vld [vmem:[#allocation10 + $0x10] sm:$0xff]   ;;  %v6112_v51 = vld [vmem:[#allocation10 + $0x58] sm:$0xff]  }
 0x2df   :  { %3933 = vmatprep.subr.bf16.mxu1 %v5621_v62  ;;  %v6082_v62 = vld [vmem:[#allocation7 + $0x380] ss:$8 sps:$4 sm:$0xff]  }
 0x2e0   :  { %4851 = vmatpush1.bf16.msra.mxu0 %v6019_v32  ;;  %v6087_v32 = vld [vmem:[#allocation7 + $0x394] ss:$8 sps:$4 sm:$0xff]  }
 0x2e1   :  { %4852 = vmatprep.subr.bf16.mxu0 %v6024_v35  ;;  %v6088_v35 = vld [vmem:[#allocation7 + $0x3a0] ss:$8 sps:$4 sm:$0xff]  }
 0x2e2   :  { %3934 = vmatpush1.bf16.msra.mxu1 %v5620_v13  ;;  %v6093_v13 = vld [vmem:[#allocation7 + $0x3b4] ss:$8 sps:$4 sm:$0xff]  }
 0x2e3   :  { %3935 = vmatprep.subr.bf16.mxu1 %v5629_v36  ;;  %v6091_v36 = vld [vmem:[#allocation7 + $0x3b0] ss:$8 sps:$4 sm:$0xff]  }
 0x2e4   :  { %4853 = vmatpush1.bf16.msra.mxu0 %v6022_v37  ;;  %v6096_v37 = vld [vmem:[#allocation7 + $0x3c4] ss:$8 sps:$4 sm:$0xff]  }
 0x2e5   :  { %4854 = vmatprep.subr.bf16.mxu0 %v6027_v39  ;;  %v6097_v39 = vld [vmem:[#allocation7 + $0x3d0] ss:$8 sps:$4 sm:$0xff]  }
 0x2e6   :  { %3936 = vmatpush1.bf16.msra.mxu1 %v5628_v40  ;;  %v6102_v40 = vld [vmem:[#allocation7 + $0x3e4] ss:$8 sps:$4 sm:$0xff]  }
 0x2e7   :  { %3937 = vmatprep.subr.bf16.mxu1 %v5637_v41  ;;  %v6100_v41 = vld [vmem:[#allocation7 + $0x3e0] ss:$8 sps:$4 sm:$0xff]  }
 0x2e8   :  { %4855 = vmatpush1.bf16.msra.mxu0 %v6025_v42  ;;  %v6105_v42 = vld [vmem:[#allocation7 + $0x3f4] ss:$8 sps:$4 sm:$0xff]  }
 0x2e9   :  { %4856 = vmatprep.subr.bf16.mxu0 %v6030_v45  ;;  %v6107_v45 = vld [vmem:[#allocation10] sm:$0xff]  }
 0x2ea   :  { %3938 = vmatpush1.bf16.msra.mxu1 %v5636_v47  ;;  %v6108_v47 = vld [vmem:[#allocation10 + $0x48] sm:$0xff]  }
 0x2eb   :  { %3939 = vmatprep.subr.bf16.mxu1 %v5645_v49  ;;  %v6109_v49 = vld [vmem:[#allocation10 + $0x8] sm:$0xff]  }
 0x2ec   :  { %4857 = vmatpush1.bf16.msra.mxu0 %v6028_v50  ;;  %v6110_v50 = vld [vmem:[#allocation10 + $0x50] sm:$0xff]  }
 0x2ed   :  { %4858 = vmatprep.subr.bf16.mxu0 %v6033_v52  ;;  %v6113_v52 = vld [vmem:[#allocation10 + $0x18] sm:$0xff]  }
 0x2ee   :  { %3940 = vmatpush1.bf16.msra.mxu1 %v5644_v55  ;;  %v6114_v55 = vld [vmem:[#allocation10 + $0x60] sm:$0xff]  }
 0x2ef   :  { %3941 = vmatprep.subr.bf16.mxu1 %v5653_v56  ;;  %v6115_v56 = vld [vmem:[#allocation10 + $0x20] sm:$0xff]  }
 0x2f0   :  { %4859 = vmatpush1.bf16.msra.mxu0 %v6031_v58  ;;  %v6116_v58 = vld [vmem:[#allocation10 + $0x68] sm:$0xff]  }
 0x2f1   :  { %4860 = vmatprep.subr.bf16.mxu0 %v6036_v57  ;;  %v652_v57 = vsub.s32 6, %v6509_v3 }
 0x2f2   :  { %3942 = vmatpush1.bf16.msra.mxu1 %v5652_v23  ;;  %v656_v23 = vsub.s32 7, %v6509_v3 }
 0x2f3   :  { %5799 = vmatprep.subr.bf16.mxu1 %v6106_v44 }
 0x2f4   :  { %4861 = vmatpush1.bf16.msra.mxu0 %v6034_v24  ;;  %v653_v24 = vrot.slane %v6536_v31, %v652_v57 }
 0x2f5   :  { %3944 = vmatmul.mubr.bf16.vlgmr.msra.gmra.mrb[8].mxu1 %v6491_v48  ;;  %4862 = vmatprep.subr.bf16.mxu0 %v6039_v53  ;;  %v6052_v48 = vld [vmem:[#allocation7 + $0x2e0] ss:$8 sps:$4 sm:$0xff]   ;;  %v657_v53 = vrot.slane %v6536_v31, %v656_v23  ;;  %v6119_v31 = vld [vmem:[#allocation10 + $0x30] sm:$0xff]  }
 0x2f6   :  { %5800 = vmatpush3.bf16.msra.mxu1 %v6107_v45 }
 0x2f7   :  { %5801 = vmatprep.subr.bf16.mxu1 %v6108_v47 }
 0x2f8   :  { %4863 = vmatpush1.bf16.msra.mxu0 %v6037_v54 }
 0x2f9   :  { %4864 = vmatprep.subr.bf16.mxu0 %v6042_v60 }
 0x2fa   :  { %5802 = vmatpush3.bf16.msra.mxu1 %v6109_v49 }
 0x2fb   :  { %5803 = vmatprep.subr.bf16.mxu1 %v6110_v50 }
 0x2fc   :  { %4865 = vmatpush1.bf16.msra.mxu0 %v6040_v61 }
 0x2fd   :  { %4866 = vmatprep.subr.bf16.mxu0 %v6045_v63 }
 0x2fe   :  { %5804 = vmatpush3.bf16.msra.mxu1 %v6111_v17 }
 0x2ff   :  { %5805 = vmatprep.subr.bf16.mxu1 %v6112_v51 }
 0x300   :  { %4867 = vmatpush1.bf16.msra.mxu0 %v6043_v1 }
 0x301   :  { %4868 = vmatprep.subr.bf16.mxu0 %v6048_v2 }
 0x302   :  { %5806 = vmatpush3.bf16.msra.mxu1 %v6113_v52 }
 0x303   :  { %5807 = vmatprep.subr.bf16.mxu1 %v6114_v55 }
 0x304   :  { %4869 = vmatpush1.bf16.msra.mxu0 %v6046_v4 }
 0x305   :  { %4870 = vmatprep.subr.bf16.mxu0 %v6051_v5 }
 0x306   :  { %5808 = vmatpush3.bf16.msra.mxu1 %v6115_v56 }
 0x307   :  { %5809 = vmatprep.subr.bf16.mxu1 %v6116_v58 }
 0x308   :  { %4871 = vmatpush1.bf16.msra.mxu0 %v6049_v6 }
 0x309   :  { %4872 = vmatprep.subr.bf16.mxu0 %v6054_v8 }
 0x30c   :  { %4873 = vmatpush1.bf16.msra.mxu0 %v6052_v48 }
 0x30d   :  { %4874 = vmatprep.subr.bf16.mxu0 %v6057_v9 }
 0x310   :  { %4875 = vmatpush1.bf16.msra.mxu0 %v6055_v11 }
 0x311   :  { %4887 = vmatprep.subr.bf16.mxu0 %v6060_v46 }
 0x313   :  { %4877 = vmatmul.mubr.bf16.vlgmr.msra.gmra.mrb[8].mxu0 %v6542_v7  ;;  %v6078_v7 = vld [vmem:[#allocation7 + $0x364] ss:$8 sps:$4 sm:$0xff]  }
 0x314   :  { %4888 = vmatpush1.bf16.msra.mxu0 %v6058_v12  ;;  %v6117_v12 = vld [vmem:[#allocation10 + $0x28] sm:$0xff]  }
 0x315   :  { %4889 = vmatprep.subr.bf16.mxu0 %v6063_v14  ;;  %5810 = vmatpush3.bf16.msra.mxu1 %v6117_v12  ;;  %v6118_v14 = vld [vmem:[#allocation10 + $0x70] sm:$0xff]  }
 0x316   :  { %5811 = vmatprep.subr.bf16.mxu1 %v6118_v14 }
 0x318   :  { %4890 = vmatpush1.bf16.msra.mxu0 %v6061_v0  ;;  %v6120_v0 = vld [vmem:[#allocation10 + $0x78] sm:$0xff]  }
 0x319   :  { %4891 = vmatprep.subr.bf16.mxu0 %v6066_v16  ;;  %5812 = vmatpush3.bf16.msra.mxu1 %v6119_v31  ;;  %v6121_v16 = vld [vmem:[#allocation10 + $0x38] sm:$0xff]  }
 0x31a   :  { %5813 = vmatprep.subr.bf16.mxu1 %v6120_v0 }
 0x31c   :  { %4892 = vmatpush1.bf16.msra.mxu0 %v6064_v18  ;;  %v4106_v18 = vld [vmem:[#allocation8] sm:$0x3] }
 0x31d   :  { %4893 = vmatprep.subr.bf16.mxu0 %v6069_v19  ;;  %5814 = vmatpush3.bf16.msra.mxu1 %v6121_v16  ;;  %v4111_v19 = vrot.slane %v4106_v18, %v628_v10 }
 0x320   :  { %4894 = vmatpush1.bf16.msra.mxu0 %v6067_v26  ;;  %v4115_v26 = vrot.slane %v4106_v18, %v632_v15 }
 0x321   :  { %4895 = vmatprep.subr.bf16.mxu0 %v6072_v20 }
 0x324   :  { %4896 = vmatpush1.bf16.msra.mxu0 %v6070_v33 }
 0x325   :  { %4897 = vmatprep.subr.bf16.mxu0 %v6075_v22 }
 0x328   :  { %4898 = vmatpush1.bf16.msra.mxu0 %v6073_v25 }
 0x329   :  { %4899 = vmatprep.subr.bf16.mxu0 %v6078_v7 }
 0x32c   :  { %4900 = vmatpush1.bf16.msra.mxu0 %v6076_v27 }
 0x32d   :  { %4901 = vmatprep.subr.bf16.mxu0 %v6081_v28 }
 0x330   :  { %4902 = vmatpush1.bf16.msra.mxu0 %v6079_v29 }
 0x331   :  { %4903 = vmatprep.subr.bf16.mxu0 %v6084_v30 }
 0x334   :  { %4904 = vmatpush1.bf16.msra.mxu0 %v6082_v62 }
 0x335   :  { %4905 = vmatprep.subr.bf16.mxu0 %v6087_v32 }
 0x338   :  { %4906 = vmatpush1.bf16.msra.mxu0 %v6085_v34 }
 0x339   :  { %4907 = vmatprep.subr.bf16.mxu0 %v6090_v21 }
 0x33c   :  { %4908 = vmatpush1.bf16.msra.mxu0 %v6088_v35 }
 0x33d   :  { %4909 = vmatprep.subr.bf16.mxu0 %v6093_v13  ;;  %v5782_v13 = vld [vmem:[#allocation11] ss:$0 sm:$0xff] }
 0x340   :  { %4910 = vmatpush1.bf16.msra.mxu0 %v6091_v36 }
 0x341   :  { %4911 = vmatprep.subr.bf16.mxu0 %v6096_v37 }
 0x344   :  { %4912 = vmatpush1.bf16.msra.mxu0 %v6094_v59 }
 0x345   :  { %4913 = vmatprep.subr.bf16.mxu0 %v6099_v38 }
 0x348   :  { %4914 = vmatpush1.bf16.msra.mxu0 %v6097_v39 }
 0x349   :  { %4915 = vmatprep.subr.bf16.mxu0 %v6102_v40 }
 0x34c   :  { %4916 = vmatpush1.bf16.msra.mxu0 %v6100_v41 }
 0x34d   :  { %4917 = vmatprep.subr.bf16.mxu0 %v6105_v42 }
 0x350   :  { %4918 = vmatpush1.bf16.msra.mxu0 %v6103_v43 }
 0x3c8   :  { %v3945_v54 = vpop.f32.mrb[8].mxu1 }
 0x3c9   :  { %v5837_v60 = vadd.f32 %v3945_v54, %v653_v24  ;;  %v3947_v61 = vpop.f32.mrb[9].mxu1 }
 0x3ca   :  { %v5838_v63 = vadd.f32 %v3947_v61, %v657_v53  ;;  %v3949_v1 = vpop.f32.mrb[10].mxu1 }
 0x3cb   :  { %v5839_v2 = vadd.f32 %v3949_v1, %v653_v24  ;;  %v3951_v4 = vpop.f32.mrb[11].mxu1  ;;  %v3960_v6 = vmax.f32 %v5837_v60, 0.0 }
 0x3cc   :  { %v5840_v5 = vadd.f32 %v3951_v4, %v657_v53  ;;  %v3961_v48 = vmax.f32 %v5838_v63, 0.0 }
 0x3cd   :  { %v3968_v8 = vmax.f32 %v5839_v2, 0.0 }
 0x3ce   :  { %v3969_v9 = vmax.f32 %v5840_v5, 0.0 }
 0x3cf   :  { %v3976_v11 = vpack.c.bf16 %v3968_v8, %v3960_v6 }
 0x3d0   :  { %v3977_v46 = vpack.c.bf16 %v3969_v9, %v3961_v48 }
 0x3d2   :  { %4919 = vmatprep.mubr.bf16.mxu0 %v3977_v46 }
 0x3d3   :  { %4920 = vmatmul.mubr.bf16.vlgmr.msra.gmra.mrb[8].mxu0 %v3976_v11 }
 0x4a6   :  { %v4921_v20 = vpop.f32.mrb[8].mxu0 }
 0x4a7   :  { %v5841_v33 = vadd.f32 %v4921_v20, %v4111_v19  ;;  %v4923_v22 = vpop.f32.mrb[9].mxu0 }
 0x4a8   :  { %v5842_v25 = vadd.f32 %v4923_v22, %v4115_v26  ;;  %v4925_v7 = vpop.f32.mrb[10].mxu0 }
 0x4a9   :  { %v5843_v27 = vadd.f32 %v4925_v7, %v4111_v19  ;;  %v4927_v28 = vpop.f32.mrb[11].mxu0  ;;  %v4930_v30 = vmax.f32 %v5841_v33, 0.0 }
 0x4aa   :  { %v5844_v29 = vadd.f32 %v4927_v28, %v4115_v26  ;;  %v4931_v32 = vmax.f32 %v5842_v25, 0.0 }
 0x4ab   :  { %v4932_v62 = vmax.f32 %v5843_v27, 0.0 }
 0x4ac   :  { %v4933_v34 = vmax.f32 %v5844_v29, 0.0 }
 0x4ad   :  { %v4934_v21 = vpack.c.bf16 %v4932_v62, %v4930_v30 }
 0x4ae   :  { %v4935_v35 = vpack.c.bf16 %v4933_v34, %v4931_v32 }
 0x4b0   :  { %5103 = vmatprep.mubr.bf16.mxu1 %v4935_v35 }
 0x4b1   :  { %5104 = vmatmul.mubr.bf16.vlgmr.msra.gmra.mrb[12].mxu1 %v4934_v21 }
 0x584   :  { %v5815_v10 = vpop.f32.mrb[12].mxu1 }
 0x585   :  { %v5816_v3 = vpop.f32.mrb[13].mxu1 }
 0x586   :  { %v5817_v15 = vadd.f32 %v5816_v3, %v5815_v10  ;;  %v5818_v36 = vpop.f32.mrb[14].mxu1 }
 0x587   :  { %v5819_v37 = vpop.f32.mrb[15].mxu1 }
 0x588   :  { %v5106_v59 = vadd.f32 %v5817_v15, %v5782_v13  ;;  %v5820_v38 = vadd.f32 %v5819_v37, %v5818_v36 }
 0x58a   :  { %5112 = vst [vmem:[#allocation13] sm:$0xff] %v5106_v59  ;;  %v5109_v39 = vadd.f32 %v5820_v38, %v5782_v13 }
 0x58c   :  { %5113 = vst [vmem:[#allocation13 + $0x8] sm:$0xff] %v5109_v39 }
 0x58d   :  { %6266 = shalt.err (!%p6263_p10)
}
 0x58e   :  { %s6267_s21 = scalar_lea.hbm %s6576_s7, 256 }
 0x58f   :  { %p6268_p11 = scmp.ne.s32.totalorder %s6576_s7, %s6267_s21  ;;  %p6271_p12 = scmp.lt.u32.totalorder %s6267_s21, %s6576_s7 }
 0x591   :  { %p6273_p13 = pnand %p6271_p12, %p6268_p11 }
 0x593   :  { %6276 = shalt.err (!%p6273_p13)
}
 0x594   :  { %5125 = dma.vmem_to_hbm [thread:$0]  %s5120_s17, 256, %s6576_s7, [#allocation4], %s6293_s1, %s6293_s1, %s6294_s23  }
 0x595   :  { %6285 = dma.done.wait [#allocation4], 256  }
 0x596   :  { %6286 = vsyncadd [#allocation4], 4294967040 }
 0x597   :  { %5129 = vsyncpa [#allocation3], 1 }
 0x598   :  { %5130 = vsyncpa [#allocation6], 1 }
 0x599   :  { %5131 = vsyncpa [#allocation9], 1 }
 0x59a   :  { %5132 = vsyncpa [#allocation12], 1 }
 0x59b   :  { %5133 = vsyncpa [#allocation4], 1 }

</bundles_post_ra>
